<compile_context>
chip_gen: v7x
topology: tpu7x:2x2x1
jax: 0.10.0
libtpu: 0.0.40
codegen_flags: <defaults>
</compile_context>

<pallas_src>
import functools

import jax
import jax.numpy as jnp
from jax.experimental import pallas as pl
from jax.experimental.pallas import tpu as pltpu


def _mha_kernel(q_ref, k_ref, v_ref,
                wqT_ref, bq_ref, wkT_ref, bk_ref,
                wvT_ref, bv_ref, woT_ref, bo_ref,
                *out_and_scratch,
                n_heads, head_dim, inv_scale, emit_attention, use_fori_loop):
    if emit_attention:
        x_out_ref, attn_out_ref = out_and_scratch[0], out_and_scratch[1]
        k_scr, v_scr, q_scr, ctx_scr = out_and_scratch[2:]
    else:
        x_out_ref, attn_out_ref = out_and_scratch[0], None
        k_scr, v_scr, q_scr, ctx_scr = out_and_scratch[1:]

    hd = head_dim

    # ---- K / V projections: computed once per batch element (at q-tile 0)
    #      and cached head-major in VMEM scratch.  Correctness requires the
    #      q-tile axis to be the LAST, sequentially iterated ("arbitrary")
    #      grid dimension -- see dimension_semantics in the wrapper. ----
    @pl.when(pl.program_id(1) == 0)
    def _():
        K = (jnp.dot(k_ref[0], wkT_ref[...],
                     preferred_element_type=jnp.float32) + bk_ref[...])   # (S, H)
        V = (jnp.dot(v_ref[0], wvT_ref[...],
                     preferred_element_type=jnp.float32) + bv_ref[...])   # (S, H)
        # One structured 2-D transpose per batch element; the per-head K^T
        # cache is then filled with cheap sublane (full-lane-width) slices so
        # every Q @ K^T below is a straight MXU feed with S on the lane axis.
        KT = K.T                                                          # (H, S)
        for h in range(n_heads):
            k_scr[h] = KT[h * hd:(h + 1) * hd, :]                         # (hd, S)
            # TODO(synk): the V fill still uses one lane slice per head, but it
            # runs once per batch element (amortized over all q-tiles).
            v_scr[h] = V[:, h * hd:(h + 1) * hd]                          # (S, hd)

    # ---- Q projection for this q-tile: one full-width MXU GEMM, with the
    #      1/sqrt(head_dim) scale folded in (matches energy / scale). ----
    Q = (jnp.dot(q_ref[0], wqT_ref[...],
                 preferred_element_type=jnp.float32) + bq_ref[...]) * inv_scale
    for h in range(n_heads):
        q_scr[h] = Q[:, h * hd:(h + 1) * hd]                              # (TQ, hd)

    # ---- per-head attention: bounds the live softmax temporaries to a single
    #      (TQ, S) block and writes each head's attention row lane-dense. ----
    def head_body(h, carry):
        energy = jnp.dot(q_scr[h], k_scr[h],
                         preferred_element_type=jnp.float32)              # (TQ, S)
        # TODO(synk): mask is None in this forward; masked_fill path not emitted.
        m = jnp.max(energy, axis=-1, keepdims=True)
        e = jnp.exp(energy - m)
        attn = e * pl.reciprocal(jnp.sum(e, axis=-1, keepdims=True))
        if attn_out_ref is not None:
            attn_out_ref[0, h] = attn                                     # lane-dense store
        # TODO(synk): dropout on `attn` skipped (inference / eval mode).
        ctx_scr[h] = jnp.dot(attn, v_scr[h],
                             preferred_element_type=jnp.float32)          # (TQ, hd)
        return carry

    if use_fori_loop:
        jax.lax.fori_loop(0, n_heads, head_body, None, unroll=True)
    else:
        for h in range(n_heads):
            head_body(h, None)

    # ---- merge heads + output projection (one full-width MXU GEMM). ----
    # TODO(synk): the per-head concat could become one pltpu.einshape relayout.
    x = jnp.concatenate([ctx_scr[h] for h in range(n_heads)], axis=-1)    # (TQ, H)
    x_out_ref[0] = (jnp.dot(x, woT_ref[...],
                            preferred_element_type=jnp.float32) + bo_ref[...])


def _pad_tile(rows, cols):
    """f32 element count of an (rows, cols) tile padded to (8, 128)."""
    return ((rows + 7) // 8) * 8 * ((cols + 127) // 128) * 128


def _vmem_estimate(S, H, n_heads, head_dim, TQ, *,
                   single_buffer_weights, emit_attention):
    f = 4  # f32 bytes
    wbuf = 1 if single_buffer_weights else 2
    total = 0
    total += 4 * wbuf * _pad_tile(H, H) * f                 # projection weights
    total += 4 * 2 * _pad_tile(1, H) * f                    # biases
    total += 2 * _pad_tile(TQ, H) * f                       # q tile (double-buffered)
    total += 2 * 2 * _pad_tile(S, H) * f                    # k, v tiles
    total += 2 * _pad_tile(TQ, H) * f                       # x output tile
    if emit_attention:
        total += 2 * n_heads * _pad_tile(TQ, S) * f         # attention output tile
    total += n_heads * _pad_tile(head_dim, S) * f           # K^T cache
    total += n_heads * _pad_tile(S, head_dim) * f           # V cache
    total += 2 * n_heads * _pad_tile(TQ, head_dim) * f      # q_scr + ctx_scr
    # headroom for live temporaries / spills
    total += (4 * _pad_tile(TQ, S) + 4 * _pad_tile(TQ, H) + 2 * _pad_tile(S, H)) * f
    return total


def multi_head_attention(query, key, value, params, *, n_heads, q_tile=128,
                         return_attention=True):
    B, S, H = query.shape
    head_dim = H // n_heads
    inv_scale = 1.0 / (float(head_dim) ** 0.5)

    wq, bq, wk, bk, wv, bv, wo, bo = params
    # Pre-transpose the PyTorch-layout (out_features, in_features) weights once
    # on the host; the kernel computes x @ W^T as a straight matmul.
    wqT, wkT, wvT, woT = wq.T, wk.T, wv.T, wo.T
    bq = bq.reshape(1, H)
    bk = bk.reshape(1, H)
    bv = bv.reshape(1, H)
    bo = bo.reshape(1, H)

    # Query-tile size.  Per-generation guidance: ~256 on v6e (128 MiB VMEM),
    # 64-128 on v7x (64 MiB VMEM), <=128 on v5e.  Falls back to the full
    # sequence when S is not a multiple of q_tile; for large non-multiple S,
    # pick a q_tile that divides S to keep per-step VMEM bounded.
    TQ = q_tile if (S > q_tile and S % q_tile == 0) else S
    nQ = S // TQ

    args = (query, key, value, wqT, bq, wkT, bk, wvT, bv, woT, bo)

    def build(single_buffer_weights, use_fori_loop):
        if single_buffer_weights:
            # Constant index_map -> no re-DMA; single-buffering drops the dead
            # second buffer (16 MiB of VMEM at H=1024 f32 across four weights).
            w_spec = pl.BlockSpec((H, H), lambda b, qi: (0, 0),
                                  pipeline_mode=pl.Buffered(1))
        else:
            w_spec = pl.BlockSpec((H, H), lambda b, qi: (0, 0))
        b_spec = pl.BlockSpec((1, H), lambda b, qi: (0, 0))
        q_spec = pl.BlockSpec((1, TQ, H), lambda b, qi: (b, qi, 0))
        kv_spec = pl.BlockSpec((1, S, H), lambda b, qi: (b, 0, 0))

        out_shapes = [jax.ShapeDtypeStruct((B, S, H), jnp.float32)]
        out_specs = [pl.BlockSpec((1, TQ, H), lambda b, qi: (b, qi, 0))]
        if return_attention:
            out_shapes.append(jax.ShapeDtypeStruct((B, n_heads, S, S), jnp.float32))
            out_specs.append(
                pl.BlockSpec((1, n_heads, TQ, S), lambda b, qi: (b, 0, qi, 0)))

        kernel = functools.partial(
            _mha_kernel, n_heads=n_heads, head_dim=head_dim,
            inv_scale=inv_scale, emit_attention=return_attention,
            use_fori_loop=use_fori_loop)

        vmem_limit = _vmem_estimate(
            S, H, n_heads, head_dim, TQ,
            single_buffer_weights=single_buffer_weights,
            emit_attention=return_attention)
        vmem_limit = min(max(int(vmem_limit * 1.25), 32 * 1024 * 1024),
                         128 * 1024 * 1024)

        return pl.pallas_call(
            kernel,
            out_shape=tuple(out_shapes),
            grid_spec=pltpu.PrefetchScalarGridSpec(
                num_scalar_prefetch=0,
                grid=(B, nQ),
                in_specs=[q_spec, kv_spec, kv_spec,
                          w_spec, b_spec, w_spec, b_spec,
                          w_spec, b_spec, w_spec, b_spec],
                out_specs=tuple(out_specs),
                scratch_shapes=[
                    pltpu.VMEM((n_heads, head_dim, S), jnp.float32),   # K^T cache
                    pltpu.VMEM((n_heads, S, head_dim), jnp.float32),   # V cache
                    pltpu.VMEM((n_heads, TQ, head_dim), jnp.float32),  # head-major Q
                    pltpu.VMEM((n_heads, TQ, head_dim), jnp.float32),  # per-head ctx
                ],
            ),
            compiler_params=pltpu.CompilerParams(
                # Batch axis may shard across cores; the q-tile axis MUST stay
                # the last, sequentially iterated ("arbitrary") axis so the
                # per-batch K/V scratch cache is valid.
                dimension_semantics=("parallel", "arbitrary"),
                vmem_limit_bytes=vmem_limit,
            ),
        )

    try:
        outs = build(single_buffer_weights=True, use_fori_loop=True)(*args)
    except Exception:
        # Portable fallback for JAX versions without BlockSpec pipeline_mode /
        # dynamic head-index lowering: default buffering + fully static loop.
        outs = build(single_buffer_weights=False, use_fori_loop=False)(*args)

    x_out = outs[0]
    attn_out = outs[1] if return_attention else None
    return x_out, attn_out


def reference_mha(query, key, value, params, *, n_heads):
    """Pure-JAX reference mirroring the PyTorch forward (eval mode, no mask)."""
    wq, bq, wk, bk, wv, bv, wo, bo = params
    B, S, H = query.shape
    hd = H // n_heads
    scale = jnp.sqrt(jnp.float32(hd))

    Q = query @ wq.T + bq
    K = key @ wk.T + bk
    V = value @ wv.T + bv
    Q = Q.reshape(B, S, n_heads, hd).transpose(0, 2, 1, 3)
    K = K.reshape(B, S, n_heads, hd).transpose(0, 2, 1, 3)
    V = V.reshape(B, S, n_heads, hd).transpose(0, 2, 1, 3)
    energy = jnp.einsum('bhqd,bhkd->bhqk', Q, K) / scale
    attn = jax.nn.softmax(energy, axis=-1)
    x = jnp.einsum('bhqk,bhkd->bhqd', attn, V)
    x = x.transpose(0, 2, 1, 3).reshape(B, S, H)
    x = x @ wo.T + bo
    return x, attn


if __name__ == "__main__":
    B, S, H, n_heads = 2, 8, 32, 4

    key0 = jax.random.PRNGKey(0)
    keys = jax.random.split(key0, 12)

    def linear_init(kw, kb, out_f, in_f):
        bound = 1.0 / (in_f ** 0.5)
        w = jax.random.uniform(kw, (out_f, in_f), jnp.float32, -bound, bound)
        b = jax.random.uniform(kb, (out_f,), jnp.float32, -bound, bound)
        return w, b

    wq, bq = linear_init(keys[0], keys[1], H, H)
    wk, bk = linear_init(keys[2], keys[3], H, H)
    wv, bv = linear_init(keys[4], keys[5], H, H)
    wo, bo = linear_init(keys[6], keys[7], H, H)
    params = (wq, bq, wk, bk, wv, bv, wo, bo)

    query = jax.random.normal(keys[8], (B, S, H), jnp.float32)
    key_in = jax.random.normal(keys[9], (B, S, H), jnp.float32)
    value = jax.random.normal(keys[10], (B, S, H), jnp.float32)

    x_out, attn_out = multi_head_attention(query, key_in, value, params,
                                           n_heads=n_heads)
    jax.block_until_ready((x_out, attn_out))

    x_ref, attn_ref = reference_mha(query, key_in, value, params,
                                    n_heads=n_heads)
    assert jnp.allclose(x_out, x_ref, atol=1e-4, rtol=1e-4)
    assert jnp.allclose(attn_out, attn_ref, atol=1e-4, rtol=1e-4)

    print("KERNEL_OK")
</pallas_src>

<mosaic_0001>
module attributes {stable_mosaic.version = 11 : i64} {
  func.func @_mha_kernel(%arg0: i32, %arg1: i32, %arg2: memref<1x8x32xf32, #tpu.memory_space<vmem>>, %arg3: memref<1x8x32xf32, #tpu.memory_space<vmem>>, %arg4: memref<1x8x32xf32, #tpu.memory_space<vmem>>, %arg5: memref<32x32xf32, #tpu.memory_space<vmem>>, %arg6: memref<1x32xf32, #tpu.memory_space<vmem>>, %arg7: memref<32x32xf32, #tpu.memory_space<vmem>>, %arg8: memref<1x32xf32, #tpu.memory_space<vmem>>, %arg9: memref<32x32xf32, #tpu.memory_space<vmem>>, %arg10: memref<1x32xf32, #tpu.memory_space<vmem>>, %arg11: memref<32x32xf32, #tpu.memory_space<vmem>>, %arg12: memref<1x32xf32, #tpu.memory_space<vmem>>, %arg13: memref<1x8x32xf32, #tpu.memory_space<vmem>>, %arg14: memref<1x4x8x8xf32, #tpu.memory_space<vmem>>, %arg15: memref<4x8x8xf32, #tpu.memory_space<vmem>>, %arg16: memref<4x8x8xf32, #tpu.memory_space<vmem>>, %arg17: memref<4x8x8xf32, #tpu.memory_space<vmem>>, %arg18: memref<4x8x8xf32, #tpu.memory_space<vmem>>) attributes {dimension_semantics = [#tpu.dimension_semantics<parallel>, #tpu.dimension_semantics<arbitrary>], iteration_bounds = array<i64: 2, 1>, scalar_prefetch = 0 : i64, scratch_operands = 4 : i64, tpu.core_type = #tpu.core_type<tc>, window_params = [{transform_indices = @transform_0, window_bounds = array<i64: 1, 8, 32>}, {transform_indices = @transform_1, window_bounds = array<i64: 1, 8, 32>}, {transform_indices = @transform_2, window_bounds = array<i64: 1, 8, 32>}, {pipeline_mode = #tpu.pipeline_mode<synchronous>, transform_indices = @transform_3, window_bounds = array<i64: 32, 32>}, {pipeline_mode = #tpu.pipeline_mode<synchronous>, transform_indices = @transform_4, window_bounds = array<i64: 1, 32>}, {pipeline_mode = #tpu.pipeline_mode<synchronous>, transform_indices = @transform_5, window_bounds = array<i64: 32, 32>}, {pipeline_mode = #tpu.pipeline_mode<synchronous>, transform_indices = @transform_6, window_bounds = array<i64: 1, 32>}, {pipeline_mode = #tpu.pipeline_mode<synchronous>, transform_indices = @transform_7, window_bounds = array<i64: 32, 32>}, {pipeline_mode = #tpu.pipeline_mode<synchronous>, transform_indices = @transform_8, window_bounds = array<i64: 1, 32>}, {pipeline_mode = #tpu.pipeline_mode<synchronous>, transform_indices = @transform_9, window_bounds = array<i64: 32, 32>}, {pipeline_mode = #tpu.pipeline_mode<synchronous>, transform_indices = @transform_10, window_bounds = array<i64: 1, 32>}, {transform_indices = @transform_11, window_bounds = array<i64: 1, 8, 32>}, {transform_indices = @transform_12, window_bounds = array<i64: 1, 4, 8, 8>}]} {
    %c0_i32 = arith.constant 0 : i32
    %0 = arith.cmpi eq, %arg1, %c0_i32 : i32
    %1 = arith.extui %0 : i1 to i32
    %c0_i32_0 = arith.constant 0 : i32
    %2 = arith.cmpi ne, %1, %c0_i32_0 : i32
    scf.if %2 {
      %c0_98 = arith.constant 0 : index
      %c0_99 = arith.constant 0 : index
      %c0_100 = arith.constant 0 : index
      %161 = vector.load %arg3[%c0_98, %c0_99, %c0_100] : memref<1x8x32xf32, #tpu.memory_space<vmem>>, vector<1x8x32xf32>
      %162 = vector.shape_cast %161 : vector<1x8x32xf32> to vector<8x32xf32>
      %c0_101 = arith.constant 0 : index
      %c0_102 = arith.constant 0 : index
      %163 = vector.load %arg7[%c0_101, %c0_102] : memref<32x32xf32, #tpu.memory_space<vmem>>, vector<32x32xf32>
      %cst_103 = arith.constant dense<0.000000e+00> : vector<8x32xf32>
      %164 = tpu.matmul %162, %163, %cst_103 {dimension_numbers = #tpu.dot_dimension_numbers<[1], [0], [0], [1], [0, 0, 1, 1], [], []>} : vector<8x32xf32>, vector<32x32xf32>, vector<8x32xf32> -> vector<8x32xf32>
      %c0_104 = arith.constant 0 : index
      %c0_105 = arith.constant 0 : index
      %165 = vector.load %arg8[%c0_104, %c0_105] : memref<1x32xf32, #tpu.memory_space<vmem>>, vector<1x32xf32>
      %166 = vector.broadcast %165 : vector<1x32xf32> to vector<8x32xf32>
      %167 = arith.addf %164, %166 : vector<8x32xf32>
      %c0_106 = arith.constant 0 : index
      %c0_107 = arith.constant 0 : index
      %c0_108 = arith.constant 0 : index
      %168 = vector.load %arg4[%c0_106, %c0_107, %c0_108] : memref<1x8x32xf32, #tpu.memory_space<vmem>>, vector<1x8x32xf32>
      %169 = vector.shape_cast %168 : vector<1x8x32xf32> to vector<8x32xf32>
      %c0_109 = arith.constant 0 : index
      %c0_110 = arith.constant 0 : index
      %170 = vector.load %arg9[%c0_109, %c0_110] : memref<32x32xf32, #tpu.memory_space<vmem>>, vector<32x32xf32>
      %cst_111 = arith.constant dense<0.000000e+00> : vector<8x32xf32>
      %171 = tpu.matmul %169, %170, %cst_111 {dimension_numbers = #tpu.dot_dimension_numbers<[1], [0], [0], [1], [0, 0, 1, 1], [], []>} : vector<8x32xf32>, vector<32x32xf32>, vector<8x32xf32> -> vector<8x32xf32>
      %c0_112 = arith.constant 0 : index
      %c0_113 = arith.constant 0 : index
      %172 = vector.load %arg10[%c0_112, %c0_113] : memref<1x32xf32, #tpu.memory_space<vmem>>, vector<1x32xf32>
      %173 = vector.broadcast %172 : vector<1x32xf32> to vector<8x32xf32>
      %174 = arith.addf %171, %173 : vector<8x32xf32>
      %175 = tpu.transpose %167, [1, 0] : vector<8x32xf32> -> vector<32x8xf32>
      %176 = vector.extract_strided_slice %175 {offsets = [0, 0], sizes = [8, 8], strides = [1, 1]} : vector<32x8xf32> to vector<8x8xf32>
      %c0_114 = arith.constant 0 : index
      %c0_115 = arith.constant 0 : index
      %c0_116 = arith.constant 0 : index
      %177 = vector.load %arg15[%c0_114, %c0_115, %c0_116] : memref<4x8x8xf32, #tpu.memory_space<vmem>>, vector<1x8x8xf32>
      %178 = vector.shape_cast %177 : vector<1x8x8xf32> to vector<8x8xf32>
      %179 = vector.shape_cast %176 : vector<8x8xf32> to vector<1x8x8xf32>
      tpu.vector_store %arg15[%c0_114, %c0_115, %c0_116], %179 {strides = array<i32>} : memref<4x8x8xf32, #tpu.memory_space<vmem>>, vector<1x8x8xf32>,
      %180 = vector.extract_strided_slice %174 {offsets = [0, 0], sizes = [8, 8], strides = [1, 1]} : vector<8x32xf32> to vector<8x8xf32>
      %c0_117 = arith.constant 0 : index
      %c0_118 = arith.constant 0 : index
      %c0_119 = arith.constant 0 : index
      %181 = vector.load %arg16[%c0_117, %c0_118, %c0_119] : memref<4x8x8xf32, #tpu.memory_space<vmem>>, vector<1x8x8xf32>
      %182 = vector.shape_cast %181 : vector<1x8x8xf32> to vector<8x8xf32>
      %183 = vector.shape_cast %180 : vector<8x8xf32> to vector<1x8x8xf32>
      tpu.vector_store %arg16[%c0_117, %c0_118, %c0_119], %183 {strides = array<i32>} : memref<4x8x8xf32, #tpu.memory_space<vmem>>, vector<1x8x8xf32>,
      %184 = vector.extract_strided_slice %175 {offsets = [8, 0], sizes = [8, 8], strides = [1, 1]} : vector<32x8xf32> to vector<8x8xf32>
      %c1_120 = arith.constant 1 : index
      %c0_121 = arith.constant 0 : index
      %c0_122 = arith.constant 0 : index
      %185 = vector.load %arg15[%c1_120, %c0_121, %c0_122] : memref<4x8x8xf32, #tpu.memory_space<vmem>>, vector<1x8x8xf32>
      %186 = vector.shape_cast %185 : vector<1x8x8xf32> to vector<8x8xf32>
      %187 = vector.shape_cast %184 : vector<8x8xf32> to vector<1x8x8xf32>
      tpu.vector_store %arg15[%c1_120, %c0_121, %c0_122], %187 {strides = array<i32>} : memref<4x8x8xf32, #tpu.memory_space<vmem>>, vector<1x8x8xf32>,
      %188 = vector.extract_strided_slice %174 {offsets = [0, 8], sizes = [8, 8], strides = [1, 1]} : vector<8x32xf32> to vector<8x8xf32>
      %c1_123 = arith.constant 1 : index
      %c0_124 = arith.constant 0 : index
      %c0_125 = arith.constant 0 : index
      %189 = vector.load %arg16[%c1_123, %c0_124, %c0_125] : memref<4x8x8xf32, #tpu.memory_space<vmem>>, vector<1x8x8xf32>
      %190 = vector.shape_cast %189 : vector<1x8x8xf32> to vector<8x8xf32>
      %191 = vector.shape_cast %188 : vector<8x8xf32> to vector<1x8x8xf32>
      tpu.vector_store %arg16[%c1_123, %c0_124, %c0_125], %191 {strides = array<i32>} : memref<4x8x8xf32, #tpu.memory_space<vmem>>, vector<1x8x8xf32>,
      %192 = vector.extract_strided_slice %175 {offsets = [16, 0], sizes = [8, 8], strides = [1, 1]} : vector<32x8xf32> to vector<8x8xf32>
      %c2_126 = arith.constant 2 : index
      %c0_127 = arith.constant 0 : index
      %c0_128 = arith.constant 0 : index
      %193 = vector.load %arg15[%c2_126, %c0_127, %c0_128] : memref<4x8x8xf32, #tpu.memory_space<vmem>>, vector<1x8x8xf32>
      %194 = vector.shape_cast %193 : vector<1x8x8xf32> to vector<8x8xf32>
      %195 = vector.shape_cast %192 : vector<8x8xf32> to vector<1x8x8xf32>
      tpu.vector_store %arg15[%c2_126, %c0_127, %c0_128], %195 {strides = array<i32>} : memref<4x8x8xf32, #tpu.memory_space<vmem>>, vector<1x8x8xf32>,
      %196 = vector.extract_strided_slice %174 {offsets = [0, 16], sizes = [8, 8], strides = [1, 1]} : vector<8x32xf32> to vector<8x8xf32>
      %c2_129 = arith.constant 2 : index
      %c0_130 = arith.constant 0 : index
      %c0_131 = arith.constant 0 : index
      %197 = vector.load %arg16[%c2_129, %c0_130, %c0_131] : memref<4x8x8xf32, #tpu.memory_space<vmem>>, vector<1x8x8xf32>
      %198 = vector.shape_cast %197 : vector<1x8x8xf32> to vector<8x8xf32>
      %199 = vector.shape_cast %196 : vector<8x8xf32> to vector<1x8x8xf32>
      tpu.vector_store %arg16[%c2_129, %c0_130, %c0_131], %199 {strides = array<i32>} : memref<4x8x8xf32, #tpu.memory_space<vmem>>, vector<1x8x8xf32>,
      %200 = vector.extract_strided_slice %175 {offsets = [24, 0], sizes = [8, 8], strides = [1, 1]} : vector<32x8xf32> to vector<8x8xf32>
      %c3_132 = arith.constant 3 : index
      %c0_133 = arith.constant 0 : index
      %c0_134 = arith.constant 0 : index
      %201 = vector.load %arg15[%c3_132, %c0_133, %c0_134] : memref<4x8x8xf32, #tpu.memory_space<vmem>>, vector<1x8x8xf32>
      %202 = vector.shape_cast %201 : vector<1x8x8xf32> to vector<8x8xf32>
      %203 = vector.shape_cast %200 : vector<8x8xf32> to vector<1x8x8xf32>
      tpu.vector_store %arg15[%c3_132, %c0_133, %c0_134], %203 {strides = array<i32>} : memref<4x8x8xf32, #tpu.memory_space<vmem>>, vector<1x8x8xf32>,
      %204 = vector.extract_strided_slice %174 {offsets = [0, 24], sizes = [8, 8], strides = [1, 1]} : vector<8x32xf32> to vector<8x8xf32>
      %c3_135 = arith.constant 3 : index
      %c0_136 = arith.constant 0 : index
      %c0_137 = arith.constant 0 : index
      %205 = vector.load %arg16[%c3_135, %c0_136, %c0_137] : memref<4x8x8xf32, #tpu.memory_space<vmem>>, vector<1x8x8xf32>
      %206 = vector.shape_cast %205 : vector<1x8x8xf32> to vector<8x8xf32>
      %207 = vector.shape_cast %204 : vector<8x8xf32> to vector<1x8x8xf32>
      tpu.vector_store %arg16[%c3_135, %c0_136, %c0_137], %207 {strides = array<i32>} : memref<4x8x8xf32, #tpu.memory_space<vmem>>, vector<1x8x8xf32>,
    } else {
    }
    %c0 = arith.constant 0 : index
    %c0_1 = arith.constant 0 : index
    %c0_2 = arith.constant 0 : index
    %3 = vector.load %arg2[%c0, %c0_1, %c0_2] : memref<1x8x32xf32, #tpu.memory_space<vmem>>, vector<1x8x32xf32>
    %4 = vector.shape_cast %3 : vector<1x8x32xf32> to vector<8x32xf32>
    %c0_3 = arith.constant 0 : index
    %c0_4 = arith.constant 0 : index
    %5 = vector.load %arg5[%c0_3, %c0_4] : memref<32x32xf32, #tpu.memory_space<vmem>>, vector<32x32xf32>
    %cst = arith.constant dense<0.000000e+00> : vector<8x32xf32>
    %6 = tpu.matmul %4, %5, %cst {dimension_numbers = #tpu.dot_dimension_numbers<[1], [0], [0], [1], [0, 0, 1, 1], [], []>} : vector<8x32xf32>, vector<32x32xf32>, vector<8x32xf32> -> vector<8x32xf32>
    %c0_5 = arith.constant 0 : index
    %c0_6 = arith.constant 0 : index
    %7 = vector.load %arg6[%c0_5, %c0_6] : memref<1x32xf32, #tpu.memory_space<vmem>>, vector<1x32xf32>
    %8 = vector.broadcast %7 : vector<1x32xf32> to vector<8x32xf32>
    %9 = arith.addf %6, %8 : vector<8x32xf32>
    %cst_7 = arith.constant 0.353553385 : f32
    %10 = vector.broadcast %cst_7 : f32 to vector<8x32xf32>
    %11 = arith.mulf %9, %10 : vector<8x32xf32>
    %12 = vector.extract_strided_slice %11 {offsets = [0, 0], sizes = [8, 8], strides = [1, 1]} : vector<8x32xf32> to vector<8x8xf32>
    %c0_8 = arith.constant 0 : index
    %c0_9 = arith.constant 0 : index
    %c0_10 = arith.constant 0 : index
    %13 = vector.load %arg17[%c0_8, %c0_9, %c0_10] : memref<4x8x8xf32, #tpu.memory_space<vmem>>, vector<1x8x8xf32>
    %14 = vector.shape_cast %13 : vector<1x8x8xf32> to vector<8x8xf32>
    %15 = vector.shape_cast %12 : vector<8x8xf32> to vector<1x8x8xf32>
    tpu.vector_store %arg17[%c0_8, %c0_9, %c0_10], %15 {strides = array<i32>} : memref<4x8x8xf32, #tpu.memory_space<vmem>>, vector<1x8x8xf32>,
    %16 = vector.extract_strided_slice %11 {offsets = [0, 8], sizes = [8, 8], strides = [1, 1]} : vector<8x32xf32> to vector<8x8xf32>
    %c1 = arith.constant 1 : index
    %c0_11 = arith.constant 0 : index
    %c0_12 = arith.constant 0 : index
    %17 = vector.load %arg17[%c1, %c0_11, %c0_12] : memref<4x8x8xf32, #tpu.memory_space<vmem>>, vector<1x8x8xf32>
    %18 = vector.shape_cast %17 : vector<1x8x8xf32> to vector<8x8xf32>
    %19 = vector.shape_cast %16 : vector<8x8xf32> to vector<1x8x8xf32>
    tpu.vector_store %arg17[%c1, %c0_11, %c0_12], %19 {strides = array<i32>} : memref<4x8x8xf32, #tpu.memory_space<vmem>>, vector<1x8x8xf32>,
    %20 = vector.extract_strided_slice %11 {offsets = [0, 16], sizes = [8, 8], strides = [1, 1]} : vector<8x32xf32> to vector<8x8xf32>
    %c2 = arith.constant 2 : index
    %c0_13 = arith.constant 0 : index
    %c0_14 = arith.constant 0 : index
    %21 = vector.load %arg17[%c2, %c0_13, %c0_14] : memref<4x8x8xf32, #tpu.memory_space<vmem>>, vector<1x8x8xf32>
    %22 = vector.shape_cast %21 : vector<1x8x8xf32> to vector<8x8xf32>
    %23 = vector.shape_cast %20 : vector<8x8xf32> to vector<1x8x8xf32>
    tpu.vector_store %arg17[%c2, %c0_13, %c0_14], %23 {strides = array<i32>} : memref<4x8x8xf32, #tpu.memory_space<vmem>>, vector<1x8x8xf32>,
    %24 = vector.extract_strided_slice %11 {offsets = [0, 24], sizes = [8, 8], strides = [1, 1]} : vector<8x32xf32> to vector<8x8xf32>
    %c3 = arith.constant 3 : index
    %c0_15 = arith.constant 0 : index
    %c0_16 = arith.constant 0 : index
    %25 = vector.load %arg17[%c3, %c0_15, %c0_16] : memref<4x8x8xf32, #tpu.memory_space<vmem>>, vector<1x8x8xf32>
    %26 = vector.shape_cast %25 : vector<1x8x8xf32> to vector<8x8xf32>
    %27 = vector.shape_cast %24 : vector<8x8xf32> to vector<1x8x8xf32>
    tpu.vector_store %arg17[%c3, %c0_15, %c0_16], %27 {strides = array<i32>} : memref<4x8x8xf32, #tpu.memory_space<vmem>>, vector<1x8x8xf32>,
    %c0_i32_17 = arith.constant 0 : i32
    %28 = arith.index_cast %c0_i32_17 : i32 to index
    %c0_18 = arith.constant 0 : index
    %c0_19 = arith.constant 0 : index
    %29 = vector.load %arg17[%28, %c0_18, %c0_19] : memref<4x8x8xf32, #tpu.memory_space<vmem>>, vector<1x8x8xf32>
    %30 = vector.shape_cast %29 : vector<1x8x8xf32> to vector<8x8xf32>
    %31 = arith.index_cast %c0_i32_17 : i32 to index
    %c0_20 = arith.constant 0 : index
    %c0_21 = arith.constant 0 : index
    %32 = vector.load %arg15[%31, %c0_20, %c0_21] : memref<4x8x8xf32, #tpu.memory_space<vmem>>, vector<1x8x8xf32>
    %33 = vector.shape_cast %32 : vector<1x8x8xf32> to vector<8x8xf32>
    %cst_22 = arith.constant dense<0.000000e+00> : vector<8x8xf32>
    %34 = tpu.matmul %30, %33, %cst_22 {dimension_numbers = #tpu.dot_dimension_numbers<[1], [0], [0], [1], [0, 0, 1, 1], [], []>} : vector<8x8xf32>, vector<8x8xf32>, vector<8x8xf32> -> vector<8x8xf32>
    %cst_23 = arith.constant dense<0xFF800000> : vector<8xf32>
    %35 = vector.multi_reduction <maximumf>, %34, %cst_23 [1] : vector<8x8xf32> to vector<8xf32>
    %36 = vector.shape_cast %35 : vector<8xf32> to vector<8x1xf32>
    %37 = vector.broadcast %36 : vector<8x1xf32> to vector<8x8xf32>
    %38 = arith.subf %34, %37 : vector<8x8xf32>
    %39 = math.exp %38 : vector<8x8xf32>
    %cst_24 = arith.constant dense<0.000000e+00> : vector<8xf32>
    %40 = vector.multi_reduction <add>, %39, %cst_24 [1] : vector<8x8xf32> to vector<8xf32>
    %41 = vector.shape_cast %40 : vector<8xf32> to vector<8x1xf32>
    %42 = tpu.reciprocal %41 : vector<8x1xf32> -> vector<8x1xf32>
    %43 = vector.broadcast %42 : vector<8x1xf32> to vector<8x8xf32>
    %44 = arith.mulf %39, %43 : vector<8x8xf32>
    %c0_25 = arith.constant 0 : index
    %45 = arith.index_cast %c0_i32_17 : i32 to index
    %c0_26 = arith.constant 0 : index
    %c0_27 = arith.constant 0 : index
    %46 = vector.load %arg14[%c0_25, %45, %c0_26, %c0_27] : memref<1x4x8x8xf32, #tpu.memory_space<vmem>>, vector<1x1x8x8xf32>
    %47 = vector.shape_cast %46 : vector<1x1x8x8xf32> to vector<8x8xf32>
    %48 = vector.shape_cast %44 : vector<8x8xf32> to vector<1x1x8x8xf32>
    tpu.vector_store %arg14[%c0_25, %45, %c0_26, %c0_27], %48 {strides = array<i32>} : memref<1x4x8x8xf32, #tpu.memory_space<vmem>>, vector<1x1x8x8xf32>,
    %49 = arith.index_cast %c0_i32_17 : i32 to index
    %c0_28 = arith.constant 0 : index
    %c0_29 = arith.constant 0 : index
    %50 = vector.load %arg16[%49, %c0_28, %c0_29] : memref<4x8x8xf32, #tpu.memory_space<vmem>>, vector<1x8x8xf32>
    %51 = vector.shape_cast %50 : vector<1x8x8xf32> to vector<8x8xf32>
    %cst_30 = arith.constant dense<0.000000e+00> : vector<8x8xf32>
    %52 = tpu.matmul %44, %51, %cst_30 {dimension_numbers = #tpu.dot_dimension_numbers<[1], [0], [0], [1], [0, 0, 1, 1], [], []>} : vector<8x8xf32>, vector<8x8xf32>, vector<8x8xf32> -> vector<8x8xf32>
    %53 = arith.index_cast %c0_i32_17 : i32 to index
    %c0_31 = arith.constant 0 : index
    %c0_32 = arith.constant 0 : index
    %54 = vector.load %arg18[%53, %c0_31, %c0_32] : memref<4x8x8xf32, #tpu.memory_space<vmem>>, vector<1x8x8xf32>
    %55 = vector.shape_cast %54 : vector<1x8x8xf32> to vector<8x8xf32>
    %56 = vector.shape_cast %52 : vector<8x8xf32> to vector<1x8x8xf32>
    tpu.vector_store %arg18[%53, %c0_31, %c0_32], %56 {strides = array<i32>} : memref<4x8x8xf32, #tpu.memory_space<vmem>>, vector<1x8x8xf32>,
    %c1_i32 = arith.constant 1 : i32
    %57 = arith.index_cast %c1_i32 : i32 to index
    %c0_33 = arith.constant 0 : index
    %c0_34 = arith.constant 0 : index
    %58 = vector.load %arg17[%57, %c0_33, %c0_34] : memref<4x8x8xf32, #tpu.memory_space<vmem>>, vector<1x8x8xf32>
    %59 = vector.shape_cast %58 : vector<1x8x8xf32> to vector<8x8xf32>
    %60 = arith.index_cast %c1_i32 : i32 to index
    %c0_35 = arith.constant 0 : index
    %c0_36 = arith.constant 0 : index
    %61 = vector.load %arg15[%60, %c0_35, %c0_36] : memref<4x8x8xf32, #tpu.memory_space<vmem>>, vector<1x8x8xf32>
    %62 = vector.shape_cast %61 : vector<1x8x8xf32> to vector<8x8xf32>
    %cst_37 = arith.constant dense<0.000000e+00> : vector<8x8xf32>
    %63 = tpu.matmul %59, %62, %cst_37 {dimension_numbers = #tpu.dot_dimension_numbers<[1], [0], [0], [1], [0, 0, 1, 1], [], []>} : vector<8x8xf32>, vector<8x8xf32>, vector<8x8xf32> -> vector<8x8xf32>
    %cst_38 = arith.constant dense<0xFF800000> : vector<8xf32>
    %64 = vector.multi_reduction <maximumf>, %63, %cst_38 [1] : vector<8x8xf32> to vector<8xf32>
    %65 = vector.shape_cast %64 : vector<8xf32> to vector<8x1xf32>
    %66 = vector.broadcast %65 : vector<8x1xf32> to vector<8x8xf32>
    %67 = arith.subf %63, %66 : vector<8x8xf32>
    %68 = math.exp %67 : vector<8x8xf32>
    %cst_39 = arith.constant dense<0.000000e+00> : vector<8xf32>
    %69 = vector.multi_reduction <add>, %68, %cst_39 [1] : vector<8x8xf32> to vector<8xf32>
    %70 = vector.shape_cast %69 : vector<8xf32> to vector<8x1xf32>
    %71 = tpu.reciprocal %70 : vector<8x1xf32> -> vector<8x1xf32>
    %72 = vector.broadcast %71 : vector<8x1xf32> to vector<8x8xf32>
    %73 = arith.mulf %68, %72 : vector<8x8xf32>
    %c0_40 = arith.constant 0 : index
    %74 = arith.index_cast %c1_i32 : i32 to index
    %c0_41 = arith.constant 0 : index
    %c0_42 = arith.constant 0 : index
    %75 = vector.load %arg14[%c0_40, %74, %c0_41, %c0_42] : memref<1x4x8x8xf32, #tpu.memory_space<vmem>>, vector<1x1x8x8xf32>
    %76 = vector.shape_cast %75 : vector<1x1x8x8xf32> to vector<8x8xf32>
    %77 = vector.shape_cast %73 : vector<8x8xf32> to vector<1x1x8x8xf32>
    tpu.vector_store %arg14[%c0_40, %74, %c0_41, %c0_42], %77 {strides = array<i32>} : memref<1x4x8x8xf32, #tpu.memory_space<vmem>>, vector<1x1x8x8xf32>,
    %78 = arith.index_cast %c1_i32 : i32 to index
    %c0_43 = arith.constant 0 : index
    %c0_44 = arith.constant 0 : index
    %79 = vector.load %arg16[%78, %c0_43, %c0_44] : memref<4x8x8xf32, #tpu.memory_space<vmem>>, vector<1x8x8xf32>
    %80 = vector.shape_cast %79 : vector<1x8x8xf32> to vector<8x8xf32>
    %cst_45 = arith.constant dense<0.000000e+00> : vector<8x8xf32>
    %81 = tpu.matmul %73, %80, %cst_45 {dimension_numbers = #tpu.dot_dimension_numbers<[1], [0], [0], [1], [0, 0, 1, 1], [], []>} : vector<8x8xf32>, vector<8x8xf32>, vector<8x8xf32> -> vector<8x8xf32>
    %82 = arith.index_cast %c1_i32 : i32 to index
    %c0_46 = arith.constant 0 : index
    %c0_47 = arith.constant 0 : index
    %83 = vector.load %arg18[%82, %c0_46, %c0_47] : memref<4x8x8xf32, #tpu.memory_space<vmem>>, vector<1x8x8xf32>
    %84 = vector.shape_cast %83 : vector<1x8x8xf32> to vector<8x8xf32>
    %85 = vector.shape_cast %81 : vector<8x8xf32> to vector<1x8x8xf32>
    tpu.vector_store %arg18[%82, %c0_46, %c0_47], %85 {strides = array<i32>} : memref<4x8x8xf32, #tpu.memory_space<vmem>>, vector<1x8x8xf32>,
    %c2_i32 = arith.constant 2 : i32
    %86 = arith.index_cast %c2_i32 : i32 to index
    %c0_48 = arith.constant 0 : index
    %c0_49 = arith.constant 0 : index
    %87 = vector.load %arg17[%86, %c0_48, %c0_49] : memref<4x8x8xf32, #tpu.memory_space<vmem>>, vector<1x8x8xf32>
    %88 = vector.shape_cast %87 : vector<1x8x8xf32> to vector<8x8xf32>
    %89 = arith.index_cast %c2_i32 : i32 to index
    %c0_50 = arith.constant 0 : index
    %c0_51 = arith.constant 0 : index
    %90 = vector.load %arg15[%89, %c0_50, %c0_51] : memref<4x8x8xf32, #tpu.memory_space<vmem>>, vector<1x8x8xf32>
    %91 = vector.shape_cast %90 : vector<1x8x8xf32> to vector<8x8xf32>
    %cst_52 = arith.constant dense<0.000000e+00> : vector<8x8xf32>
    %92 = tpu.matmul %88, %91, %cst_52 {dimension_numbers = #tpu.dot_dimension_numbers<[1], [0], [0], [1], [0, 0, 1, 1], [], []>} : vector<8x8xf32>, vector<8x8xf32>, vector<8x8xf32> -> vector<8x8xf32>
    %cst_53 = arith.constant dense<0xFF800000> : vector<8xf32>
    %93 = vector.multi_reduction <maximumf>, %92, %cst_53 [1] : vector<8x8xf32> to vector<8xf32>
    %94 = vector.shape_cast %93 : vector<8xf32> to vector<8x1xf32>
    %95 = vector.broadcast %94 : vector<8x1xf32> to vector<8x8xf32>
    %96 = arith.subf %92, %95 : vector<8x8xf32>
    %97 = math.exp %96 : vector<8x8xf32>
    %cst_54 = arith.constant dense<0.000000e+00> : vector<8xf32>
    %98 = vector.multi_reduction <add>, %97, %cst_54 [1] : vector<8x8xf32> to vector<8xf32>
    %99 = vector.shape_cast %98 : vector<8xf32> to vector<8x1xf32>
    %100 = tpu.reciprocal %99 : vector<8x1xf32> -> vector<8x1xf32>
    %101 = vector.broadcast %100 : vector<8x1xf32> to vector<8x8xf32>
    %102 = arith.mulf %97, %101 : vector<8x8xf32>
    %c0_55 = arith.constant 0 : index
    %103 = arith.index_cast %c2_i32 : i32 to index
    %c0_56 = arith.constant 0 : index
    %c0_57 = arith.constant 0 : index
    %104 = vector.load %arg14[%c0_55, %103, %c0_56, %c0_57] : memref<1x4x8x8xf32, #tpu.memory_space<vmem>>, vector<1x1x8x8xf32>
    %105 = vector.shape_cast %104 : vector<1x1x8x8xf32> to vector<8x8xf32>
    %106 = vector.shape_cast %102 : vector<8x8xf32> to vector<1x1x8x8xf32>
    tpu.vector_store %arg14[%c0_55, %103, %c0_56, %c0_57], %106 {strides = array<i32>} : memref<1x4x8x8xf32, #tpu.memory_space<vmem>>, vector<1x1x8x8xf32>,
    %107 = arith.index_cast %c2_i32 : i32 to index
    %c0_58 = arith.constant 0 : index
    %c0_59 = arith.constant 0 : index
    %108 = vector.load %arg16[%107, %c0_58, %c0_59] : memref<4x8x8xf32, #tpu.memory_space<vmem>>, vector<1x8x8xf32>
    %109 = vector.shape_cast %108 : vector<1x8x8xf32> to vector<8x8xf32>
    %cst_60 = arith.constant dense<0.000000e+00> : vector<8x8xf32>
    %110 = tpu.matmul %102, %109, %cst_60 {dimension_numbers = #tpu.dot_dimension_numbers<[1], [0], [0], [1], [0, 0, 1, 1], [], []>} : vector<8x8xf32>, vector<8x8xf32>, vector<8x8xf32> -> vector<8x8xf32>
    %111 = arith.index_cast %c2_i32 : i32 to index
    %c0_61 = arith.constant 0 : index
    %c0_62 = arith.constant 0 : index
    %112 = vector.load %arg18[%111, %c0_61, %c0_62] : memref<4x8x8xf32, #tpu.memory_space<vmem>>, vector<1x8x8xf32>
    %113 = vector.shape_cast %112 : vector<1x8x8xf32> to vector<8x8xf32>
    %114 = vector.shape_cast %110 : vector<8x8xf32> to vector<1x8x8xf32>
    tpu.vector_store %arg18[%111, %c0_61, %c0_62], %114 {strides = array<i32>} : memref<4x8x8xf32, #tpu.memory_space<vmem>>, vector<1x8x8xf32>,
    %c3_i32 = arith.constant 3 : i32
    %115 = arith.index_cast %c3_i32 : i32 to index
    %c0_63 = arith.constant 0 : index
    %c0_64 = arith.constant 0 : index
    %116 = vector.load %arg17[%115, %c0_63, %c0_64] : memref<4x8x8xf32, #tpu.memory_space<vmem>>, vector<1x8x8xf32>
    %117 = vector.shape_cast %116 : vector<1x8x8xf32> to vector<8x8xf32>
    %118 = arith.index_cast %c3_i32 : i32 to index
    %c0_65 = arith.constant 0 : index
    %c0_66 = arith.constant 0 : index
    %119 = vector.load %arg15[%118, %c0_65, %c0_66] : memref<4x8x8xf32, #tpu.memory_space<vmem>>, vector<1x8x8xf32>
    %120 = vector.shape_cast %119 : vector<1x8x8xf32> to vector<8x8xf32>
    %cst_67 = arith.constant dense<0.000000e+00> : vector<8x8xf32>
    %121 = tpu.matmul %117, %120, %cst_67 {dimension_numbers = #tpu.dot_dimension_numbers<[1], [0], [0], [1], [0, 0, 1, 1], [], []>} : vector<8x8xf32>, vector<8x8xf32>, vector<8x8xf32> -> vector<8x8xf32>
    %cst_68 = arith.constant dense<0xFF800000> : vector<8xf32>
    %122 = vector.multi_reduction <maximumf>, %121, %cst_68 [1] : vector<8x8xf32> to vector<8xf32>
    %123 = vector.shape_cast %122 : vector<8xf32> to vector<8x1xf32>
    %124 = vector.broadcast %123 : vector<8x1xf32> to vector<8x8xf32>
    %125 = arith.subf %121, %124 : vector<8x8xf32>
    %126 = math.exp %125 : vector<8x8xf32>
    %cst_69 = arith.constant dense<0.000000e+00> : vector<8xf32>
    %127 = vector.multi_reduction <add>, %126, %cst_69 [1] : vector<8x8xf32> to vector<8xf32>
    %128 = vector.shape_cast %127 : vector<8xf32> to vector<8x1xf32>
    %129 = tpu.reciprocal %128 : vector<8x1xf32> -> vector<8x1xf32>
    %130 = vector.broadcast %129 : vector<8x1xf32> to vector<8x8xf32>
    %131 = arith.mulf %126, %130 : vector<8x8xf32>
    %c0_70 = arith.constant 0 : index
    %132 = arith.index_cast %c3_i32 : i32 to index
    %c0_71 = arith.constant 0 : index
    %c0_72 = arith.constant 0 : index
    %133 = vector.load %arg14[%c0_70, %132, %c0_71, %c0_72] : memref<1x4x8x8xf32, #tpu.memory_space<vmem>>, vector<1x1x8x8xf32>
    %134 = vector.shape_cast %133 : vector<1x1x8x8xf32> to vector<8x8xf32>
    %135 = vector.shape_cast %131 : vector<8x8xf32> to vector<1x1x8x8xf32>
    tpu.vector_store %arg14[%c0_70, %132, %c0_71, %c0_72], %135 {strides = array<i32>} : memref<1x4x8x8xf32, #tpu.memory_space<vmem>>, vector<1x1x8x8xf32>,
    %136 = arith.index_cast %c3_i32 : i32 to index
    %c0_73 = arith.constant 0 : index
    %c0_74 = arith.constant 0 : index
    %137 = vector.load %arg16[%136, %c0_73, %c0_74] : memref<4x8x8xf32, #tpu.memory_space<vmem>>, vector<1x8x8xf32>
    %138 = vector.shape_cast %137 : vector<1x8x8xf32> to vector<8x8xf32>
    %cst_75 = arith.constant dense<0.000000e+00> : vector<8x8xf32>
    %139 = tpu.matmul %131, %138, %cst_75 {dimension_numbers = #tpu.dot_dimension_numbers<[1], [0], [0], [1], [0, 0, 1, 1], [], []>} : vector<8x8xf32>, vector<8x8xf32>, vector<8x8xf32> -> vector<8x8xf32>
    %140 = arith.index_cast %c3_i32 : i32 to index
    %c0_76 = arith.constant 0 : index
    %c0_77 = arith.constant 0 : index
    %141 = vector.load %arg18[%140, %c0_76, %c0_77] : memref<4x8x8xf32, #tpu.memory_space<vmem>>, vector<1x8x8xf32>
    %142 = vector.shape_cast %141 : vector<1x8x8xf32> to vector<8x8xf32>
    %143 = vector.shape_cast %139 : vector<8x8xf32> to vector<1x8x8xf32>
    tpu.vector_store %arg18[%140, %c0_76, %c0_77], %143 {strides = array<i32>} : memref<4x8x8xf32, #tpu.memory_space<vmem>>, vector<1x8x8xf32>,
    %c4_i32 = arith.constant 4 : i32
    %c0_78 = arith.constant 0 : index
    %c0_79 = arith.constant 0 : index
    %c0_80 = arith.constant 0 : index
    %144 = vector.load %arg18[%c0_78, %c0_79, %c0_80] : memref<4x8x8xf32, #tpu.memory_space<vmem>>, vector<1x8x8xf32>
    %145 = vector.shape_cast %144 : vector<1x8x8xf32> to vector<8x8xf32>
    %c1_81 = arith.constant 1 : index
    %c0_82 = arith.constant 0 : index
    %c0_83 = arith.constant 0 : index
    %146 = vector.load %arg18[%c1_81, %c0_82, %c0_83] : memref<4x8x8xf32, #tpu.memory_space<vmem>>, vector<1x8x8xf32>
    %147 = vector.shape_cast %146 : vector<1x8x8xf32> to vector<8x8xf32>
    %c2_84 = arith.constant 2 : index
    %c0_85 = arith.constant 0 : index
    %c0_86 = arith.constant 0 : index
    %148 = vector.load %arg18[%c2_84, %c0_85, %c0_86] : memref<4x8x8xf32, #tpu.memory_space<vmem>>, vector<1x8x8xf32>
    %149 = vector.shape_cast %148 : vector<1x8x8xf32> to vector<8x8xf32>
    %c3_87 = arith.constant 3 : index
    %c0_88 = arith.constant 0 : index
    %c0_89 = arith.constant 0 : index
    %150 = vector.load %arg18[%c3_87, %c0_88, %c0_89] : memref<4x8x8xf32, #tpu.memory_space<vmem>>, vector<1x8x8xf32>
    %151 = vector.shape_cast %150 : vector<1x8x8xf32> to vector<8x8xf32>
    %152 = tpu.concatenate %145, %147, %149, %151 in 1 : vector<8x8xf32>, vector<8x8xf32>, vector<8x8xf32>, vector<8x8xf32> -> vector<8x32xf32>
    %c0_90 = arith.constant 0 : index
    %c0_91 = arith.constant 0 : index
    %153 = vector.load %arg11[%c0_90, %c0_91] : memref<32x32xf32, #tpu.memory_space<vmem>>, vector<32x32xf32>
    %cst_92 = arith.constant dense<0.000000e+00> : vector<8x32xf32>
    %154 = tpu.matmul %152, %153, %cst_92 {dimension_numbers = #tpu.dot_dimension_numbers<[1], [0], [0], [1], [0, 0, 1, 1], [], []>} : vector<8x32xf32>, vector<32x32xf32>, vector<8x32xf32> -> vector<8x32xf32>
    %c0_93 = arith.constant 0 : index
    %c0_94 = arith.constant 0 : index
    %155 = vector.load %arg12[%c0_93, %c0_94] : memref<1x32xf32, #tpu.memory_space<vmem>>, vector<1x32xf32>
    %156 = vector.broadcast %155 : vector<1x32xf32> to vector<8x32xf32>
    %157 = arith.addf %154, %156 : vector<8x32xf32>
    %c0_95 = arith.constant 0 : index
    %c0_96 = arith.constant 0 : index
    %c0_97 = arith.constant 0 : index
    %158 = vector.load %arg13[%c0_95, %c0_96, %c0_97] : memref<1x8x32xf32, #tpu.memory_space<vmem>>, vector<1x8x32xf32>
    %159 = vector.shape_cast %158 : vector<1x8x32xf32> to vector<8x32xf32>
    %160 = vector.shape_cast %157 : vector<8x32xf32> to vector<1x8x32xf32>
    tpu.vector_store %arg13[%c0_95, %c0_96, %c0_97], %160 {strides = array<i32>} : memref<1x8x32xf32, #tpu.memory_space<vmem>>, vector<1x8x32xf32>,
    return
  }
  func.func @transform_0(%arg0: i32, %arg1: i32) -> (i32, i32, i32) {
    %c0_i32 = arith.constant 0 : i32
    %c0_i32_0 = arith.constant 0 : i32
    return %arg0, %arg1, %c0_i32 : i32, i32, i32
  }
  func.func @transform_1(%arg0: i32, %arg1: i32) -> (i32, i32, i32) {
    %c0_i32 = arith.constant 0 : i32
    %c0_i32_0 = arith.constant 0 : i32
    %c0_i32_1 = arith.constant 0 : i32
    return %arg0, %c0_i32, %c0_i32_0 : i32, i32, i32
  }
  func.func @transform_2(%arg0: i32, %arg1: i32) -> (i32, i32, i32) {
    %c0_i32 = arith.constant 0 : i32
    %c0_i32_0 = arith.constant 0 : i32
    %c0_i32_1 = arith.constant 0 : i32
    return %arg0, %c0_i32, %c0_i32_0 : i32, i32, i32
  }
  func.func @transform_3(%arg0: i32, %arg1: i32) -> (i32, i32) {
    %c0_i32 = arith.constant 0 : i32
    %c0_i32_0 = arith.constant 0 : i32
    %c0_i32_1 = arith.constant 0 : i32
    return %c0_i32, %c0_i32_0 : i32, i32
  }
  func.func @transform_4(%arg0: i32, %arg1: i32) -> (i32, i32) {
    %c0_i32 = arith.constant 0 : i32
    %c0_i32_0 = arith.constant 0 : i32
    %c0_i32_1 = arith.constant 0 : i32
    return %c0_i32, %c0_i32_0 : i32, i32
  }
  func.func @transform_5(%arg0: i32, %arg1: i32) -> (i32, i32) {
    %c0_i32 = arith.constant 0 : i32
    %c0_i32_0 = arith.constant 0 : i32
    %c0_i32_1 = arith.constant 0 : i32
    return %c0_i32, %c0_i32_0 : i32, i32
  }
  func.func @transform_6(%arg0: i32, %arg1: i32) -> (i32, i32) {
    %c0_i32 = arith.constant 0 : i32
    %c0_i32_0 = arith.constant 0 : i32
    %c0_i32_1 = arith.constant 0 : i32
    return %c0_i32, %c0_i32_0 : i32, i32
  }
  func.func @transform_7(%arg0: i32, %arg1: i32) -> (i32, i32) {
    %c0_i32 = arith.constant 0 : i32
    %c0_i32_0 = arith.constant 0 : i32
    %c0_i32_1 = arith.constant 0 : i32
    return %c0_i32, %c0_i32_0 : i32, i32
  }
  func.func @transform_8(%arg0: i32, %arg1: i32) -> (i32, i32) {
    %c0_i32 = arith.constant 0 : i32
    %c0_i32_0 = arith.constant 0 : i32
    %c0_i32_1 = arith.constant 0 : i32
    return %c0_i32, %c0_i32_0 : i32, i32
  }
  func.func @transform_9(%arg0: i32, %arg1: i32) -> (i32, i32) {
    %c0_i32 = arith.constant 0 : i32
    %c0_i32_0 = arith.constant 0 : i32
    %c0_i32_1 = arith.constant 0 : i32
    return %c0_i32, %c0_i32_0 : i32, i32
  }
  func.func @transform_10(%arg0: i32, %arg1: i32) -> (i32, i32) {
    %c0_i32 = arith.constant 0 : i32
    %c0_i32_0 = arith.constant 0 : i32
    %c0_i32_1 = arith.constant 0 : i32
    return %c0_i32, %c0_i32_0 : i32, i32
  }
  func.func @transform_11(%arg0: i32, %arg1: i32) -> (i32, i32, i32) {
    %c0_i32 = arith.constant 0 : i32
    %c0_i32_0 = arith.constant 0 : i32
    return %arg0, %arg1, %c0_i32 : i32, i32, i32
  }
  func.func @transform_12(%arg0: i32, %arg1: i32) -> (i32, i32, i32, i32) {
    %c0_i32 = arith.constant 0 : i32
    %c0_i32_0 = arith.constant 0 : i32
    %c0_i32_1 = arith.constant 0 : i32
    return %arg0, %c0_i32, %arg1, %c0_i32_0 : i32, i32, i32, i32
  }
}

module attributes {stable_mosaic.version = 11 : i64} {
  func.func @_mha_kernel(%arg0: i32, %arg1: i32, %arg2: memref<1x8x32xf32, #tpu.memory_space<vmem>>, %arg3: memref<1x8x32xf32, #tpu.memory_space<vmem>>, %arg4: memref<1x8x32xf32, #tpu.memory_space<vmem>>, %arg5: memref<32x32xf32, #tpu.memory_space<vmem>>, %arg6: memref<1x32xf32, #tpu.memory_space<vmem>>, %arg7: memref<32x32xf32, #tpu.memory_space<vmem>>, %arg8: memref<1x32xf32, #tpu.memory_space<vmem>>, %arg9: memref<32x32xf32, #tpu.memory_space<vmem>>, %arg10: memref<1x32xf32, #tpu.memory_space<vmem>>, %arg11: memref<32x32xf32, #tpu.memory_space<vmem>>, %arg12: memref<1x32xf32, #tpu.memory_space<vmem>>, %arg13: memref<1x8x32xf32, #tpu.memory_space<vmem>>, %arg14: memref<1x4x8x8xf32, #tpu.memory_space<vmem>>, %arg15: memref<4x8x8xf32, #tpu.memory_space<vmem>>, %arg16: memref<4x8x8xf32, #tpu.memory_space<vmem>>, %arg17: memref<4x8x8xf32, #tpu.memory_space<vmem>>, %arg18: memref<4x8x8xf32, #tpu.memory_space<vmem>>) attributes {dimension_semantics = [#tpu.dimension_semantics<parallel>, #tpu.dimension_semantics<arbitrary>], iteration_bounds = array<i64: 2, 1>, scalar_prefetch = 0 : i64, scratch_operands = 4 : i64, tpu.core_type = #tpu.core_type<tc>, window_params = [{transform_indices = @transform_0, window_bounds = array<i64: 1, 8, 32>}, {transform_indices = @transform_1, window_bounds = array<i64: 1, 8, 32>}, {transform_indices = @transform_2, window_bounds = array<i64: 1, 8, 32>}, {pipeline_mode = #tpu.pipeline_mode<synchronous>, transform_indices = @transform_3, window_bounds = array<i64: 32, 32>}, {pipeline_mode = #tpu.pipeline_mode<synchronous>, transform_indices = @transform_4, window_bounds = array<i64: 1, 32>}, {pipeline_mode = #tpu.pipeline_mode<synchronous>, transform_indices = @transform_5, window_bounds = array<i64: 32, 32>}, {pipeline_mode = #tpu.pipeline_mode<synchronous>, transform_indices = @transform_6, window_bounds = array<i64: 1, 32>}, {pipeline_mode = #tpu.pipeline_mode<synchronous>, transform_indices = @transform_7, window_bounds = array<i64: 32, 32>}, {pipeline_mode = #tpu.pipeline_mode<synchronous>, transform_indices = @transform_8, window_bounds = array<i64: 1, 32>}, {pipeline_mode = #tpu.pipeline_mode<synchronous>, transform_indices = @transform_9, window_bounds = array<i64: 32, 32>}, {pipeline_mode = #tpu.pipeline_mode<synchronous>, transform_indices = @transform_10, window_bounds = array<i64: 1, 32>}, {transform_indices = @transform_11, window_bounds = array<i64: 1, 8, 32>}, {transform_indices = @transform_12, window_bounds = array<i64: 1, 4, 8, 8>}]} {
    %c0_i32 = arith.constant 0 : i32
    %0 = arith.cmpi eq, %arg1, %c0_i32 : i32
    %1 = arith.extui %0 : i1 to i32
    %c0_i32_0 = arith.constant 0 : i32
    %2 = arith.cmpi ne, %1, %c0_i32_0 : i32
    scf.if %2 {
      %c0_117 = arith.constant 0 : index
      %c0_118 = arith.constant 0 : index
      %c0_119 = arith.constant 0 : index
      %141 = vector.load %arg3[%c0_117, %c0_118, %c0_119] : memref<1x8x32xf32, #tpu.memory_space<vmem>>, vector<1x8x32xf32>
      %142 = vector.shape_cast %141 : vector<1x8x32xf32> to vector<8x32xf32>
      %c0_120 = arith.constant 0 : index
      %c0_121 = arith.constant 0 : index
      %143 = vector.load %arg7[%c0_120, %c0_121] : memref<32x32xf32, #tpu.memory_space<vmem>>, vector<32x32xf32>
      %cst_122 = arith.constant dense<0.000000e+00> : vector<8x32xf32>
      %144 = tpu.matmul %142, %143, %cst_122 {dimension_numbers = #tpu.dot_dimension_numbers<[1], [0], [0], [1], [0, 0, 1, 1], [], []>} : vector<8x32xf32>, vector<32x32xf32>, vector<8x32xf32> -> vector<8x32xf32>
      %c0_123 = arith.constant 0 : index
      %c0_124 = arith.constant 0 : index
      %145 = vector.load %arg8[%c0_123, %c0_124] : memref<1x32xf32, #tpu.memory_space<vmem>>, vector<1x32xf32>
      %146 = vector.broadcast %145 : vector<1x32xf32> to vector<8x32xf32>
      %147 = arith.addf %144, %146 : vector<8x32xf32>
      %c0_125 = arith.constant 0 : index
      %c0_126 = arith.constant 0 : index
      %c0_127 = arith.constant 0 : index
      %148 = vector.load %arg4[%c0_125, %c0_126, %c0_127] : memref<1x8x32xf32, #tpu.memory_space<vmem>>, vector<1x8x32xf32>
      %149 = vector.shape_cast %148 : vector<1x8x32xf32> to vector<8x32xf32>
      %c0_128 = arith.constant 0 : index
      %c0_129 = arith.constant 0 : index
      %150 = vector.load %arg9[%c0_128, %c0_129] : memref<32x32xf32, #tpu.memory_space<vmem>>, vector<32x32xf32>
      %cst_130 = arith.constant dense<0.000000e+00> : vector<8x32xf32>
      %151 = tpu.matmul %149, %150, %cst_130 {dimension_numbers = #tpu.dot_dimension_numbers<[1], [0], [0], [1], [0, 0, 1, 1], [], []>} : vector<8x32xf32>, vector<32x32xf32>, vector<8x32xf32> -> vector<8x32xf32>
      %c0_131 = arith.constant 0 : index
      %c0_132 = arith.constant 0 : index
      %152 = vector.load %arg10[%c0_131, %c0_132] : memref<1x32xf32, #tpu.memory_space<vmem>>, vector<1x32xf32>
      %153 = vector.broadcast %152 : vector<1x32xf32> to vector<8x32xf32>
      %154 = arith.addf %151, %153 : vector<8x32xf32>
      %155 = tpu.transpose %147, [1, 0] : vector<8x32xf32> -> vector<32x8xf32>
      %156 = vector.extract_strided_slice %155 {offsets = [0, 0], sizes = [8, 8], strides = [1, 1]} : vector<32x8xf32> to vector<8x8xf32>
      %c0_133 = arith.constant 0 : index
      %c0_134 = arith.constant 0 : index
      %c0_135 = arith.constant 0 : index
      %157 = vector.load %arg15[%c0_133, %c0_134, %c0_135] : memref<4x8x8xf32, #tpu.memory_space<vmem>>, vector<1x8x8xf32>
      %158 = vector.shape_cast %157 : vector<1x8x8xf32> to vector<8x8xf32>
      %159 = vector.shape_cast %156 : vector<8x8xf32> to vector<1x8x8xf32>
      tpu.vector_store %arg15[%c0_133, %c0_134, %c0_135], %159 {strides = array<i32>} : memref<4x8x8xf32, #tpu.memory_space<vmem>>, vector<1x8x8xf32>,
      %160 = vector.extract_strided_slice %154 {offsets = [0, 0], sizes = [8, 8], strides = [1, 1]} : vector<8x32xf32> to vector<8x8xf32>
      %c0_136 = arith.constant 0 : index
      %c0_137 = arith.constant 0 : index
      %c0_138 = arith.constant 0 : index
      %161 = vector.load %arg16[%c0_136, %c0_137, %c0_138] : memref<4x8x8xf32, #tpu.memory_space<vmem>>, vector<1x8x8xf32>
      %162 = vector.shape_cast %161 : vector<1x8x8xf32> to vector<8x8xf32>
      %163 = vector.shape_cast %160 : vector<8x8xf32> to vector<1x8x8xf32>
      tpu.vector_store %arg16[%c0_136, %c0_137, %c0_138], %163 {strides = array<i32>} : memref<4x8x8xf32, #tpu.memory_space<vmem>>, vector<1x8x8xf32>,
      %164 = vector.extract_strided_slice %155 {offsets = [8, 0], sizes = [8, 8], strides = [1, 1]} : vector<32x8xf32> to vector<8x8xf32>
      %c1_139 = arith.constant 1 : index
      %c0_140 = arith.constant 0 : index
      %c0_141 = arith.constant 0 : index
      %165 = vector.load %arg15[%c1_139, %c0_140, %c0_141] : memref<4x8x8xf32, #tpu.memory_space<vmem>>, vector<1x8x8xf32>
      %166 = vector.shape_cast %165 : vector<1x8x8xf32> to vector<8x8xf32>
      %167 = vector.shape_cast %164 : vector<8x8xf32> to vector<1x8x8xf32>
      tpu.vector_store %arg15[%c1_139, %c0_140, %c0_141], %167 {strides = array<i32>} : memref<4x8x8xf32, #tpu.memory_space<vmem>>, vector<1x8x8xf32>,
      %168 = vector.extract_strided_slice %154 {offsets = [0, 8], sizes = [8, 8], strides = [1, 1]} : vector<8x32xf32> to vector<8x8xf32>
      %c1_142 = arith.constant 1 : index
      %c0_143 = arith.constant 0 : index
      %c0_144 = arith.constant 0 : index
      %169 = vector.load %arg16[%c1_142, %c0_143, %c0_144] : memref<4x8x8xf32, #tpu.memory_space<vmem>>, vector<1x8x8xf32>
      %170 = vector.shape_cast %169 : vector<1x8x8xf32> to vector<8x8xf32>
      %171 = vector.shape_cast %168 : vector<8x8xf32> to vector<1x8x8xf32>
      tpu.vector_store %arg16[%c1_142, %c0_143, %c0_144], %171 {strides = array<i32>} : memref<4x8x8xf32, #tpu.memory_space<vmem>>, vector<1x8x8xf32>,
      %172 = vector.extract_strided_slice %155 {offsets = [16, 0], sizes = [8, 8], strides = [1, 1]} : vector<32x8xf32> to vector<8x8xf32>
      %c2_145 = arith.constant 2 : index
      %c0_146 = arith.constant 0 : index
      %c0_147 = arith.constant 0 : index
      %173 = vector.load %arg15[%c2_145, %c0_146, %c0_147] : memref<4x8x8xf32, #tpu.memory_space<vmem>>, vector<1x8x8xf32>
      %174 = vector.shape_cast %173 : vector<1x8x8xf32> to vector<8x8xf32>
      %175 = vector.shape_cast %172 : vector<8x8xf32> to vector<1x8x8xf32>
      tpu.vector_store %arg15[%c2_145, %c0_146, %c0_147], %175 {strides = array<i32>} : memref<4x8x8xf32, #tpu.memory_space<vmem>>, vector<1x8x8xf32>,
      %176 = vector.extract_strided_slice %154 {offsets = [0, 16], sizes = [8, 8], strides = [1, 1]} : vector<8x32xf32> to vector<8x8xf32>
      %c2_148 = arith.constant 2 : index
      %c0_149 = arith.constant 0 : index
      %c0_150 = arith.constant 0 : index
      %177 = vector.load %arg16[%c2_148, %c0_149, %c0_150] : memref<4x8x8xf32, #tpu.memory_space<vmem>>, vector<1x8x8xf32>
      %178 = vector.shape_cast %177 : vector<1x8x8xf32> to vector<8x8xf32>
      %179 = vector.shape_cast %176 : vector<8x8xf32> to vector<1x8x8xf32>
      tpu.vector_store %arg16[%c2_148, %c0_149, %c0_150], %179 {strides = array<i32>} : memref<4x8x8xf32, #tpu.memory_space<vmem>>, vector<1x8x8xf32>,
      %180 = vector.extract_strided_slice %155 {offsets = [24, 0], sizes = [8, 8], strides = [1, 1]} : vector<32x8xf32> to vector<8x8xf32>
      %c3_151 = arith.constant 3 : index
      %c0_152 = arith.constant 0 : index
      %c0_153 = arith.constant 0 : index
      %181 = vector.load %arg15[%c3_151, %c0_152, %c0_153] : memref<4x8x8xf32, #tpu.memory_space<vmem>>, vector<1x8x8xf32>
      %182 = vector.shape_cast %181 : vector<1x8x8xf32> to vector<8x8xf32>
      %183 = vector.shape_cast %180 : vector<8x8xf32> to vector<1x8x8xf32>
      tpu.vector_store %arg15[%c3_151, %c0_152, %c0_153], %183 {strides = array<i32>} : memref<4x8x8xf32, #tpu.memory_space<vmem>>, vector<1x8x8xf32>,
      %184 = vector.extract_strided_slice %154 {offsets = [0, 24], sizes = [8, 8], strides = [1, 1]} : vector<8x32xf32> to vector<8x8xf32>
      %c3_154 = arith.constant 3 : index
      %c0_155 = arith.constant 0 : index
      %c0_156 = arith.constant 0 : index
      %185 = vector.load %arg16[%c3_154, %c0_155, %c0_156] : memref<4x8x8xf32, #tpu.memory_space<vmem>>, vector<1x8x8xf32>
      %186 = vector.shape_cast %185 : vector<1x8x8xf32> to vector<8x8xf32>
      %187 = vector.shape_cast %184 : vector<8x8xf32> to vector<1x8x8xf32>
      tpu.vector_store %arg16[%c3_154, %c0_155, %c0_156], %187 {strides = array<i32>} : memref<4x8x8xf32, #tpu.memory_space<vmem>>, vector<1x8x8xf32>,
    } else {
    }
    %c0 = arith.constant 0 : index
    %c0_1 = arith.constant 0 : index
    %c0_2 = arith.constant 0 : index
    %3 = vector.load %arg2[%c0, %c0_1, %c0_2] : memref<1x8x32xf32, #tpu.memory_space<vmem>>, vector<1x8x32xf32>
    %4 = vector.shape_cast %3 : vector<1x8x32xf32> to vector<8x32xf32>
    %c0_3 = arith.constant 0 : index
    %c0_4 = arith.constant 0 : index
    %5 = vector.load %arg5[%c0_3, %c0_4] : memref<32x32xf32, #tpu.memory_space<vmem>>, vector<32x32xf32>
    %cst = arith.constant dense<0.000000e+00> : vector<8x32xf32>
    %6 = tpu.matmul %4, %5, %cst {dimension_numbers = #tpu.dot_dimension_numbers<[1], [0], [0], [1], [0, 0, 1, 1], [], []>} : vector<8x32xf32>, vector<32x32xf32>, vector<8x32xf32> -> vector<8x32xf32>
    %c0_5 = arith.constant 0 : index
    %c0_6 = arith.constant 0 : index
    %7 = vector.load %arg6[%c0_5, %c0_6] : memref<1x32xf32, #tpu.memory_space<vmem>>, vector<1x32xf32>
    %8 = vector.broadcast %7 : vector<1x32xf32> to vector<8x32xf32>
    %9 = arith.addf %6, %8 : vector<8x32xf32>
    %cst_7 = arith.constant 0.353553385 : f32
    %10 = vector.broadcast %cst_7 : f32 to vector<8x32xf32>
    %11 = arith.mulf %9, %10 : vector<8x32xf32>
    %12 = vector.extract_strided_slice %11 {offsets = [0, 0], sizes = [8, 8], strides = [1, 1]} : vector<8x32xf32> to vector<8x8xf32>
    %c0_8 = arith.constant 0 : index
    %c0_9 = arith.constant 0 : index
    %c0_10 = arith.constant 0 : index
    %13 = vector.load %arg17[%c0_8, %c0_9, %c0_10] : memref<4x8x8xf32, #tpu.memory_space<vmem>>, vector<1x8x8xf32>
    %14 = vector.shape_cast %13 : vector<1x8x8xf32> to vector<8x8xf32>
    %15 = vector.shape_cast %12 : vector<8x8xf32> to vector<1x8x8xf32>
    tpu.vector_store %arg17[%c0_8, %c0_9, %c0_10], %15 {strides = array<i32>} : memref<4x8x8xf32, #tpu.memory_space<vmem>>, vector<1x8x8xf32>,
    %16 = vector.extract_strided_slice %11 {offsets = [0, 8], sizes = [8, 8], strides = [1, 1]} : vector<8x32xf32> to vector<8x8xf32>
    %c1 = arith.constant 1 : index
    %c0_11 = arith.constant 0 : index
    %c0_12 = arith.constant 0 : index
    %17 = vector.load %arg17[%c1, %c0_11, %c0_12] : memref<4x8x8xf32, #tpu.memory_space<vmem>>, vector<1x8x8xf32>
    %18 = vector.shape_cast %17 : vector<1x8x8xf32> to vector<8x8xf32>
    %19 = vector.shape_cast %16 : vector<8x8xf32> to vector<1x8x8xf32>
    tpu.vector_store %arg17[%c1, %c0_11, %c0_12], %19 {strides = array<i32>} : memref<4x8x8xf32, #tpu.memory_space<vmem>>, vector<1x8x8xf32>,
    %20 = vector.extract_strided_slice %11 {offsets = [0, 16], sizes = [8, 8], strides = [1, 1]} : vector<8x32xf32> to vector<8x8xf32>
    %c2 = arith.constant 2 : index
    %c0_13 = arith.constant 0 : index
    %c0_14 = arith.constant 0 : index
    %21 = vector.load %arg17[%c2, %c0_13, %c0_14] : memref<4x8x8xf32, #tpu.memory_space<vmem>>, vector<1x8x8xf32>
    %22 = vector.shape_cast %21 : vector<1x8x8xf32> to vector<8x8xf32>
    %23 = vector.shape_cast %20 : vector<8x8xf32> to vector<1x8x8xf32>
    tpu.vector_store %arg17[%c2, %c0_13, %c0_14], %23 {strides = array<i32>} : memref<4x8x8xf32, #tpu.memory_space<vmem>>, vector<1x8x8xf32>,
    %24 = vector.extract_strided_slice %11 {offsets = [0, 24], sizes = [8, 8], strides = [1, 1]} : vector<8x32xf32> to vector<8x8xf32>
    %c3 = arith.constant 3 : index
    %c0_15 = arith.constant 0 : index
    %c0_16 = arith.constant 0 : index
    %25 = vector.load %arg17[%c3, %c0_15, %c0_16] : memref<4x8x8xf32, #tpu.memory_space<vmem>>, vector<1x8x8xf32>
    %26 = vector.shape_cast %25 : vector<1x8x8xf32> to vector<8x8xf32>
    %27 = vector.shape_cast %24 : vector<8x8xf32> to vector<1x8x8xf32>
    tpu.vector_store %arg17[%c3, %c0_15, %c0_16], %27 {strides = array<i32>} : memref<4x8x8xf32, #tpu.memory_space<vmem>>, vector<1x8x8xf32>,
    %c0_17 = arith.constant 0 : index
    %c0_18 = arith.constant 0 : index
    %c0_19 = arith.constant 0 : index
    %28 = vector.load %arg17[%c0_17, %c0_18, %c0_19] : memref<4x8x8xf32, #tpu.memory_space<vmem>>, vector<1x8x8xf32>
    %29 = vector.shape_cast %28 : vector<1x8x8xf32> to vector<8x8xf32>
    %c0_20 = arith.constant 0 : index
    %c0_21 = arith.constant 0 : index
    %c0_22 = arith.constant 0 : index
    %30 = vector.load %arg15[%c0_20, %c0_21, %c0_22] : memref<4x8x8xf32, #tpu.memory_space<vmem>>, vector<1x8x8xf32>
    %31 = vector.shape_cast %30 : vector<1x8x8xf32> to vector<8x8xf32>
    %cst_23 = arith.constant dense<0.000000e+00> : vector<8x8xf32>
    %32 = tpu.matmul %29, %31, %cst_23 {dimension_numbers = #tpu.dot_dimension_numbers<[1], [0], [0], [1], [0, 0, 1, 1], [], []>} : vector<8x8xf32>, vector<8x8xf32>, vector<8x8xf32> -> vector<8x8xf32>
    %cst_24 = arith.constant dense<0xFF800000> : vector<8xf32>
    %33 = vector.multi_reduction <maximumf>, %32, %cst_24 [1] : vector<8x8xf32> to vector<8xf32>
    %34 = vector.shape_cast %33 : vector<8xf32> to vector<8x1xf32>
    %35 = vector.broadcast %34 : vector<8x1xf32> to vector<8x8xf32>
    %36 = arith.subf %32, %35 : vector<8x8xf32>
    %37 = math.exp %36 : vector<8x8xf32>
    %cst_25 = arith.constant dense<0.000000e+00> : vector<8xf32>
    %38 = vector.multi_reduction <add>, %37, %cst_25 [1] : vector<8x8xf32> to vector<8xf32>
    %39 = vector.shape_cast %38 : vector<8xf32> to vector<8x1xf32>
    %40 = tpu.reciprocal %39 : vector<8x1xf32> -> vector<8x1xf32>
    %41 = vector.broadcast %40 : vector<8x1xf32> to vector<8x8xf32>
    %42 = arith.mulf %37, %41 : vector<8x8xf32>
    %c0_26 = arith.constant 0 : index
    %c0_27 = arith.constant 0 : index
    %c0_28 = arith.constant 0 : index
    %c0_29 = arith.constant 0 : index
    %43 = vector.load %arg14[%c0_26, %c0_27, %c0_28, %c0_29] : memref<1x4x8x8xf32, #tpu.memory_space<vmem>>, vector<1x1x8x8xf32>
    %44 = vector.shape_cast %43 : vector<1x1x8x8xf32> to vector<8x8xf32>
    %45 = vector.shape_cast %42 : vector<8x8xf32> to vector<1x1x8x8xf32>
    tpu.vector_store %arg14[%c0_26, %c0_27, %c0_28, %c0_29], %45 {strides = array<i32>} : memref<1x4x8x8xf32, #tpu.memory_space<vmem>>, vector<1x1x8x8xf32>,
    %c0_30 = arith.constant 0 : index
    %c0_31 = arith.constant 0 : index
    %c0_32 = arith.constant 0 : index
    %46 = vector.load %arg16[%c0_30, %c0_31, %c0_32] : memref<4x8x8xf32, #tpu.memory_space<vmem>>, vector<1x8x8xf32>
    %47 = vector.shape_cast %46 : vector<1x8x8xf32> to vector<8x8xf32>
    %cst_33 = arith.constant dense<0.000000e+00> : vector<8x8xf32>
    %48 = tpu.matmul %42, %47, %cst_33 {dimension_numbers = #tpu.dot_dimension_numbers<[1], [0], [0], [1], [0, 0, 1, 1], [], []>} : vector<8x8xf32>, vector<8x8xf32>, vector<8x8xf32> -> vector<8x8xf32>
    %c0_34 = arith.constant 0 : index
    %c0_35 = arith.constant 0 : index
    %c0_36 = arith.constant 0 : index
    %49 = vector.load %arg18[%c0_34, %c0_35, %c0_36] : memref<4x8x8xf32, #tpu.memory_space<vmem>>, vector<1x8x8xf32>
    %50 = vector.shape_cast %49 : vector<1x8x8xf32> to vector<8x8xf32>
    %51 = vector.shape_cast %48 : vector<8x8xf32> to vector<1x8x8xf32>
    tpu.vector_store %arg18[%c0_34, %c0_35, %c0_36], %51 {strides = array<i32>} : memref<4x8x8xf32, #tpu.memory_space<vmem>>, vector<1x8x8xf32>,
    %c1_37 = arith.constant 1 : index
    %c0_38 = arith.constant 0 : index
    %c0_39 = arith.constant 0 : index
    %52 = vector.load %arg17[%c1_37, %c0_38, %c0_39] : memref<4x8x8xf32, #tpu.memory_space<vmem>>, vector<1x8x8xf32>
    %53 = vector.shape_cast %52 : vector<1x8x8xf32> to vector<8x8xf32>
    %c1_40 = arith.constant 1 : index
    %c0_41 = arith.constant 0 : index
    %c0_42 = arith.constant 0 : index
    %54 = vector.load %arg15[%c1_40, %c0_41, %c0_42] : memref<4x8x8xf32, #tpu.memory_space<vmem>>, vector<1x8x8xf32>
    %55 = vector.shape_cast %54 : vector<1x8x8xf32> to vector<8x8xf32>
    %cst_43 = arith.constant dense<0.000000e+00> : vector<8x8xf32>
    %56 = tpu.matmul %53, %55, %cst_43 {dimension_numbers = #tpu.dot_dimension_numbers<[1], [0], [0], [1], [0, 0, 1, 1], [], []>} : vector<8x8xf32>, vector<8x8xf32>, vector<8x8xf32> -> vector<8x8xf32>
    %cst_44 = arith.constant dense<0xFF800000> : vector<8xf32>
    %57 = vector.multi_reduction <maximumf>, %56, %cst_44 [1] : vector<8x8xf32> to vector<8xf32>
    %58 = vector.shape_cast %57 : vector<8xf32> to vector<8x1xf32>
    %59 = vector.broadcast %58 : vector<8x1xf32> to vector<8x8xf32>
    %60 = arith.subf %56, %59 : vector<8x8xf32>
    %61 = math.exp %60 : vector<8x8xf32>
    %cst_45 = arith.constant dense<0.000000e+00> : vector<8xf32>
    %62 = vector.multi_reduction <add>, %61, %cst_45 [1] : vector<8x8xf32> to vector<8xf32>
    %63 = vector.shape_cast %62 : vector<8xf32> to vector<8x1xf32>
    %64 = tpu.reciprocal %63 : vector<8x1xf32> -> vector<8x1xf32>
    %65 = vector.broadcast %64 : vector<8x1xf32> to vector<8x8xf32>
    %66 = arith.mulf %61, %65 : vector<8x8xf32>
    %c0_46 = arith.constant 0 : index
    %c1_47 = arith.constant 1 : index
    %c0_48 = arith.constant 0 : index
    %c0_49 = arith.constant 0 : index
    %67 = vector.load %arg14[%c0_46, %c1_47, %c0_48, %c0_49] : memref<1x4x8x8xf32, #tpu.memory_space<vmem>>, vector<1x1x8x8xf32>
    %68 = vector.shape_cast %67 : vector<1x1x8x8xf32> to vector<8x8xf32>
    %69 = vector.shape_cast %66 : vector<8x8xf32> to vector<1x1x8x8xf32>
    tpu.vector_store %arg14[%c0_46, %c1_47, %c0_48, %c0_49], %69 {strides = array<i32>} : memref<1x4x8x8xf32, #tpu.memory_space<vmem>>, vector<1x1x8x8xf32>,
    %c1_50 = arith.constant 1 : index
    %c0_51 = arith.constant 0 : index
    %c0_52 = arith.constant 0 : index
    %70 = vector.load %arg16[%c1_50, %c0_51, %c0_52] : memref<4x8x8xf32, #tpu.memory_space<vmem>>, vector<1x8x8xf32>
    %71 = vector.shape_cast %70 : vector<1x8x8xf32> to vector<8x8xf32>
    %cst_53 = arith.constant dense<0.000000e+00> : vector<8x8xf32>
    %72 = tpu.matmul %66, %71, %cst_53 {dimension_numbers = #tpu.dot_dimension_numbers<[1], [0], [0], [1], [0, 0, 1, 1], [], []>} : vector<8x8xf32>, vector<8x8xf32>, vector<8x8xf32> -> vector<8x8xf32>
    %c1_54 = arith.constant 1 : index
    %c0_55 = arith.constant 0 : index
    %c0_56 = arith.constant 0 : index
    %73 = vector.load %arg18[%c1_54, %c0_55, %c0_56] : memref<4x8x8xf32, #tpu.memory_space<vmem>>, vector<1x8x8xf32>
    %74 = vector.shape_cast %73 : vector<1x8x8xf32> to vector<8x8xf32>
    %75 = vector.shape_cast %72 : vector<8x8xf32> to vector<1x8x8xf32>
    tpu.vector_store %arg18[%c1_54, %c0_55, %c0_56], %75 {strides = array<i32>} : memref<4x8x8xf32, #tpu.memory_space<vmem>>, vector<1x8x8xf32>,
    %c2_57 = arith.constant 2 : index
    %c0_58 = arith.constant 0 : index
    %c0_59 = arith.constant 0 : index
    %76 = vector.load %arg17[%c2_57, %c0_58, %c0_59] : memref<4x8x8xf32, #tpu.memory_space<vmem>>, vector<1x8x8xf32>
    %77 = vector.shape_cast %76 : vector<1x8x8xf32> to vector<8x8xf32>
    %c2_60 = arith.constant 2 : index
    %c0_61 = arith.constant 0 : index
    %c0_62 = arith.constant 0 : index
    %78 = vector.load %arg15[%c2_60, %c0_61, %c0_62] : memref<4x8x8xf32, #tpu.memory_space<vmem>>, vector<1x8x8xf32>
    %79 = vector.shape_cast %78 : vector<1x8x8xf32> to vector<8x8xf32>
    %cst_63 = arith.constant dense<0.000000e+00> : vector<8x8xf32>
    %80 = tpu.matmul %77, %79, %cst_63 {dimension_numbers = #tpu.dot_dimension_numbers<[1], [0], [0], [1], [0, 0, 1, 1], [], []>} : vector<8x8xf32>, vector<8x8xf32>, vector<8x8xf32> -> vector<8x8xf32>
    %cst_64 = arith.constant dense<0xFF800000> : vector<8xf32>
    %81 = vector.multi_reduction <maximumf>, %80, %cst_64 [1] : vector<8x8xf32> to vector<8xf32>
    %82 = vector.shape_cast %81 : vector<8xf32> to vector<8x1xf32>
    %83 = vector.broadcast %82 : vector<8x1xf32> to vector<8x8xf32>
    %84 = arith.subf %80, %83 : vector<8x8xf32>
    %85 = math.exp %84 : vector<8x8xf32>
    %cst_65 = arith.constant dense<0.000000e+00> : vector<8xf32>
    %86 = vector.multi_reduction <add>, %85, %cst_65 [1] : vector<8x8xf32> to vector<8xf32>
    %87 = vector.shape_cast %86 : vector<8xf32> to vector<8x1xf32>
    %88 = tpu.reciprocal %87 : vector<8x1xf32> -> vector<8x1xf32>
    %89 = vector.broadcast %88 : vector<8x1xf32> to vector<8x8xf32>
    %90 = arith.mulf %85, %89 : vector<8x8xf32>
    %c0_66 = arith.constant 0 : index
    %c2_67 = arith.constant 2 : index
    %c0_68 = arith.constant 0 : index
    %c0_69 = arith.constant 0 : index
    %91 = vector.load %arg14[%c0_66, %c2_67, %c0_68, %c0_69] : memref<1x4x8x8xf32, #tpu.memory_space<vmem>>, vector<1x1x8x8xf32>
    %92 = vector.shape_cast %91 : vector<1x1x8x8xf32> to vector<8x8xf32>
    %93 = vector.shape_cast %90 : vector<8x8xf32> to vector<1x1x8x8xf32>
    tpu.vector_store %arg14[%c0_66, %c2_67, %c0_68, %c0_69], %93 {strides = array<i32>} : memref<1x4x8x8xf32, #tpu.memory_space<vmem>>, vector<1x1x8x8xf32>,
    %c2_70 = arith.constant 2 : index
    %c0_71 = arith.constant 0 : index
    %c0_72 = arith.constant 0 : index
    %94 = vector.load %arg16[%c2_70, %c0_71, %c0_72] : memref<4x8x8xf32, #tpu.memory_space<vmem>>, vector<1x8x8xf32>
    %95 = vector.shape_cast %94 : vector<1x8x8xf32> to vector<8x8xf32>
    %cst_73 = arith.constant dense<0.000000e+00> : vector<8x8xf32>
    %96 = tpu.matmul %90, %95, %cst_73 {dimension_numbers = #tpu.dot_dimension_numbers<[1], [0], [0], [1], [0, 0, 1, 1], [], []>} : vector<8x8xf32>, vector<8x8xf32>, vector<8x8xf32> -> vector<8x8xf32>
    %c2_74 = arith.constant 2 : index
    %c0_75 = arith.constant 0 : index
    %c0_76 = arith.constant 0 : index
    %97 = vector.load %arg18[%c2_74, %c0_75, %c0_76] : memref<4x8x8xf32, #tpu.memory_space<vmem>>, vector<1x8x8xf32>
    %98 = vector.shape_cast %97 : vector<1x8x8xf32> to vector<8x8xf32>
    %99 = vector.shape_cast %96 : vector<8x8xf32> to vector<1x8x8xf32>
    tpu.vector_store %arg18[%c2_74, %c0_75, %c0_76], %99 {strides = array<i32>} : memref<4x8x8xf32, #tpu.memory_space<vmem>>, vector<1x8x8xf32>,
    %c3_77 = arith.constant 3 : index
    %c0_78 = arith.constant 0 : index
    %c0_79 = arith.constant 0 : index
    %100 = vector.load %arg17[%c3_77, %c0_78, %c0_79] : memref<4x8x8xf32, #tpu.memory_space<vmem>>, vector<1x8x8xf32>
    %101 = vector.shape_cast %100 : vector<1x8x8xf32> to vector<8x8xf32>
    %c3_80 = arith.constant 3 : index
    %c0_81 = arith.constant 0 : index
    %c0_82 = arith.constant 0 : index
    %102 = vector.load %arg15[%c3_80, %c0_81, %c0_82] : memref<4x8x8xf32, #tpu.memory_space<vmem>>, vector<1x8x8xf32>
    %103 = vector.shape_cast %102 : vector<1x8x8xf32> to vector<8x8xf32>
    %cst_83 = arith.constant dense<0.000000e+00> : vector<8x8xf32>
    %104 = tpu.matmul %101, %103, %cst_83 {dimension_numbers = #tpu.dot_dimension_numbers<[1], [0], [0], [1], [0, 0, 1, 1], [], []>} : vector<8x8xf32>, vector<8x8xf32>, vector<8x8xf32> -> vector<8x8xf32>
    %cst_84 = arith.constant dense<0xFF800000> : vector<8xf32>
    %105 = vector.multi_reduction <maximumf>, %104, %cst_84 [1] : vector<8x8xf32> to vector<8xf32>
    %106 = vector.shape_cast %105 : vector<8xf32> to vector<8x1xf32>
    %107 = vector.broadcast %106 : vector<8x1xf32> to vector<8x8xf32>
    %108 = arith.subf %104, %107 : vector<8x8xf32>
    %109 = math.exp %108 : vector<8x8xf32>
    %cst_85 = arith.constant dense<0.000000e+00> : vector<8xf32>
    %110 = vector.multi_reduction <add>, %109, %cst_85 [1] : vector<8x8xf32> to vector<8xf32>
    %111 = vector.shape_cast %110 : vector<8xf32> to vector<8x1xf32>
    %112 = tpu.reciprocal %111 : vector<8x1xf32> -> vector<8x1xf32>
    %113 = vector.broadcast %112 : vector<8x1xf32> to vector<8x8xf32>
    %114 = arith.mulf %109, %113 : vector<8x8xf32>
    %c0_86 = arith.constant 0 : index
    %c3_87 = arith.constant 3 : index
    %c0_88 = arith.constant 0 : index
    %c0_89 = arith.constant 0 : index
    %115 = vector.load %arg14[%c0_86, %c3_87, %c0_88, %c0_89] : memref<1x4x8x8xf32, #tpu.memory_space<vmem>>, vector<1x1x8x8xf32>
    %116 = vector.shape_cast %115 : vector<1x1x8x8xf32> to vector<8x8xf32>
    %117 = vector.shape_cast %114 : vector<8x8xf32> to vector<1x1x8x8xf32>
    tpu.vector_store %arg14[%c0_86, %c3_87, %c0_88, %c0_89], %117 {strides = array<i32>} : memref<1x4x8x8xf32, #tpu.memory_space<vmem>>, vector<1x1x8x8xf32>,
    %c3_90 = arith.constant 3 : index
    %c0_91 = arith.constant 0 : index
    %c0_92 = arith.constant 0 : index
    %118 = vector.load %arg16[%c3_90, %c0_91, %c0_92] : memref<4x8x8xf32, #tpu.memory_space<vmem>>, vector<1x8x8xf32>
    %119 = vector.shape_cast %118 : vector<1x8x8xf32> to vector<8x8xf32>
    %cst_93 = arith.constant dense<0.000000e+00> : vector<8x8xf32>
    %120 = tpu.matmul %114, %119, %cst_93 {dimension_numbers = #tpu.dot_dimension_numbers<[1], [0], [0], [1], [0, 0, 1, 1], [], []>} : vector<8x8xf32>, vector<8x8xf32>, vector<8x8xf32> -> vector<8x8xf32>
    %c3_94 = arith.constant 3 : index
    %c0_95 = arith.constant 0 : index
    %c0_96 = arith.constant 0 : index
    %121 = vector.load %arg18[%c3_94, %c0_95, %c0_96] : memref<4x8x8xf32, #tpu.memory_space<vmem>>, vector<1x8x8xf32>
    %122 = vector.shape_cast %121 : vector<1x8x8xf32> to vector<8x8xf32>
    %123 = vector.shape_cast %120 : vector<8x8xf32> to vector<1x8x8xf32>
    tpu.vector_store %arg18[%c3_94, %c0_95, %c0_96], %123 {strides = array<i32>} : memref<4x8x8xf32, #tpu.memory_space<vmem>>, vector<1x8x8xf32>,
    %c0_97 = arith.constant 0 : index
    %c0_98 = arith.constant 0 : index
    %c0_99 = arith.constant 0 : index
    %124 = vector.load %arg18[%c0_97, %c0_98, %c0_99] : memref<4x8x8xf32, #tpu.memory_space<vmem>>, vector<1x8x8xf32>
    %125 = vector.shape_cast %124 : vector<1x8x8xf32> to vector<8x8xf32>
    %c1_100 = arith.constant 1 : index
    %c0_101 = arith.constant 0 : index
    %c0_102 = arith.constant 0 : index
    %126 = vector.load %arg18[%c1_100, %c0_101, %c0_102] : memref<4x8x8xf32, #tpu.memory_space<vmem>>, vector<1x8x8xf32>
    %127 = vector.shape_cast %126 : vector<1x8x8xf32> to vector<8x8xf32>
    %c2_103 = arith.constant 2 : index
    %c0_104 = arith.constant 0 : index
    %c0_105 = arith.constant 0 : index
    %128 = vector.load %arg18[%c2_103, %c0_104, %c0_105] : memref<4x8x8xf32, #tpu.memory_space<vmem>>, vector<1x8x8xf32>
    %129 = vector.shape_cast %128 : vector<1x8x8xf32> to vector<8x8xf32>
    %c3_106 = arith.constant 3 : index
    %c0_107 = arith.constant 0 : index
    %c0_108 = arith.constant 0 : index
    %130 = vector.load %arg18[%c3_106, %c0_107, %c0_108] : memref<4x8x8xf32, #tpu.memory_space<vmem>>, vector<1x8x8xf32>
    %131 = vector.shape_cast %130 : vector<1x8x8xf32> to vector<8x8xf32>
    %132 = tpu.concatenate %125, %127, %129, %131 in 1 : vector<8x8xf32>, vector<8x8xf32>, vector<8x8xf32>, vector<8x8xf32> -> vector<8x32xf32>
    %c0_109 = arith.constant 0 : index
    %c0_110 = arith.constant 0 : index
    %133 = vector.load %arg11[%c0_109, %c0_110] : memref<32x32xf32, #tpu.memory_space<vmem>>, vector<32x32xf32>
    %cst_111 = arith.constant dense<0.000000e+00> : vector<8x32xf32>
    %134 = tpu.matmul %132, %133, %cst_111 {dimension_numbers = #tpu.dot_dimension_numbers<[1], [0], [0], [1], [0, 0, 1, 1], [], []>} : vector<8x32xf32>, vector<32x32xf32>, vector<8x32xf32> -> vector<8x32xf32>
    %c0_112 = arith.constant 0 : index
    %c0_113 = arith.constant 0 : index
    %135 = vector.load %arg12[%c0_112, %c0_113] : memref<1x32xf32, #tpu.memory_space<vmem>>, vector<1x32xf32>
    %136 = vector.broadcast %135 : vector<1x32xf32> to vector<8x32xf32>
    %137 = arith.addf %134, %136 : vector<8x32xf32>
    %c0_114 = arith.constant 0 : index
    %c0_115 = arith.constant 0 : index
    %c0_116 = arith.constant 0 : index
    %138 = vector.load %arg13[%c0_114, %c0_115, %c0_116] : memref<1x8x32xf32, #tpu.memory_space<vmem>>, vector<1x8x32xf32>
    %139 = vector.shape_cast %138 : vector<1x8x32xf32> to vector<8x32xf32>
    %140 = vector.shape_cast %137 : vector<8x32xf32> to vector<1x8x32xf32>
    tpu.vector_store %arg13[%c0_114, %c0_115, %c0_116], %140 {strides = array<i32>} : memref<1x8x32xf32, #tpu.memory_space<vmem>>, vector<1x8x32xf32>,
    return
  }
  func.func @transform_0(%arg0: i32, %arg1: i32) -> (i32, i32, i32) {
    %c0_i32 = arith.constant 0 : i32
    %c0_i32_0 = arith.constant 0 : i32
    return %arg0, %arg1, %c0_i32 : i32, i32, i32
  }
  func.func @transform_1(%arg0: i32, %arg1: i32) -> (i32, i32, i32) {
    %c0_i32 = arith.constant 0 : i32
    %c0_i32_0 = arith.constant 0 : i32
    %c0_i32_1 = arith.constant 0 : i32
    return %arg0, %c0_i32, %c0_i32_0 : i32, i32, i32
  }
  func.func @transform_2(%arg0: i32, %arg1: i32) -> (i32, i32, i32) {
    %c0_i32 = arith.constant 0 : i32
    %c0_i32_0 = arith.constant 0 : i32
    %c0_i32_1 = arith.constant 0 : i32
    return %arg0, %c0_i32, %c0_i32_0 : i32, i32, i32
  }
  func.func @transform_3(%arg0: i32, %arg1: i32) -> (i32, i32) {
    %c0_i32 = arith.constant 0 : i32
    %c0_i32_0 = arith.constant 0 : i32
    %c0_i32_1 = arith.constant 0 : i32
    return %c0_i32, %c0_i32_0 : i32, i32
  }
  func.func @transform_4(%arg0: i32, %arg1: i32) -> (i32, i32) {
    %c0_i32 = arith.constant 0 : i32
    %c0_i32_0 = arith.constant 0 : i32
    %c0_i32_1 = arith.constant 0 : i32
    return %c0_i32, %c0_i32_0 : i32, i32
  }
  func.func @transform_5(%arg0: i32, %arg1: i32) -> (i32, i32) {
    %c0_i32 = arith.constant 0 : i32
    %c0_i32_0 = arith.constant 0 : i32
    %c0_i32_1 = arith.constant 0 : i32
    return %c0_i32, %c0_i32_0 : i32, i32
  }
  func.func @transform_6(%arg0: i32, %arg1: i32) -> (i32, i32) {
    %c0_i32 = arith.constant 0 : i32
    %c0_i32_0 = arith.constant 0 : i32
    %c0_i32_1 = arith.constant 0 : i32
    return %c0_i32, %c0_i32_0 : i32, i32
  }
  func.func @transform_7(%arg0: i32, %arg1: i32) -> (i32, i32) {
    %c0_i32 = arith.constant 0 : i32
    %c0_i32_0 = arith.constant 0 : i32
    %c0_i32_1 = arith.constant 0 : i32
    return %c0_i32, %c0_i32_0 : i32, i32
  }
  func.func @transform_8(%arg0: i32, %arg1: i32) -> (i32, i32) {
    %c0_i32 = arith.constant 0 : i32
    %c0_i32_0 = arith.constant 0 : i32
    %c0_i32_1 = arith.constant 0 : i32
    return %c0_i32, %c0_i32_0 : i32, i32
  }
  func.func @transform_9(%arg0: i32, %arg1: i32) -> (i32, i32) {
    %c0_i32 = arith.constant 0 : i32
    %c0_i32_0 = arith.constant 0 : i32
    %c0_i32_1 = arith.constant 0 : i32
    return %c0_i32, %c0_i32_0 : i32, i32
  }
  func.func @transform_10(%arg0: i32, %arg1: i32) -> (i32, i32) {
    %c0_i32 = arith.constant 0 : i32
    %c0_i32_0 = arith.constant 0 : i32
    %c0_i32_1 = arith.constant 0 : i32
    return %c0_i32, %c0_i32_0 : i32, i32
  }
  func.func @transform_11(%arg0: i32, %arg1: i32) -> (i32, i32, i32) {
    %c0_i32 = arith.constant 0 : i32
    %c0_i32_0 = arith.constant 0 : i32
    return %arg0, %arg1, %c0_i32 : i32, i32, i32
  }
  func.func @transform_12(%arg0: i32, %arg1: i32) -> (i32, i32, i32, i32) {
    %c0_i32 = arith.constant 0 : i32
    %c0_i32_0 = arith.constant 0 : i32
    %c0_i32_1 = arith.constant 0 : i32
    return %arg0, %c0_i32, %arg1, %c0_i32_0 : i32, i32, i32, i32
  }
}

</mosaic_0001>

<bundles_post_ra>
// kernel: tpu_custom_call.1
= control target key start
LH: loop header
LB: loop body
LE: loop exit
PB: predicated region body
PF: predicated region fallthrough
CT: control target
= control target key end

     0   :  { %s3218_s0 = inlined_call_operand.hbm [shape: f32[2,8,32], index: 0, kind: input, shape index: {}]   ;;  %s3219_s1 = inlined_call_operand.hbm [shape: f32[2,8,32], index: 1, kind: input, shape index: {}]   ;;  %s3220_s2 = inlined_call_operand.hbm [shape: f32[2,8,32], index: 2, kind: input, shape index: {}]   ;;  %s3221_s3 = inlined_call_operand.hbm [shape: f32[32,32], index: 3, kind: input, shape index: {}]   ;;  %s3222_s4 = inlined_call_operand.vmem [shape: f32[1,32], index: 4, kind: input, shape index: {}]   ;;  %s3223_s5 = inlined_call_operand.hbm [shape: f32[32,32], index: 5, kind: input, shape index: {}]   ;;  %s3224_s6 = inlined_call_operand.vmem [shape: f32[1,32], index: 6, kind: input, shape index: {}]   ;;  %s3225_s7 = inlined_call_operand.hbm [shape: f32[32,32], index: 7, kind: input, shape index: {}]   ;;  %s3226_s8 = inlined_call_operand.hbm [shape: f32[1,32], index: 8, kind: input, shape index: {}]   ;;  %s3227_s9 = inlined_call_operand.vmem [shape: f32[32,32], index: 9, kind: input, shape index: {}]   ;;  %s3228_s10 = inlined_call_operand.vmem [shape: f32[1,32], index: 10, kind: input, shape index: {}]   ;;  %s3229_s11 = inlined_call_operand.hbm [shape: f32[2,8,32], index: 11, kind: output, shape index: {0}]   ;;  %s3230_s12 = inlined_call_operand.hbm [shape: f32[2,4,8,8], index: 12, kind: output, shape index: {1}]  }
   0x1   :  { %3258 = sst [smem:[#allocation35_spill]] %s3219_s1 }
   0x2   :  { %3259 = sst [smem:[#allocation36_spill]] %s3221_s3 }
   0x3   :  { %3260 = sst [smem:[#allocation37_spill]] %s3225_s7 }
   0x4   :  { %3261 = sst [smem:[#allocation38_spill]] %s3227_s9 }
   0x5   :  { %3262 = sst [smem:[#allocation39_spill]] %s3228_s10 }
   0x6   :  { %3263 = sst [smem:[#allocation40_spill]] %s3229_s11 }
   0x7   :  { %3264 = sst [smem:[#allocation41_spill]] %s3230_s12 }
   0x8   :  { %18 = vsyncpa [#allocation7], 0 }
   0x9   :  { %20 = vsyncpa [#allocation7 + $0x1], 0 }
   0xa   :  { %21 = vsyncpa [#allocation10], 0 }
   0xb   :  { %23 = vsyncpa [#allocation10 + $0x1], 0 }
   0xc   :  { %24 = vsyncpa [#allocation13], 0 }
   0xd   :  { %25 = vsyncpa [#allocation16], 0 }
   0xe   :  { %26 = vsyncpa [#allocation8], 0 }
   0xf   :  { %28 = vsyncpa [#allocation8 + $0x1], 0 }
  0x10   :  { %29 = vsyncpa [#allocation20], 0 }
  0x11   :  { %31 = vsyncpa [#allocation20 + $0x1], 0  ;;  %s2678_s21 = smov 0   ;;  %s2680_s22 = smov 0  }
  0x12   :  { %s2682_s23 = smov 0   ;;  %s2684_s24 = smov 0  }
  0x13   :  { %s2686_s25 = smov 0   ;;  %s2688_s26 = smov 0  }
  0x14 LB: > { %3265 = sst [smem:[#allocation27_spill]] %s2570_s21  ;;  %s2709_s27 = sadd.s32 4294967295, %s2590_s26   ;;  %s2590_s26 = sphi %s2688_s26, %s37_s26   ;;  %s2586_s25 = sphi %s2686_s25, %s3314_s25   ;;  %s2582_s24 = sphi %s2684_s24, %s3313_s24   ;;  %s2578_s23 = sphi %s2682_s23, %s3317_s23   ;;  %s2574_s22 = sphi %s2680_s22, %s3316_s22   ;;  %s2570_s21 = sphi %s2678_s21, %s3315_s21  }
  0x15   : > { %3266 = sst [smem:[#allocation28_spill]] %s2582_s24  ;;  %p1923_p0 = scmp.ge.s32.totalorder %s2590_s26, 1 }
  0x16   : > { %3267 = sst [smem:[#allocation29_spill]] %s2586_s25  ;;  %p3242_p1 = scmp.eq.s32.totalorder %s2709_s27, 0 }
  0x17   : > { %3268 = sst [smem:[#allocation30_spill]] %s2590_s26  ;;  %p358_p2 = scmp.lt.s32.totalorder %s2590_s26, 3 }
  0x18   : > { %s2592_s29 = smov [#allocation12]   ;;  %s2593_s14 = smov [#allocation15]  }
  0x19   : > { %p2714_p3 = pnand %p1923_p0, %p358_p2  ;;  %s370_s30 = sshll.u32 %s2592_s29, 4  ;;  %s2718_s30 = int_to_ptr.vmem [resolvable:$true] %s370_s30 }
  0x1a   : > { %s402_s15 = sshll.u32 %s2593_s14, 4  ;;  %s3271_s3 = sld [smem:[#allocation36_spill]]  ;;  %s2729_s15 = int_to_ptr.vmem [resolvable:$true] %s402_s15 }
  0x1b   : > { %s3269_s28 = scalar_select %p2714_p3, 1, 0 }
  0x1c   : > { %p2142_p4 = pneg %p2714_p3 }
  0x1e   : > { %p2725_p6 = pnand %p2142_p4, %p3242_p1 }
  0x20   : > { %s3270_s13 = scalar_select %p2725_p6, 1, 0 }
  0x21   : > { %s2262_s18 = scalar_lea.hbm %s3271_s3, 512  ;;  %p2739_p8 = pneg %p2725_p6 }
  0x22   : > { %p2263_p7 = scmp.ne.s32.totalorder %s3271_s3, %s2262_s18  ;;  %p2269_p11 = scmp.lt.u32.totalorder %s2262_s18, %s3271_s3 }
  0x23   : > { %s3272_s29 = scalar_select %p2739_p8, 1, 0 }
  0x24   : > { %p2265_p9 = pnand %p2739_p8, %p2263_p7 }
  0x26   : > { %p2266_p10 = pneg %p2265_p9 }
  0x28   : > { %p2271_p12 = pnand %p2269_p11, %p2266_p10 }
  0x2a   : > { %2274 = shalt.err (!%p2271_p12)
}
  0x2b   : > { %s2275_s16 = scalar_lea.vmem %s2718_s30, 512  ;;  %p2283_p4 = scmp.lt.s32.totalorder %s2718_s30, %s2718_s30 }
  0x2c   : > { %p2276_p13 = scmp.ne.s32.totalorder %s2718_s30, %s2275_s16  ;;  %p2284_p5 = scmp.lt.s32.totalorder %s2275_s16, %s2275_s16 }
  0x2e   : > { %p2278_p0 = pnand %p2276_p13, %p2739_p8  ;;  %p2285_p7 = por %p2284_p5, %p2283_p4 }
  0x30   : > { %p2279_p2 = pneg %p2278_p0 }
  0x32   : > { %p2286_p9 = pnand %p2285_p7, %p2279_p2 }
  0x34   : > { %2289 = shalt.err (!%p2286_p9)
}
  0x35   : > { %s3235_s17 = smov 128   ;;  %s3236_s11 = smov 8  }
  0x36   : > { %2145 = dma.hbm_to_vmem [thread:$0]  (!%p2725_p6), %s3271_s3, 512, %s2718_s30, [#allocation13], %s3235_s17, %s3235_s17, %s3236_s11  }
  0x37   : > { %s3273_s7 = sld [smem:[#allocation37_spill]] }
  0x3d   : > { %s2290_s16 = scalar_lea.hbm %s3273_s7, 512 }
  0x3e   : > { %p2291_p5 = scmp.ne.s32.totalorder %s3273_s7, %s2290_s16  ;;  %p2297_p12 = scmp.lt.u32.totalorder %s2290_s16, %s3273_s7 }
  0x40   : > { %p2293_p10 = pnand %p2291_p5, %p2739_p8 }
  0x42   : > { %p2294_p11 = pneg %p2293_p10 }
  0x44   : > { %p2299_p13 = pnand %p2297_p12, %p2294_p11 }
  0x46   : > { %2302 = shalt.err (!%p2299_p13)
}
  0x47   : > { %s2303_s30 = scalar_lea.vmem %s2729_s15, 512  ;;  %p2311_p7 = scmp.lt.s32.totalorder %s2729_s15, %s2729_s15 }
  0x48   : > { %p2304_p0 = scmp.ne.s32.totalorder %s2729_s15, %s2303_s30  ;;  %p2312_p9 = scmp.lt.s32.totalorder %s2303_s30, %s2303_s30 }
  0x4a   : > { %p2306_p2 = pnand %p2304_p0, %p2739_p8  ;;  %p2313_p5 = por %p2312_p9, %p2311_p7 }
  0x4c   : > { %p2307_p4 = pneg %p2306_p2 }
  0x4e   : > { %p2314_p10 = pnand %p2313_p5, %p2307_p4 }
  0x50   : > { %2317 = shalt.err (!%p2314_p10)
}
  0x51   : > { %2151 = dma.hbm_to_vmem [thread:$0]  (!%p2725_p6), %s3273_s7, 512, %s2729_s15, [#allocation16], %s3235_s17, %s3235_s17, %s3236_s11  }
  0x52   : > { %s1922_s12 = sadd.s32 4294967294, %s2590_s26   ;;  %s49_s24 = sadd.s32 1, %s2586_s25 }
  0x53   : > { %p51_p11 = scmp.ge.s32.totalorder %s49_s24, 2  ;;  %s58_s18 = sadd.s32 1, %s2578_s23 }
  0x54   : > { %p65_p12 = scmp.ne.s32.totalorder %s2578_s23, %s2574_s22  ;;  %p66_p13 = scmp.eq.s32.totalorder %s2590_s26, 0 }
  0x55   : > { %s3319_s24 = smov (%p51_p11, %s49_s24), 0  ;;  %p71_p2 = scmp.ne.s32.totalorder %s2574_s22, %s2570_s21 }
  0x56   : > { %3274 = sst [smem:[#allocation31_spill]] %s3319_s24  ;;  %p2797_p0 = por %p66_p13, %p65_p12 }
  0x57   : > { %s53_s15 = ssub.s32 %s2586_s25, %s3319_s24  ;;  %p317_p4 = scmp.eq.s32.totalorder %s2709_s27, 1 }
  0x58   : > { %p56_p7 = scmp.eq.s32.totalorder %s53_s15, 0  ;;  %p2808_p9 = por %p3242_p1, %p71_p2 }
  0x59   : > { %p2812_p5 = por %p317_p4, %p65_p12  ;;  %p323_p10 = scmp.eq.s32.totalorder %s1922_s12, 1 }
  0x5a   : > { %s3276_s20 = scalar_select %p2808_p9, 1, 0 }
  0x5b   : > { %s3277_s14 = scalar_select %p2812_p5, 1, 0 }
  0x5c   : > { %s2817_s16 = scalar_select %p56_p7, %s2578_s23, %s58_s18  }
  0x5d   : > { %3278 = sst [smem:[#allocation32_spill]] %s3277_s14  ;;  %p2819_p11 = por %p323_p10, %p71_p2 }
  0x5e   : > { %3279 = sst [smem:[#allocation33_spill]] %s2817_s16  ;;  %p2176_p13 = scmp.lt.s32.totalorder %s2590_s26, 2 }
  0x5f   : > { %s3280_s30 = scalar_select %p2819_p11, 1, 0 }
  0x60   : > { %s3237_s9 = sand.u32 1, %s2578_s23   ;;  %s2826_s10 = sshll.u32 %s2586_s25, 7 }
  0x61   : > { %3281 = sst [smem:[#allocation34_spill]] %s3280_s30  ;;  %s2830_s15 = sshll.u32 %s3237_s9, 3 }
  0x62   : > { %p2834_p12 = pnand %p2176_p13, %p2797_p0  ;;  %s452_s12 = sand.u32 1, %s2590_s26  }
  0x63   : > { %s3283_s1 = sld [smem:[#allocation35_spill]]  ;;  %s456_s7 = scalar_lea.vmem [#allocation9], %s2830_s15 }
  0x64   : > { %s3282_s17 = scalar_select %p2834_p12, 1, 0 }
  0x65   : > { %s463_s9 = sshll.u32 %s456_s7, 4  ;;  %s2848_s19 = scalar_lea.sflag [#allocation10], %s452_s12  ;;  %s2846_s9 = int_to_ptr.vmem [resolvable:$true] %s463_s9 }
  0x66   : > { %p2854_p2 = pneg %p2834_p12 }
  0x68   : > { %s3284_s25 = scalar_select %p2854_p2, 1, 0 }
  0x69   : > { %s2843_s3 = scalar_lea.hbm %s3283_s1, %s2826_s10  ;;  %s2323_s16 = scalar_lea.hbm %s3283_s1, 256 }
  0x6a   : > { %s2318_s24 = scalar_lea.hbm %s2843_s3, 128  ;;  %p2324_p10 = scmp.lt.u32.totalorder %s2843_s3, %s3283_s1 }
  0x6b   : > { %p2319_p0 = scmp.ne.s32.totalorder %s2843_s3, %s2318_s24  ;;  %p2325_p13 = scmp.lt.u32.totalorder %s2323_s16, %s2318_s24 }
  0x6c   : > { %p2327_p11 = scmp.lt.u32.totalorder %s2318_s24, %s2843_s3 }
  0x6d   : > { %p2321_p4 = pnand %p2854_p2, %p2319_p0  ;;  %p2326_p1 = por %p2325_p13, %p2324_p10 }
  0x6f   : > { %p2322_p7 = pneg %p2321_p4  ;;  %p2328_p5 = por %p2327_p11, %p2326_p1 }
  0x71   : > { %p2329_p9 = pnand %p2328_p5, %p2322_p7 }
  0x73   : > { %2332 = shalt.err (!%p2329_p9)
}
  0x74   : > { %s2333_s12 = scalar_lea.vmem %s2846_s9, 128  ;;  %s2596_s11 = smov [#allocation9]  }
  0x75   : > { %p2334_p0 = scmp.ne.s32.totalorder %s2846_s9, %s2333_s12  ;;  %s2338_s18 = sshll.u32 %s2596_s11, 4  ;;  %s2339_s18 = int_to_ptr.vmem [resolvable:$false] %s2338_s18 }
  0x76   : > { %s2340_s26 = scalar_lea.vmem %s2339_s18, 256  ;;  %p2341_p6 = scmp.lt.s32.totalorder %s2846_s9, %s2339_s18 }
  0x77   : > { %p2336_p4 = pnand %p2334_p0, %p2854_p2  ;;  %p2342_p8 = scmp.lt.s32.totalorder %s2340_s26, %s2333_s12 }
  0x79   : > { %p2337_p3 = pneg %p2336_p4  ;;  %p2343_p10 = por %p2342_p8, %p2341_p6 }
  0x7b   : > { %p2344_p13 = pnand %p2343_p10, %p2337_p3 }
  0x7d   : > { %2347 = shalt.err (!%p2344_p13)
}
  0x7e   : > { %2161 = dma.hbm_to_vmem [thread:$0]  (!%p2834_p12), %s2843_s3, 128, %s2846_s9, %s2848_s19  }
  0x7f   : > { %s2597_s24 = smov [#allocation14]   ;;  %s2598_s7 = smov [#allocation17]  }
  0x80   : > { %s386_s16 = sshll.u32 %s2597_s24, 4  ;;  %s416_s1 = sshll.u32 %s2598_s7, 4  ;;  %s387_s16 = int_to_ptr.vmem [resolvable:$true] %s386_s16  ;;  %s417_s1 = int_to_ptr.vmem [resolvable:$true] %s416_s1 }
  0x81   : > { %s2348_s18 = scalar_lea.hbm %s3223_s5, 512  ;;  %p3285_p3 = scmp.ne.s32.totalorder %s3272_s29, 0 }
  0x82   : > { %p2349_p1 = scmp.ne.s32.totalorder %s3223_s5, %s2348_s18  ;;  %p2355_p9 = scmp.lt.u32.totalorder %s2348_s18, %s3223_s5 }
  0x84   : > { %p2351_p6 = pnand %p2349_p1, %p3285_p3 }
  0x86   : > { %p2352_p8 = pneg %p2351_p6 }
  0x88   : > { %p2357_p5 = pnand %p2355_p9, %p2352_p8 }
  0x8a   : > { %2360 = shalt.err (!%p2357_p5)
}
  0x8b   : > { %s2361_s3 = scalar_lea.vmem %s387_s16, 512  ;;  %p2369_p4 = scmp.lt.s32.totalorder %s387_s16, %s387_s16 }
  0x8c   : > { %p2362_p11 = scmp.ne.s32.totalorder %s387_s16, %s2361_s3  ;;  %p2370_p10 = scmp.lt.s32.totalorder %s2361_s3, %s2361_s3 }
  0x8e   : > { %p2364_p7 = pnand %p2362_p11, %p3285_p3  ;;  %p2371_p13 = por %p2370_p10, %p2369_p4 }
  0x90   : > { %p2365_p0 = pneg %p2364_p7 }
  0x92   : > { %p2372_p12 = pnand %p2371_p13, %p2365_p0 }
  0x94   : > { %2375 = shalt.err (!%p2372_p12)
}
  0x95   : > { %p3286_p1 = scmp.ne.s32.totalorder %s3270_s13, 0  ;;  %s3287_s30 = smov 8  }
  0x96   : > { %s3288_s9 = smov 128   ;;  %s2376_s11 = scalar_lea.hbm %s3226_s8, 16 }
  0x97   : > { %2148 = dma.hbm_to_vmem [thread:$0]  (!%p3286_p1), %s3223_s5, 512, %s387_s16, [#allocation13], %s3288_s9, %s3288_s9, %s3287_s30  }
  0x98   : > { %p2377_p6 = scmp.ne.s32.totalorder %s3226_s8, %s2376_s11  ;;  %p2383_p9 = scmp.lt.u32.totalorder %s2376_s11, %s3226_s8 }
  0x9a   : > { %p2379_p12 = pnand %p2377_p6, %p3285_p3 }
  0x9c   : > { %p2380_p8 = pneg %p2379_p12 }
  0x9e   : > { %p2385_p5 = pnand %p2383_p9, %p2380_p8 }
  0xa0   : > { %2388 = shalt.err (!%p2385_p5)
}
  0xa1   : > { %s2389_s21 = scalar_lea.vmem %s417_s1, 16  ;;  %s2396_s16 = scalar_lea.vmem %s417_s1, 32 }
  0xa2   : > { %p2390_p11 = scmp.ne.s32.totalorder %s417_s1, %s2389_s21  ;;  %p2397_p4 = scmp.lt.s32.totalorder %s417_s1, %s417_s1 }
  0xa3   : > { %p2398_p10 = scmp.lt.s32.totalorder %s2396_s16, %s2389_s21 }
  0xa4   : > { %p2392_p7 = pnand %p2390_p11, %p3285_p3 }
  0xa5   : > { %p2399_p13 = por %p2398_p10, %p2397_p4 }
  0xa6   : > { %p2393_p0 = pneg %p2392_p7 }
  0xa8   : > { %p2400_p2 = pnand %p2399_p13, %p2393_p0 }
  0xaa   : > { %2403 = shalt.err (!%p2400_p2)
}
  0xab   : > { %2154 = dma.hbm_to_vmem [thread:$0]  (!%p3286_p1), %s3226_s8, 16, %s417_s1, [#allocation16]  }
  0xac   : > { %s2921_s24 = scalar_lea.hbm %s3218_s0, %s2826_s10  ;;  %s437_s7 = scalar_lea.vmem [#allocation6], %s2830_s15 }
  0xad   : > { %s445_s13 = sshll.u32 %s437_s7, 4  ;;  %s2930_s12 = scalar_lea.hbm %s3220_s2, %s2826_s10  ;;  %s2924_s13 = int_to_ptr.vmem [resolvable:$true] %s445_s13 }
  0xae   : > { %s3289_s26 = sand.u32 1, %s2578_s23   ;;  %s2404_s3 = scalar_lea.hbm %s2921_s24, 128 }
  0xaf   : > { %s434_s1 = scalar_lea.sflag [#allocation7], %s3289_s26  ;;  %p2405_p2 = scmp.ne.s32.totalorder %s2921_s24, %s2404_s3 }
  0xb0   : > { %p3290_p3 = scmp.ne.s32.totalorder %s3284_s25, 0  ;;  %s2409_s30 = scalar_lea.hbm %s3218_s0, 256 }
  0xb1   : > { %p2410_p12 = scmp.lt.u32.totalorder %s2921_s24, %s3218_s0  ;;  %p2411_p8 = scmp.lt.u32.totalorder %s2409_s30, %s2404_s3 }
  0xb2   : > { %p2407_p1 = pnand %p2405_p2, %p3290_p3  ;;  %p2413_p5 = scmp.lt.u32.totalorder %s2404_s3, %s2921_s24 }
  0xb3   : > { %p2412_p9 = por %p2411_p8, %p2410_p12 }
  0xb4   : > { %p2408_p6 = pneg %p2407_p1 }
  0xb5   : > { %p2414_p11 = por %p2413_p5, %p2412_p9 }
  0xb7   : > { %p2415_p7 = pnand %p2414_p11, %p2408_p6 }
  0xb9   : > { %2418 = shalt.err (!%p2415_p7)
}
  0xba   : > { %s2419_s10 = scalar_lea.vmem %s2924_s13, 128  ;;  %s2599_s14 = smov [#allocation6]  }
  0xbb   : > { %p2420_p0 = scmp.ne.s32.totalorder %s2924_s13, %s2419_s10  ;;  %s2424_s7 = sshll.u32 %s2599_s14, 4  ;;  %s2425_s7 = int_to_ptr.vmem [resolvable:$false] %s2424_s7 }
  0xbc   : > { %s2426_s11 = scalar_lea.vmem %s2425_s7, 256  ;;  %p2427_p13 = scmp.lt.s32.totalorder %s2924_s13, %s2425_s7 }
  0xbd   : > { %p2422_p4 = pnand %p2420_p0, %p3290_p3  ;;  %p2428_p2 = scmp.lt.s32.totalorder %s2426_s11, %s2419_s10 }
  0xbf   : > { %p2423_p10 = pneg %p2422_p4  ;;  %p2429_p1 = por %p2428_p2, %p2427_p13 }
  0xc1   : > { %p2430_p12 = pnand %p2429_p1, %p2423_p10 }
  0xc3   : > { %2433 = shalt.err (!%p2430_p12)
}
  0xc4   : > { %p3291_p6 = scmp.ne.s32.totalorder %s3282_s17, 0  ;;  %s474_s18 = scalar_lea.vmem [#allocation11], %s2830_s15 }
  0xc5   : > { %s481_s26 = sshll.u32 %s474_s18, 4  ;;  %s2434_s3 = scalar_lea.hbm %s2930_s12, 128  ;;  %s482_s26 = int_to_ptr.vmem [resolvable:$true] %s481_s26 }
  0xc6   : > { %2158 = dma.hbm_to_vmem [thread:$0]  (!%p3291_p6), %s2921_s24, 128, %s2924_s13, %s434_s1  }
  0xc7   : > { %p2435_p8 = scmp.ne.s32.totalorder %s2930_s12, %s2434_s3  ;;  %s2439_s30 = scalar_lea.hbm %s3220_s2, 256 }
  0xc8   : > { %p2440_p11 = scmp.lt.u32.totalorder %s2930_s12, %s3220_s2  ;;  %p2441_p7 = scmp.lt.u32.totalorder %s2439_s30, %s2434_s3 }
  0xc9   : > { %p2437_p9 = pnand %p2435_p8, %p3290_p3  ;;  %p2443_p4 = scmp.lt.u32.totalorder %s2434_s3, %s2930_s12 }
  0xca   : > { %p2442_p0 = por %p2441_p7, %p2440_p11 }
  0xcb   : > { %p2438_p5 = pneg %p2437_p9 }
  0xcc   : > { %p2444_p10 = por %p2443_p4, %p2442_p0 }
  0xce   : > { %p2445_p13 = pnand %p2444_p10, %p2438_p5 }
  0xd0   : > { %2448 = shalt.err (!%p2445_p13)
}
  0xd1   : > { %s2449_s15 = scalar_lea.vmem %s482_s26, 128  ;;  %s2600_s24 = smov [#allocation11]  }
  0xd2   : > { %p2450_p2 = scmp.ne.s32.totalorder %s482_s26, %s2449_s15  ;;  %s2454_s13 = sshll.u32 %s2600_s24, 4  ;;  %s2455_s13 = int_to_ptr.vmem [resolvable:$false] %s2454_s13 }
  0xd3   : > { %s2456_s1 = scalar_lea.vmem %s2455_s13, 256  ;;  %p2457_p8 = scmp.lt.s32.totalorder %s482_s26, %s2455_s13 }
  0xd4   : > { %p2452_p1 = pnand %p2450_p2, %p3290_p3  ;;  %p2458_p9 = scmp.lt.s32.totalorder %s2456_s1, %s2449_s15 }
  0xd6   : > { %p2453_p12 = pneg %p2452_p1  ;;  %p2459_p6 = por %p2458_p9, %p2457_p8 }
  0xd8   : > { %p2460_p7 = pnand %p2459_p6, %p2453_p12 }
  0xda   : > { %2463 = shalt.err (!%p2460_p7)
}
  0xdb   : > { %p3292_p11 = scmp.ne.s32.totalorder %s3282_s17, 0  ;;  %p3293_p5 = scmp.ne.s32.totalorder %s3269_s28, 0 }
  0xdc   : > { %s2977_s25 = sand.u32 (!%p3293_p5), 1, %s2574_s22   ;;  %p3294_p3 = scmp.ne.s32.totalorder (!%p3293_p5), %s3276_s20, 0 }
  0xdd   : > { %2164 = dma.hbm_to_vmem [thread:$0]  (!%p3292_p11), %s2930_s12, 128, %s482_s26, %s2848_s19  }
  0xde   : > { %490 = sbr.rel (%p3293_p5) target bundleno = 2279 (0x8e7), region = 64  ;;  %s2980_s10 = sshll.u32 (!%p3293_p5), %s2977_s25, 3 }
  0xdf   : > { %s493_s14 = scalar_lea.sflag (!%p3293_p5), [#allocation7], %s2977_s25  ;;  %s496_s7 = scalar_lea.vmem (!%p3293_p5), [#allocation6], %s2980_s10 }
  0xe5   : > { %2545 = dma.done.wait (%p3294_p3), %s493_s14, 128  }
  0xe6   : > { %2547 = vsyncadd (%p3294_p3), %s493_s14, 4294967168  ;;  %s501_s28 = sand.u32 1, %s2709_s27   ;;  %s505_s19 = scalar_lea.vmem [#allocation9], %s2980_s10 }
  0xe7   : > { %s502_s17 = scalar_lea.sflag [#allocation10], %s501_s28 }
  0xe8   : > { %2549 = dma.done.wait (%p3294_p3), %s502_s17, 256  }
  0xe9   : > { %2551 = vsyncadd (%p3294_p3), %s502_s17, 4294967040  ;;  %s514_s12 = scalar_lea.vmem [#allocation11], %s2980_s10  ;;  %p3295_p6 = scmp.eq.s32.totalorder %s2709_s27, 0 }
  0xeb   : > { %2553 = dma.done.wait (%p3295_p6), [#allocation13], 1024   ;;  %p3296_p0 = pmov %p3295_p6 }
  0xed   : > { %2555 = vsyncadd (%p3296_p0), [#allocation13], 4294966272  ;;  %p3297_p4 = pmov %p3296_p0 }
  0xee   : > { %p3298_p10 = pmov %p3296_p0 }
  0xef   : > { %2557 = dma.done.wait (%p3297_p4), [#allocation16], 528  }
  0xf0   : > { %2559 = vsyncadd (%p3298_p10), [#allocation16], 4294966768  ;;  %v2601_v0 = vmov 0.0|0.0   ;;  %vm2602_vm0 = vmmov 0   ;;  %v2603_v1 = vmov 0.0   ;;  %v591_v2 = vld [vmem:[#allocation14] sm:$0xff] }
  0xf1   : > { %2092 = vmatprep.subr.bf16.mxu0 %v2601_v0  ;;  %2016 = vmatprep.mubr.msk.f32.mxu0 %vm2602_vm0, %v2603_v1  ;;  %v592_v3 = vld [vmem:[#allocation14 + $0x8] sm:$0xff]  ;;  %v593_v4 = vld [vmem:[#allocation14 + $0x10] sm:$0xff]  ;;  %v594_v6 = vld [vmem:[#allocation14 + $0x18] sm:$0xff]  ;;  %vm602_vm1 = vcmask 261120   ;;  %vm793_vm2 = vcmask 64512   ;;  %s2604_s26 = smov 120  }
  0xf2   : > { %2098 = vmatprep.subr.bf16.mxu1 %v2601_v0  ;;  %2027 = vmatprep.mubr.msk.f32.mxu1 %vm2602_vm0, %v2603_v1  ;;  %v2093_v5 = vpack.c.bf16 %v592_v3, %v591_v2  ;;  %v2096_v7 = vpack.c.bf16 %v594_v6, %v593_v4  ;;  %v819_v8 = vld [vmem:[#allocation12] sm:$0xff]  ;;  %v820_v9 = vld [vmem:[#allocation12 + $0x8] sm:$0xff]  ;;  %v821_v12 = vld [vmem:[#allocation12 + $0x10] sm:$0xff]  ;;  %s2605_s3 = smov 112   ;;  %s2606_s21 = smov 104   ;;  %vm1600_vm3 = vcmask 130048  }
  0xf3   : > { %v590_v10 = vld [vmem:[%s505_s19] sm:$0xff]  ;;  %v2105_v11 = vpack.c.bf16 %v820_v9, %v819_v8  ;;  %v822_v13 = vld [vmem:[#allocation12 + $0x18] sm:$0xff]  ;;  %v1945_v19 = vld [vmem:[%s3224_s6] ss:$0 sm:$0xff]  ;;  %s1944_s16 = sshll.u32 %s2977_s25, 5  ;;  %s3299_s15 = sld [smem:[#allocation38_spill]] }
  0xf4   : > { %2094 = vmatpush3.bf16.msra.mxu0 %v2093_v5  ;;  %v2108_v14 = vpack.c.bf16 %v822_v13, %v821_v12  ;;  %v818_v15 = vld [vmem:[%s496_s7] sm:$0xff]  ;;  %v677_v16 = vld [vmem:[#allocation15] sm:$0xff]  ;;  %v678_v17 = vld [vmem:[#allocation15 + $0x8] sm:$0xff]  ;;  %s3064_s30 = scalar_lea.vmem [#allocation19], %s1944_s16  ;;  %s2607_s17 = smov 8   ;;  %vm1602_vm4 = vcmask 195584  }
  0xf5   : > { %2095 = vmatprep.subr.bf16.mxu0 %v2601_v0  ;;  %v2099_v18 = vpack.c.bf16 %v678_v17, %v677_v16  ;;  %v679_v23 = vld [vmem:[#allocation15 + $0x10] sm:$0xff]  ;;  %v680_v24 = vld [vmem:[#allocation15 + $0x18] sm:$0xff]  ;;  %v1947_v41 = vld [vmem:[#allocation17] ss:$0 sm:$0xff]  ;;  %s3300_s19 = sld [smem:[#allocation28_spill]]  ;;  %s2609_s27 = smov 24  }
  0xf6   : > { %v2102_v25 = vpack.c.bf16 %v680_v24, %v679_v23  ;;  %v1949_v26 = vld [vmem:[%s3222_s4] ss:$0 sm:$0xff]  ;;  %s3301_s20 = sld [smem:[#allocation32_spill]]  ;;  %s1723_s18 = sshll.u32 %s3064_s30, 4  ;;  %s3133_s18 = int_to_ptr.vmem [resolvable:$true] %s1723_s18 }
  0xf7   : > { %2100 = vmatpush3.bf16.msra.mxu1 %v2099_v18  ;;  %v676_v27 = vld [vmem:[%s514_s12] sm:$0xff]  ;;  %s2608_s12 = smov 16   ;;  %s1695_s29 = scalar_lea.sflag [#allocation20], %s2977_s25 }
  0xf8   : > { %2097 = vmatpush3.bf16.msra.mxu0 %v2096_v7  ;;  %2101 = vmatprep.subr.bf16.mxu1 %v2601_v0  ;;  %s2464_s24 = scalar_lea.vmem %s3133_s18, 512  ;;  %s2610_s13 = smov [#allocation19]  }
  0xf9   : > { %2104 = vmatprep.subr.bf16.mxu0 %v2601_v0  ;;  %p2465_p13 = scmp.ne.s32.totalorder %s3133_s18, %s2464_s24  ;;  %s2468_s1 = sshll.u32 %s2610_s13, 4  ;;  %s2469_s1 = int_to_ptr.vmem [resolvable:$false] %s2468_s1 }
  0xfa   : > { %p2471_p8 = scmp.lt.s32.totalorder %s3133_s18, %s2469_s1 }
  0xfb   : > { %2017 = vmatmul.mubr.msk.f32.vlgmr.msra.gmra.mrb[0].mxu0 %vm602_vm1, %v590_v10  ;;  %2103 = vmatpush3.bf16.msra.mxu1 %v2102_v25  ;;  %s1971_s11 = sshll.u32 %s3300_s19, 9 }
  0xfc   : > { %2106 = vmatpush3.bf16.msra.mxu0 %v2105_v11  ;;  %2038 = vmatprep.mubr.msk.f32.mxu0 %vm2602_vm0, %v2603_v1  ;;  %p3304_p2 = scmp.ne.s32.totalorder %s3301_s20, 0 }
  0xfd   : > { %2107 = vmatprep.subr.bf16.mxu0 %v2601_v0  ;;  %2041 = vmatprep.subr.mxu1 %v2603_v1 }
  0xfe   : > { %2028 = vmatmul.mubr.msk.f32.vlgmr.msra.gmra.mrb[0].mxu1 %vm602_vm1, %v676_v27  ;;  %p2466_p1 = pnand %p2465_p13, %p3304_p2 }
  0xff   : > { %2043 = vmatprep.mubr.msk.f32.mxu1 %vm2602_vm0, %v2603_v1 }
 0x100   : > { %2109 = vmatpush3.bf16.msra.mxu0 %v2108_v14  ;;  %p2467_p12 = pneg %p2466_p1 }
 0x101   : > { %2061 = vmatprep.subr.mxu0 %v2603_v1 }
 0x103   : > { %2039 = vmatmul.mubr.msk.f32.vlgmr.msra.gmra.mrb[2].mxu0 %vm602_vm1, %v818_v15 }
 0x104   : > { %2063 = vmatprep.mubr.msk.f32.mxu0 %vm2602_vm0, %v2603_v1 }
 0x1ce   : > { %v672_v20 = vpop.f32.mrb[0].mxu0 }
 0x1cf   : > { %v2018_v21 = vpop.f32.mrb[1].mxu0  ;;  %v673_v22 = vadd.f32 %v1945_v19, %v672_v20 }
 0x1d1   : > { %761 = vxpose.xlu0.b32.start.end [1/1] (short) (narrow) %v673_v22, 32  ;;  %v757_v42 = vpop.f32.mrb[0].mxu1 }
 0x1d2   : > { %v3050_v43 = vadd.f32 %v1947_v41, %v757_v42  ;;  %v2029_v44 = vpop.f32.mrb[1].mxu1  ;;  %v1604_v42 = vld [vmem:[%s3299_s15] sm:$0xff] }
 0x1d4   : > { %795 = vst.msk [vmem:[#allocation3] sm:$0xff] %vm793_vm2, %v3050_v43 }
 0x1d6   : > { %v900_v28 = vpop.f32.mrb[2].mxu0 }
 0x1d7   : > { %v901_v29 = vadd.f32 %v1949_v26, %v900_v28  ;;  %v2040_v30 = vpop.f32.mrb[3].mxu0 }
 0x1d9   : > { %v904_v31 = vmul.f32 0.35355338, %v901_v29 }
 0x1db   : > { %906 = vst.msk [vmem:[#allocation4] sm:$0xff] %vm793_vm2, %v904_v31  ;;  %908 = vrot.lane.b32.xlu1 %v904_v31, %s2604_s26  ;;  %v1010_v45 = vld [vmem:[#allocation3] sm:$0xff] }
 0x1df   : > { %913 = vrot.lane.b32.xlu1 %v904_v31, %s2605_s3 }
 0x1e2   : > { %v923_v36 = vld [vmem:[#allocation4] sm:$0xff] }
 0x24d   : > { %v909_v32 = vpop.permute.xlu1 %908 }
 0x24e   : > { %912 = vst.msk [vmem:[#allocation4 + $0x8] sm:$0xff] %vm793_vm2, %v909_v32 }
 0x251   : > { %v777_v33 = vpop.trf.xlu0  ;;  %v914_v34 = vpop.permute.xlu1 %913 }
 0x252   : > { %794 = vst.msk [vmem:[#allocation2] sm:$0xff] %vm793_vm2, %v777_v33  ;;  %917 = vst.msk [vmem:[#allocation4 + $0x10] sm:$0xff] %vm793_vm2, %v914_v34 }
 0x255   : > { %v778_v35 = vpop.trf.xlu0  ;;  %v1085_v3 = vld [vmem:[#allocation4 + $0x8] sm:$0xff] }
 0x256   : > { %797 = vst.msk [vmem:[#allocation2 + $0x8] sm:$0xff] %vm793_vm2, %v778_v35 }
 0x259   : > { %v779_v37 = vpop.trf.xlu0  ;;  %v924_v38 = vld [vmem:[#allocation2] sm:$0xff]  ;;  %v1251_v39 = vld [vmem:[#allocation4 + $0x10] sm:$0xff] }
 0x25a   : > { %805 = vst.msk [vmem:[#allocation2 + $0x10] sm:$0xff] %vm793_vm2, %v779_v37  ;;  %2042 = vmatpush3.msra.mxu1 %v924_v38 }
 0x25b   : > { %2044 = vmatmul.mubr.msk.f32.vlgmr.msra.gmra.mrb[2].mxu1 %vm793_vm2, %v923_v36  ;;  %2046 = vmatprep.subr.mxu1 %v2603_v1 }
 0x25c   : > { %2048 = vmatprep.mubr.msk.f32.mxu1 %vm2602_vm0, %v2603_v1  ;;  %2047 = vmatpush3.msra.mxu1 %v1010_v45 }
 0x25d   : > { %2051 = vmatprep.subr.mxu1 %v2603_v1  ;;  %v780_v46 = vpop.trf.xlu0  ;;  %v1087_v2 = vld [vmem:[#allocation2 + $0x8] sm:$0xff] }
 0x25e   : > { %812 = vst.msk [vmem:[#allocation2 + $0x18] sm:$0xff] %vm793_vm2, %v780_v46  ;;  %v1606_v46 = vld [vmem:[%s3299_s15 + $0x10] sm:$0xff] }
 0x261   : > { %v1253_v40 = vld [vmem:[#allocation2 + $0x10] sm:$0xff] }
 0x262   : > { %2062 = vmatpush3.msra.mxu0 %v1253_v40 }
 0x263   : > { %2064 = vmatmul.mubr.msk.f32.vlgmr.msra.gmra.mrb[4].mxu0 %vm793_vm2, %v1251_v39  ;;  %2071 = vmatprep.subr.mxu0 %v2603_v1 }
 0x264   : > { %2073 = vmatprep.mubr.msk.f32.mxu0 %vm2602_vm0, %v2603_v1 }
 0x265   : > { %v1419_v53 = vld [vmem:[#allocation2 + $0x18] sm:$0xff] }
 0x266   : > { %2072 = vmatpush3.msra.mxu0 %v1419_v53 }
 0x267   : > { %2110 = vmatprep.subr.bf16.mxu0 %v2601_v0 }
 0x32e   : > { %v994_v47 = vpop.f32.mrb[2].mxu1 }
 0x32f   : > { %v998_v48 = vsel %vm793_vm2, %v994_v47, -inf  ;;  %v2045_v49 = vpop.f32.mrb[3].mxu1 }
 0x330   : > { %999 = vmax.xlane.f32.xlu0 %v998_v48 }
 0x336   : > { %v1323_v50 = vpop.f32.mrb[4].mxu0 }
 0x337   : > { %v1327_v51 = vsel %vm793_vm2, %v1323_v50, -inf  ;;  %v2065_v52 = vpop.f32.mrb[5].mxu0 }
 0x338   : > { %1328 = vmax.xlane.f32.xlu0 %v1327_v51 }
 0x3bd   : > { %v1000_v54 = vpop.xlane.xlu0 %999 }
 0x3be   : > { %v1001_v55 = vsub.f32 %v994_v47, %v1000_v54 }
 0x3c0   : > { %v1002_v56 = vmul.f32 1.442695, %v1001_v55 }
 0x3c2   : > { %2246 = vpow2.f32 %v1002_v56 }
 0x3c5   : > { %v1329_v4 = vpop.xlane.xlu0 %1328 }
 0x3c6   : > { %v1330_v5 = vsub.f32 %v1323_v50, %v1329_v4 }
 0x3c8   : > { %v1331_v6 = vmul.f32 1.442695, %v1330_v5 }
 0x3cc   : > { %v2247_v57 = vpop.eup %2246 }
 0x3cd   : > { %v1004_v58 = vsel %vm793_vm2, %v2247_v57, 0.0 }
 0x3ce   : > { %1005 = vadd.xlane.f32.xlu1 %v1004_v58 }
 0x3df   : > { %918 = vrot.lane.b32.xlu1 %v904_v31, %s2606_s21 }
 0x45b   : > { %v1006_v59 = vpop.xlane.xlu1 %1005 }
 0x45c   : > { %2248 = vrcp.f32 %v1006_v59 }
 0x45d   : > { %2250 = vpow2.f32 %v1331_v6 }
 0x45f   : > { %v919_v60 = vpop.permute.xlu1 %918 }
 0x460   : > { %922 = vst.msk [vmem:[#allocation4 + $0x18] sm:$0xff] %vm793_vm2, %v919_v60 }
 0x466   : > { %v2249_v61 = vpop.eup %2248 }
 0x467   : > { %v1008_v62 = vmul.f32 %v2249_v61, %v2247_v57  ;;  %v1417_v63 = vld [vmem:[#allocation4 + $0x18] sm:$0xff]  ;;  %v2251_v11 = vpop.eup %2250 }
 0x468   : > { %2074 = vmatmul.mubr.msk.f32.vlgmr.msra.gmra.mrb[6].mxu0 %vm793_vm2, %v1417_v63  ;;  %v1333_v14 = vsel %vm793_vm2, %v2251_v11, 0.0 }
 0x469   : > { %1009 = vst.msk [vmem:[%s3064_s30] sm:$0xff] %vm793_vm2, %v1008_v62  ;;  %2049 = vmatmul.mubr.msk.f32.vlgmr.msra.gmra.mrb[4].mxu1 %vm793_vm2, %v1008_v62  ;;  %2089 = vmatprep.mubr.msk.f32.mxu0 %vm2602_vm0, %v2603_v1 }
 0x46a   : > { %2052 = vmatpush3.msra.mxu1 %v1087_v2  ;;  %2053 = vmatprep.mubr.msk.f32.mxu1 %vm2602_vm0, %v2603_v1 }
 0x46b   : > { %2056 = vmatprep.subr.mxu1 %v2603_v1 }
 0x46d   : > { %2054 = vmatmul.mubr.msk.f32.vlgmr.msra.gmra.mrb[6].mxu1 %vm793_vm2, %v1085_v3 }
 0x46e   : > { %2058 = vmatprep.mubr.msk.f32.mxu1 %vm2602_vm0, %v2603_v1 }
 0x53b   : > { %v1489_v7 = vpop.f32.mrb[6].mxu0 }
 0x53c   : > { %v1080_v8 = vpop.f32.mrb[4].mxu1  ;;  %v2075_v9 = vpop.f32.mrb[7].mxu0  ;;  %v1493_v10 = vsel %vm793_vm2, %v1489_v7, -inf }
 0x53d   : > { %1084 = vst.msk [vmem:[#allocation5] sm:$0xff] %vm793_vm2, %v1080_v8  ;;  %v2050_v12 = vpop.f32.mrb[5].mxu1  ;;  %1494 = vmax.xlane.f32.xlu0 %v1493_v10 }
 0x540   : > { %v1157_v13 = vpop.f32.mrb[6].mxu1 }
 0x541   : > { %v2055_v15 = vpop.f32.mrb[7].mxu1  ;;  %1334 = vadd.xlane.f32.xlu0 %v1333_v14  ;;  %v1161_v16 = vsel %vm793_vm2, %v1157_v13, -inf }
 0x542   : > { %1162 = vmax.xlane.f32.xlu1 %v1161_v16 }
 0x544   : > { %v1583_v57 = vld [vmem:[#allocation5] sm:$0xff] }
 0x557   : > { %799 = vrot.lane.b32.xlu0 %v3050_v43, %s2604_s26 }
 0x5ca   : > { %v1495_v17 = vpop.xlane.xlu0 %1494 }
 0x5cb   : > { %v1496_v18 = vsub.f32 %v1489_v7, %v1495_v17 }
 0x5cd   : > { %v1497_v19 = vmul.f32 1.442695, %v1496_v18 }
 0x5ce   : > { %v1335_v20 = vpop.xlane.xlu0 %1334 }
 0x5cf   : > { %2252 = vpow2.f32 %v1497_v19  ;;  %v1163_v27 = vpop.xlane.xlu1 %1162 }
 0x5d0   : > { %2254 = vrcp.f32 %v1335_v20  ;;  %v1164_v28 = vsub.f32 %v1157_v13, %v1163_v27 }
 0x5d2   : > { %v800_v21 = vpop.permute.xlu0 %799  ;;  %v1165_v29 = vmul.f32 1.442695, %v1164_v28 }
 0x5d3   : > { %803 = vst.msk [vmem:[#allocation3 + $0x8] sm:$0xff] %vm793_vm2, %v800_v21 }
 0x5d4   : > { %2256 = vpow2.f32 %v1165_v29 }
 0x5d9   : > { %v2253_v22 = vpop.eup %2252 }
 0x5da   : > { %v2255_v23 = vpop.eup %2254  ;;  %v1499_v24 = vsel %vm793_vm2, %v2253_v22, 0.0  ;;  %v1175_v25 = vld [vmem:[#allocation3 + $0x8] sm:$0xff] }
 0x5db   : > { %v1337_v26 = vmul.f32 %v2255_v23, %v2251_v11  ;;  %1500 = vadd.xlane.f32.xlu1 %v1499_v24  ;;  %2057 = vmatpush3.msra.mxu1 %v1175_v25 }
 0x5dc   : > { %2066 = vmatprep.subr.mxu1 %v2603_v1 }
 0x5dd   : > { %1957 = vst.msk [vmem:[%s3064_s30 + $0x10] sm:$0xff] %vm793_vm2, %v1337_v26 }
 0x5de   : > { %v2257_v30 = vpop.eup %2256 }
 0x5df   : > { %v1167_v31 = vsel %vm793_vm2, %v2257_v30, 0.0 }
 0x5ec   : > { %806 = vrot.lane.b32.xlu1 %v3050_v43, %s2605_s3 }
 0x610   : > { %1168 = vadd.xlane.f32.xlu1 %v1167_v31 }
 0x621   : > { %813 = vrot.lane.b32.xlu1 %v3050_v43, %s2606_s21  ;;  %v1605_v43 = vld [vmem:[%s3299_s15 + $0x8] sm:$0xff]  ;;  %s3302_s21 = sld [smem:[#allocation41_spill]] }
 0x622   : > { %v2111_v44 = vpack.c.bf16 %v1605_v43, %v1604_v42 }
 0x624   : > { %2112 = vmatpush3.bf16.msra.mxu0 %v2111_v44 }
 0x625   : > { %2113 = vmatprep.subr.bf16.mxu0 %v2601_v0 }
 0x627   : > { %s3303_s16 = smov %s3302_s21  ;;  %s3131_s9 = scalar_lea.hbm %s3302_s21, %s1971_s11 }
 0x668   : > { %v1501_v32 = vpop.xlane.xlu1 %1500 }
 0x669   : > { %2258 = vrcp.f32 %v1501_v32 }
 0x66c   : > { %v807_v33 = vpop.permute.xlu1 %806 }
 0x66d   : > { %810 = vst.msk [vmem:[#allocation3 + $0x10] sm:$0xff] %vm793_vm2, %v807_v33 }
 0x673   : > { %v2259_v34 = vpop.eup %2258 }
 0x674   : > { %v1503_v35 = vmul.f32 %v2259_v34, %v2253_v22  ;;  %v1341_v40 = vld [vmem:[#allocation3 + $0x10] sm:$0xff] }
 0x676   : > { %1960 = vst.msk [vmem:[%s3064_s30 + $0x18] sm:$0xff] %vm793_vm2, %v1503_v35 }
 0x69d   : > { %v1169_v36 = vpop.xlane.xlu1 %1168 }
 0x69e   : > { %2260 = vrcp.f32 %v1169_v36 }
 0x6a1   : > { %v814_v37 = vpop.permute.xlu1 %813 }
 0x6a2   : > { %817 = vst.msk [vmem:[#allocation3 + $0x18] sm:$0xff] %vm793_vm2, %v814_v37 }
 0x6a8   : > { %v2261_v38 = vpop.eup %2260 }
 0x6a9   : > { %v1171_v39 = vmul.f32 %v2261_v38, %v2257_v30  ;;  %v1507_v41 = vld [vmem:[#allocation3 + $0x18] sm:$0xff] }
 0x6ab   : > { %1954 = vst.msk [vmem:[%s3064_s30 + $0x8] sm:$0xff] %vm793_vm2, %v1171_v39  ;;  %2059 = vmatmul.mubr.msk.f32.vlgmr.msra.gmra.mrb[8].mxu1 %vm793_vm2, %v1171_v39  ;;  %s2470_s30 = scalar_lea.vmem %s2469_s1, 1024 }
 0x6ac   : > { %2067 = vmatpush3.msra.mxu1 %v1341_v40  ;;  %2068 = vmatprep.mubr.msk.f32.mxu1 %vm2602_vm0, %v2603_v1  ;;  %p2472_p9 = scmp.lt.s32.totalorder %s2470_s30, %s2464_s24 }
 0x6ad   : > { %2076 = vmatprep.subr.mxu1 %v2603_v1 }
 0x6ae   : > { %p2473_p7 = por %p2472_p9, %p2471_p8 }
 0x6af   : > { %2069 = vmatmul.mubr.msk.f32.vlgmr.msra.gmra.mrb[10].mxu1 %vm793_vm2, %v1337_v26 }
 0x6b0   : > { %2077 = vmatpush3.msra.mxu1 %v1507_v41  ;;  %2078 = vmatprep.mubr.msk.f32.mxu1 %vm2602_vm0, %v2603_v1  ;;  %v1607_v1 = vld [vmem:[%s3299_s15 + $0x18] sm:$0xff]  ;;  %p2474_p11 = pnand %p2473_p7, %p2467_p12 }
 0x6b1   : > { %v2114_v48 = vpack.c.bf16 %v1607_v1, %v1606_v46 }
 0x6b3   : > { %2079 = vmatmul.mubr.msk.f32.vlgmr.msra.gmra.mrb[12].mxu1 %vm793_vm2, %v1503_v35  ;;  %2115 = vmatpush3.bf16.msra.mxu0 %v2114_v48 }
 0x77e   : > { %v1245_v45 = vpop.f32.mrb[8].mxu1 }
 0x77f   : > { %1250 = vst.msk [vmem:[#allocation5 + $0x8] sm:$0xff] %vm793_vm2, %v1245_v45  ;;  %v2060_v47 = vpop.f32.mrb[9].mxu1 }
 0x782   : > { %v1411_v49 = vpop.f32.mrb[10].mxu1 }
 0x783   : > { %1416 = vst.msk [vmem:[#allocation5 + $0x10] sm:$0xff] %vm793_vm2, %v1411_v49  ;;  %v2070_v50 = vpop.f32.mrb[11].mxu1 }
 0x786   : > { %v1577_v51 = vpop.f32.mrb[12].mxu1  ;;  %v1584_v52 = vld [vmem:[#allocation5 + $0x8] sm:$0xff] }
 0x787   : > { %1582 = vst.msk [vmem:[#allocation5 + $0x18] sm:$0xff] %vm793_vm2, %v1577_v51  ;;  %1588 = vrot.lane.b32.xlu1 %v1584_v52, %s2607_s17  ;;  %v2080_v0 = vpop.f32.mrb[13].mxu1 }
 0x78a   : > { %v1585_v53 = vld [vmem:[#allocation5 + $0x10] sm:$0xff] }
 0x78b   : > { %1592 = vrot.lane.b32.xlu0 %v1585_v53, %s2608_s12 }
 0x78e   : > { %v1586_v54 = vld [vmem:[#allocation5 + $0x18] sm:$0xff] }
 0x78f   : > { %1596 = vrot.lane.b32.xlu1 %v1586_v54, %s2609_s27 }
 0x7f9   : > { %v1589_v55 = vpop.permute.xlu1 %1588 }
 0x7fa   : > { %v1599_v58 = vsel %vm793_vm2, %v1583_v57, %v1589_v55 }
 0x7fd   : > { %v1593_v56 = vpop.permute.xlu0 %1592 }
 0x7fe   : > { %v1601_v59 = vsel %vm1600_vm3, %v1599_v58, %v1593_v56 }
 0x801   : > { %v1597_v60 = vpop.permute.xlu1 %1596 }
 0x802   : > { %v1603_v61 = vsel %vm1602_vm4, %v1601_v59, %v1597_v60 }
 0x803   : > { %2090 = vmatmul.mubr.msk.f32.vlgmr.msra.gmra.mrb[8].mxu0 %vm602_vm1, %v1603_v61 }
 0x804   : > { %2477 = shalt.err (!%p2474_p11)
}
 0x805   : > { %s2478_s14 = scalar_lea.hbm %s3131_s9, 512  ;;  %s2482_s12 = scalar_lea.hbm %s3303_s16, 1024 }
 0x806   : > { %p2479_p5 = scmp.ne.s32.totalorder %s3131_s9, %s2478_s14  ;;  %p2483_p0 = scmp.lt.u32.totalorder %s3131_s9, %s3303_s16 }
 0x807   : > { %p2484_p4 = scmp.lt.u32.totalorder %s2482_s12, %s2478_s14  ;;  %p2486_p13 = scmp.lt.u32.totalorder %s2478_s14, %s3131_s9 }
 0x808   : > { %p2480_p3 = pnand %p2479_p5, %p3304_p2 }
 0x809   : > { %p2485_p10 = por %p2484_p4, %p2483_p0 }
 0x80a   : > { %p2481_p6 = pneg %p2480_p3 }
 0x80b   : > { %p2487_p1 = por %p2486_p13, %p2485_p10 }
 0x80d   : > { %p2488_p12 = pnand %p2487_p1, %p2481_p6 }
 0x80f   : > { %2491 = shalt.err (!%p2488_p12)
}
 0x810   : > { %s2611_s26 = smov 128   ;;  %s3305_s24 = sld [smem:[#allocation39_spill]] }
 0x811   : > { %2139 = dma.vmem_to_hbm [thread:$0]  (%p3304_p2), %s3133_s18, 512, %s3131_s9, %s1695_s29, %s2611_s26, %s2611_s26, %s2607_s17  }
 0x812   : > { %s1966_s13 = sshll.u32 %s3300_s19, 7  ;;  %s578_s1 = scalar_lea.vmem [#allocation18], %s2980_s10 }
 0x813   : > { %s1709_s30 = sshll.u32 %s578_s1, 4  ;;  %s3306_s28 = sld [smem:[#allocation40_spill]]  ;;  %s3170_s30 = int_to_ptr.vmem [resolvable:$true] %s1709_s30 }
 0x814   : > { %s1690_s17 = scalar_lea.sflag [#allocation8], %s2977_s25  ;;  %s2492_s18 = scalar_lea.vmem %s3170_s30, 128 }
 0x815   : > { %p2493_p8 = scmp.ne.s32.totalorder %s3170_s30, %s2492_s18  ;;  %s2612_s10 = smov [#allocation18]  }
 0x816   : > { %v1962_v62 = vld [vmem:[%s3305_s24] ss:$0 sm:$0xff]  ;;  %s2496_s19 = sshll.u32 %s2612_s10, 4  ;;  %s2497_s19 = int_to_ptr.vmem [resolvable:$false] %s2496_s19 }
 0x817   : > { %p2494_p9 = pnand %p2493_p8, %p3304_p2  ;;  %s2498_s9 = scalar_lea.vmem %s2497_s19, 256 }
 0x818   : > { %p2499_p11 = scmp.lt.s32.totalorder %s3170_s30, %s2497_s19  ;;  %p2500_p5 = scmp.lt.s32.totalorder %s2498_s9, %s2492_s18 }
 0x819   : > { %s3168_s12 = scalar_lea.hbm %s3306_s28, %s1966_s13  ;;  %p2495_p7 = pneg %p2494_p9 }
 0x81a   : > { %p2501_p3 = por %p2500_p5, %p2499_p11 }
 0x81c   : > { %p2502_p6 = pnand %p2501_p3, %p2495_p7 }
 0x8d6   : > { %v1684_v63 = vpop.f32.mrb[8].mxu0 }
 0x8d7   : > { %v1685_v2 = vadd.f32 %v1962_v62, %v1684_v63  ;;  %v2091_v3 = vpop.f32.mrb[9].mxu0 }
 0x8d9   : > { %1688 = vst.msk [vmem:[%s578_s1] sm:$0xff] %vm602_vm1, %v1685_v2 }
 0x8da   : > { %2505 = shalt.err (!%p2502_p6)
}
 0x8db   : > { %s2506_s25 = scalar_lea.hbm %s3168_s12, 128  ;;  %s2510_s11 = scalar_lea.hbm %s3306_s28, 256 }
 0x8dc   : > { %p2507_p0 = scmp.ne.s32.totalorder %s3168_s12, %s2506_s25  ;;  %p2511_p13 = scmp.lt.u32.totalorder %s3168_s12, %s3306_s28 }
 0x8dd   : > { %p2512_p1 = scmp.lt.u32.totalorder %s2510_s11, %s2506_s25  ;;  %p2514_p8 = scmp.lt.u32.totalorder %s2506_s25, %s3168_s12 }
 0x8de   : > { %p2508_p4 = pnand %p2507_p0, %p3304_p2 }
 0x8df   : > { %p2513_p12 = por %p2512_p1, %p2511_p13 }
 0x8e0   : > { %p2509_p10 = pneg %p2508_p4 }
 0x8e1   : > { %p2515_p9 = por %p2514_p8, %p2513_p12 }
 0x8e3   : > { %p2516_p7 = pnand %p2515_p9, %p2509_p10 }
 0x8e5   : > { %2519 = shalt.err (!%p2516_p7)
}
 0x8e6   : > { %2138 = dma.vmem_to_hbm [thread:$0]  (%p3304_p2), %s3170_s30, 128, %s3168_s12, %s1690_s17  }
 0x8e7 PF: > { %s3307_s21 = sld [smem:[#allocation27_spill]]  ;;  %s3308_s24 = sld [smem:[#allocation34_spill]] }
 0x8e8   : > { %s3309_s13 = sld [smem:[#allocation30_spill]] }
 0x8ed   : > { %s1738_s1 = sand.u32 1, %s3307_s21   ;;  %p3310_p11 = scmp.ne.s32.totalorder %s3308_s24, 0 }
 0x8ee   : > { %p3311_p5 = scmp.ge.s32.totalorder %s3309_s13, 2  ;;  %s1739_s14 = scalar_lea.sflag [#allocation8], %s1738_s1 }
 0x8f0   : > { %p2166_p3 = pnand %p3311_p5, %p3310_p11 }
 0x8f2   : > { %2561 = dma.done.wait (!%p2166_p3), %s1739_s14, 128  }
 0x8f3   : > { %2563 = vsyncadd (!%p2166_p3), %s1739_s14, 4294967168  ;;  %s1748_s7 = scalar_lea.sflag [#allocation20], %s1738_s1 }
 0x8f4   : > { %2565 = dma.done.wait (!%p2166_p3), %s1748_s7, 512  }
 0x8f5   : > { %2567 = vsyncadd (!%p2166_p3), %s1748_s7, 4294966784  ;;  %s37_s26 = sadd.s32 1, %s3309_s13   ;;  %s3312_s20 = sld [smem:[#allocation33_spill]] }
 0x8f6   : > { %p34_p6 = scmp.ge.s32.totalorder %s37_s26, 4   ;;  %s3313_s24 = sld [smem:[#allocation29_spill]] }
 0x8f7   : > { %s3314_s25 = sld [smem:[#allocation31_spill]]  ;;  %s3315_s21 = smov %s2574_s22 }
 0x8f8   : > { %s3316_s22 = smov %s2578_s23  ;;  %36 = sbr.rel (!%p34_p6) target bundleno = 20 (0x14), region = 191 }
 0x8fb   : > { %s3317_s23 = smov %s3312_s20 }
 0x8ff   :  { %1753 = vsyncpa [#allocation7], 1 }
 0x900   :  { %1755 = vsyncpa [#allocation7 + $0x1], 1 }
 0x901   :  { %1756 = vsyncpa [#allocation10], 1 }
 0x902   :  { %1758 = vsyncpa [#allocation10 + $0x1], 1 }
 0x903   :  { %1759 = vsyncpa [#allocation13], 1 }
 0x904   :  { %1760 = vsyncpa [#allocation16], 1 }
 0x905   :  { %1761 = vsyncpa [#allocation8], 1 }
 0x906   :  { %1763 = vsyncpa [#allocation8 + $0x1], 1 }
 0x907   :  { %1764 = vsyncpa [#allocation20], 1 }
 0x908   :  { %1766 = vsyncpa [#allocation20 + $0x1], 1 }

// kernel: tpu_custom_call.1
= control target key start
LH: loop header
LB: loop body
LE: loop exit
PB: predicated region body
PF: predicated region fallthrough
CT: control target
= control target key end

     0   :  { %s3218_s0 = inlined_call_operand.hbm [shape: f32[2,8,32], index: 0, kind: input, shape index: {}]   ;;  %s3219_s1 = inlined_call_operand.hbm [shape: f32[2,8,32], index: 1, kind: input, shape index: {}]   ;;  %s3220_s2 = inlined_call_operand.hbm [shape: f32[2,8,32], index: 2, kind: input, shape index: {}]   ;;  %s3221_s3 = inlined_call_operand.hbm [shape: f32[32,32], index: 3, kind: input, shape index: {}]   ;;  %s3222_s4 = inlined_call_operand.vmem [shape: f32[1,32], index: 4, kind: input, shape index: {}]   ;;  %s3223_s5 = inlined_call_operand.hbm [shape: f32[32,32], index: 5, kind: input, shape index: {}]   ;;  %s3224_s6 = inlined_call_operand.vmem [shape: f32[1,32], index: 6, kind: input, shape index: {}]   ;;  %s3225_s7 = inlined_call_operand.hbm [shape: f32[32,32], index: 7, kind: input, shape index: {}]   ;;  %s3226_s8 = inlined_call_operand.hbm [shape: f32[1,32], index: 8, kind: input, shape index: {}]   ;;  %s3227_s9 = inlined_call_operand.vmem [shape: f32[32,32], index: 9, kind: input, shape index: {}]   ;;  %s3228_s10 = inlined_call_operand.vmem [shape: f32[1,32], index: 10, kind: input, shape index: {}]   ;;  %s3229_s11 = inlined_call_operand.hbm [shape: f32[2,8,32], index: 11, kind: output, shape index: {0}]   ;;  %s3230_s12 = inlined_call_operand.hbm [shape: f32[2,4,8,8], index: 12, kind: output, shape index: {1}]  }
   0x1   :  { %3258 = sst [smem:[#allocation35_spill]] %s3219_s1 }
   0x2   :  { %3259 = sst [smem:[#allocation36_spill]] %s3221_s3 }
   0x3   :  { %3260 = sst [smem:[#allocation37_spill]] %s3225_s7 }
   0x4   :  { %3261 = sst [smem:[#allocation38_spill]] %s3227_s9 }
   0x5   :  { %3262 = sst [smem:[#allocation39_spill]] %s3228_s10 }
   0x6   :  { %3263 = sst [smem:[#allocation40_spill]] %s3229_s11 }
   0x7   :  { %3264 = sst [smem:[#allocation41_spill]] %s3230_s12 }
   0x8   :  { %18 = vsyncpa [#allocation7], 0 }
   0x9   :  { %20 = vsyncpa [#allocation7 + $0x1], 0 }
   0xa   :  { %21 = vsyncpa [#allocation10], 0 }
   0xb   :  { %23 = vsyncpa [#allocation10 + $0x1], 0 }
   0xc   :  { %24 = vsyncpa [#allocation13], 0 }
   0xd   :  { %25 = vsyncpa [#allocation16], 0 }
   0xe   :  { %26 = vsyncpa [#allocation8], 0 }
   0xf   :  { %28 = vsyncpa [#allocation8 + $0x1], 0 }
  0x10   :  { %29 = vsyncpa [#allocation20], 0 }
  0x11   :  { %31 = vsyncpa [#allocation20 + $0x1], 0  ;;  %s2678_s21 = smov 0   ;;  %s2680_s22 = smov 0  }
  0x12   :  { %s2682_s23 = smov 0   ;;  %s2684_s24 = smov 0  }
  0x13   :  { %s2686_s25 = smov 0   ;;  %s2688_s26 = smov 0  }
  0x14 LB: > { %3265 = sst [smem:[#allocation27_spill]] %s2570_s21  ;;  %s2709_s27 = sadd.s32 4294967295, %s2590_s26   ;;  %s2590_s26 = sphi %s2688_s26, %s37_s26   ;;  %s2586_s25 = sphi %s2686_s25, %s3314_s25   ;;  %s2582_s24 = sphi %s2684_s24, %s3313_s24   ;;  %s2578_s23 = sphi %s2682_s23, %s3317_s23   ;;  %s2574_s22 = sphi %s2680_s22, %s3316_s22   ;;  %s2570_s21 = sphi %s2678_s21, %s3315_s21  }
  0x15   : > { %3266 = sst [smem:[#allocation28_spill]] %s2582_s24  ;;  %p1923_p0 = scmp.ge.s32.totalorder %s2590_s26, 1 }
  0x16   : > { %3267 = sst [smem:[#allocation29_spill]] %s2586_s25  ;;  %p3242_p1 = scmp.eq.s32.totalorder %s2709_s27, 0 }
  0x17   : > { %3268 = sst [smem:[#allocation30_spill]] %s2590_s26  ;;  %p358_p2 = scmp.lt.s32.totalorder %s2590_s26, 3 }
  0x18   : > { %s2592_s29 = smov [#allocation12]   ;;  %s2593_s14 = smov [#allocation15]  }
  0x19   : > { %p2714_p3 = pnand %p1923_p0, %p358_p2  ;;  %s370_s30 = sshll.u32 %s2592_s29, 4  ;;  %s2718_s30 = int_to_ptr.vmem [resolvable:$true] %s370_s30 }
  0x1a   : > { %s402_s15 = sshll.u32 %s2593_s14, 4  ;;  %s3271_s3 = sld [smem:[#allocation36_spill]]  ;;  %s2729_s15 = int_to_ptr.vmem [resolvable:$true] %s402_s15 }
  0x1b   : > { %s3269_s28 = scalar_select %p2714_p3, 1, 0 }
  0x1c   : > { %p2142_p4 = pneg %p2714_p3 }
  0x1e   : > { %p2725_p6 = pnand %p2142_p4, %p3242_p1 }
  0x20   : > { %s3270_s13 = scalar_select %p2725_p6, 1, 0 }
  0x21   : > { %s2262_s18 = scalar_lea.hbm %s3271_s3, 512  ;;  %p2739_p8 = pneg %p2725_p6 }
  0x22   : > { %p2263_p7 = scmp.ne.s32.totalorder %s3271_s3, %s2262_s18  ;;  %p2269_p11 = scmp.lt.u32.totalorder %s2262_s18, %s3271_s3 }
  0x23   : > { %s3272_s29 = scalar_select %p2739_p8, 1, 0 }
  0x24   : > { %p2265_p9 = pnand %p2739_p8, %p2263_p7 }
  0x26   : > { %p2266_p10 = pneg %p2265_p9 }
  0x28   : > { %p2271_p12 = pnand %p2269_p11, %p2266_p10 }
  0x2a   : > { %2274 = shalt.err (!%p2271_p12)
}
  0x2b   : > { %s2275_s16 = scalar_lea.vmem %s2718_s30, 512  ;;  %p2283_p4 = scmp.lt.s32.totalorder %s2718_s30, %s2718_s30 }
  0x2c   : > { %p2276_p13 = scmp.ne.s32.totalorder %s2718_s30, %s2275_s16  ;;  %p2284_p5 = scmp.lt.s32.totalorder %s2275_s16, %s2275_s16 }
  0x2e   : > { %p2278_p0 = pnand %p2276_p13, %p2739_p8  ;;  %p2285_p7 = por %p2284_p5, %p2283_p4 }
  0x30   : > { %p2279_p2 = pneg %p2278_p0 }
  0x32   : > { %p2286_p9 = pnand %p2285_p7, %p2279_p2 }
  0x34   : > { %2289 = shalt.err (!%p2286_p9)
}
  0x35   : > { %s3235_s17 = smov 128   ;;  %s3236_s11 = smov 8  }
  0x36   : > { %2145 = dma.hbm_to_vmem [thread:$0]  (!%p2725_p6), %s3271_s3, 512, %s2718_s30, [#allocation13], %s3235_s17, %s3235_s17, %s3236_s11  }
  0x37   : > { %s3273_s7 = sld [smem:[#allocation37_spill]] }
  0x3d   : > { %s2290_s16 = scalar_lea.hbm %s3273_s7, 512 }
  0x3e   : > { %p2291_p5 = scmp.ne.s32.totalorder %s3273_s7, %s2290_s16  ;;  %p2297_p12 = scmp.lt.u32.totalorder %s2290_s16, %s3273_s7 }
  0x40   : > { %p2293_p10 = pnand %p2291_p5, %p2739_p8 }
  0x42   : > { %p2294_p11 = pneg %p2293_p10 }
  0x44   : > { %p2299_p13 = pnand %p2297_p12, %p2294_p11 }
  0x46   : > { %2302 = shalt.err (!%p2299_p13)
}
  0x47   : > { %s2303_s30 = scalar_lea.vmem %s2729_s15, 512  ;;  %p2311_p7 = scmp.lt.s32.totalorder %s2729_s15, %s2729_s15 }
  0x48   : > { %p2304_p0 = scmp.ne.s32.totalorder %s2729_s15, %s2303_s30  ;;  %p2312_p9 = scmp.lt.s32.totalorder %s2303_s30, %s2303_s30 }
  0x4a   : > { %p2306_p2 = pnand %p2304_p0, %p2739_p8  ;;  %p2313_p5 = por %p2312_p9, %p2311_p7 }
  0x4c   : > { %p2307_p4 = pneg %p2306_p2 }
  0x4e   : > { %p2314_p10 = pnand %p2313_p5, %p2307_p4 }
  0x50   : > { %2317 = shalt.err (!%p2314_p10)
}
  0x51   : > { %2151 = dma.hbm_to_vmem [thread:$0]  (!%p2725_p6), %s3273_s7, 512, %s2729_s15, [#allocation16], %s3235_s17, %s3235_s17, %s3236_s11  }
  0x52   : > { %s1922_s12 = sadd.s32 4294967294, %s2590_s26   ;;  %s49_s24 = sadd.s32 1, %s2586_s25 }
  0x53   : > { %p51_p11 = scmp.ge.s32.totalorder %s49_s24, 2  ;;  %s58_s18 = sadd.s32 1, %s2578_s23 }
  0x54   : > { %p65_p12 = scmp.ne.s32.totalorder %s2578_s23, %s2574_s22  ;;  %p66_p13 = scmp.eq.s32.totalorder %s2590_s26, 0 }
  0x55   : > { %s3319_s24 = smov (%p51_p11, %s49_s24), 0  ;;  %p71_p2 = scmp.ne.s32.totalorder %s2574_s22, %s2570_s21 }
  0x56   : > { %3274 = sst [smem:[#allocation31_spill]] %s3319_s24  ;;  %p2797_p0 = por %p66_p13, %p65_p12 }
  0x57   : > { %s53_s15 = ssub.s32 %s2586_s25, %s3319_s24  ;;  %p317_p4 = scmp.eq.s32.totalorder %s2709_s27, 1 }
  0x58   : > { %p56_p7 = scmp.eq.s32.totalorder %s53_s15, 0  ;;  %p2808_p9 = por %p3242_p1, %p71_p2 }
  0x59   : > { %p2812_p5 = por %p317_p4, %p65_p12  ;;  %p323_p10 = scmp.eq.s32.totalorder %s1922_s12, 1 }
  0x5a   : > { %s3276_s20 = scalar_select %p2808_p9, 1, 0 }
  0x5b   : > { %s3277_s14 = scalar_select %p2812_p5, 1, 0 }
  0x5c   : > { %s2817_s16 = scalar_select %p56_p7, %s2578_s23, %s58_s18  }
  0x5d   : > { %3278 = sst [smem:[#allocation32_spill]] %s3277_s14  ;;  %p2819_p11 = por %p323_p10, %p71_p2 }
  0x5e   : > { %3279 = sst [smem:[#allocation33_spill]] %s2817_s16  ;;  %p2176_p13 = scmp.lt.s32.totalorder %s2590_s26, 2 }
  0x5f   : > { %s3280_s30 = scalar_select %p2819_p11, 1, 0 }
  0x60   : > { %s3237_s9 = sand.u32 1, %s2578_s23   ;;  %s2826_s10 = sshll.u32 %s2586_s25, 7 }
  0x61   : > { %3281 = sst [smem:[#allocation34_spill]] %s3280_s30  ;;  %s2830_s15 = sshll.u32 %s3237_s9, 3 }
  0x62   : > { %p2834_p12 = pnand %p2176_p13, %p2797_p0  ;;  %s452_s12 = sand.u32 1, %s2590_s26  }
  0x63   : > { %s3283_s1 = sld [smem:[#allocation35_spill]]  ;;  %s456_s7 = scalar_lea.vmem [#allocation9], %s2830_s15 }
  0x64   : > { %s3282_s17 = scalar_select %p2834_p12, 1, 0 }
  0x65   : > { %s463_s9 = sshll.u32 %s456_s7, 4  ;;  %s2848_s19 = scalar_lea.sflag [#allocation10], %s452_s12  ;;  %s2846_s9 = int_to_ptr.vmem [resolvable:$true] %s463_s9 }
  0x66   : > { %p2854_p2 = pneg %p2834_p12 }
  0x68   : > { %s3284_s25 = scalar_select %p2854_p2, 1, 0 }
  0x69   : > { %s2843_s3 = scalar_lea.hbm %s3283_s1, %s2826_s10  ;;  %s2323_s16 = scalar_lea.hbm %s3283_s1, 256 }
  0x6a   : > { %s2318_s24 = scalar_lea.hbm %s2843_s3, 128  ;;  %p2324_p10 = scmp.lt.u32.totalorder %s2843_s3, %s3283_s1 }
  0x6b   : > { %p2319_p0 = scmp.ne.s32.totalorder %s2843_s3, %s2318_s24  ;;  %p2325_p13 = scmp.lt.u32.totalorder %s2323_s16, %s2318_s24 }
  0x6c   : > { %p2327_p11 = scmp.lt.u32.totalorder %s2318_s24, %s2843_s3 }
  0x6d   : > { %p2321_p4 = pnand %p2854_p2, %p2319_p0  ;;  %p2326_p1 = por %p2325_p13, %p2324_p10 }
  0x6f   : > { %p2322_p7 = pneg %p2321_p4  ;;  %p2328_p5 = por %p2327_p11, %p2326_p1 }
  0x71   : > { %p2329_p9 = pnand %p2328_p5, %p2322_p7 }
  0x73   : > { %2332 = shalt.err (!%p2329_p9)
}
  0x74   : > { %s2333_s12 = scalar_lea.vmem %s2846_s9, 128  ;;  %s2596_s11 = smov [#allocation9]  }
  0x75   : > { %p2334_p0 = scmp.ne.s32.totalorder %s2846_s9, %s2333_s12  ;;  %s2338_s18 = sshll.u32 %s2596_s11, 4  ;;  %s2339_s18 = int_to_ptr.vmem [resolvable:$false] %s2338_s18 }
  0x76   : > { %s2340_s26 = scalar_lea.vmem %s2339_s18, 256  ;;  %p2341_p6 = scmp.lt.s32.totalorder %s2846_s9, %s2339_s18 }
  0x77   : > { %p2336_p4 = pnand %p2334_p0, %p2854_p2  ;;  %p2342_p8 = scmp.lt.s32.totalorder %s2340_s26, %s2333_s12 }
  0x79   : > { %p2337_p3 = pneg %p2336_p4  ;;  %p2343_p10 = por %p2342_p8, %p2341_p6 }
  0x7b   : > { %p2344_p13 = pnand %p2343_p10, %p2337_p3 }
  0x7d   : > { %2347 = shalt.err (!%p2344_p13)
}
  0x7e   : > { %2161 = dma.hbm_to_vmem [thread:$0]  (!%p2834_p12), %s2843_s3, 128, %s2846_s9, %s2848_s19  }
  0x7f   : > { %s2597_s24 = smov [#allocation14]   ;;  %s2598_s7 = smov [#allocation17]  }
  0x80   : > { %s386_s16 = sshll.u32 %s2597_s24, 4  ;;  %s416_s1 = sshll.u32 %s2598_s7, 4  ;;  %s387_s16 = int_to_ptr.vmem [resolvable:$true] %s386_s16  ;;  %s417_s1 = int_to_ptr.vmem [resolvable:$true] %s416_s1 }
  0x81   : > { %s2348_s18 = scalar_lea.hbm %s3223_s5, 512  ;;  %p3285_p3 = scmp.ne.s32.totalorder %s3272_s29, 0 }
  0x82   : > { %p2349_p1 = scmp.ne.s32.totalorder %s3223_s5, %s2348_s18  ;;  %p2355_p9 = scmp.lt.u32.totalorder %s2348_s18, %s3223_s5 }
  0x84   : > { %p2351_p6 = pnand %p2349_p1, %p3285_p3 }
  0x86   : > { %p2352_p8 = pneg %p2351_p6 }
  0x88   : > { %p2357_p5 = pnand %p2355_p9, %p2352_p8 }
  0x8a   : > { %2360 = shalt.err (!%p2357_p5)
}
  0x8b   : > { %s2361_s3 = scalar_lea.vmem %s387_s16, 512  ;;  %p2369_p4 = scmp.lt.s32.totalorder %s387_s16, %s387_s16 }
  0x8c   : > { %p2362_p11 = scmp.ne.s32.totalorder %s387_s16, %s2361_s3  ;;  %p2370_p10 = scmp.lt.s32.totalorder %s2361_s3, %s2361_s3 }
  0x8e   : > { %p2364_p7 = pnand %p2362_p11, %p3285_p3  ;;  %p2371_p13 = por %p2370_p10, %p2369_p4 }
  0x90   : > { %p2365_p0 = pneg %p2364_p7 }
  0x92   : > { %p2372_p12 = pnand %p2371_p13, %p2365_p0 }
  0x94   : > { %2375 = shalt.err (!%p2372_p12)
}
  0x95   : > { %p3286_p1 = scmp.ne.s32.totalorder %s3270_s13, 0  ;;  %s3287_s30 = smov 8  }
  0x96   : > { %s3288_s9 = smov 128   ;;  %s2376_s11 = scalar_lea.hbm %s3226_s8, 16 }
  0x97   : > { %2148 = dma.hbm_to_vmem [thread:$0]  (!%p3286_p1), %s3223_s5, 512, %s387_s16, [#allocation13], %s3288_s9, %s3288_s9, %s3287_s30  }
  0x98   : > { %p2377_p6 = scmp.ne.s32.totalorder %s3226_s8, %s2376_s11  ;;  %p2383_p9 = scmp.lt.u32.totalorder %s2376_s11, %s3226_s8 }
  0x9a   : > { %p2379_p12 = pnand %p2377_p6, %p3285_p3 }
  0x9c   : > { %p2380_p8 = pneg %p2379_p12 }
  0x9e   : > { %p2385_p5 = pnand %p2383_p9, %p2380_p8 }
  0xa0   : > { %2388 = shalt.err (!%p2385_p5)
}
  0xa1   : > { %s2389_s21 = scalar_lea.vmem %s417_s1, 16  ;;  %s2396_s16 = scalar_lea.vmem %s417_s1, 32 }
  0xa2   : > { %p2390_p11 = scmp.ne.s32.totalorder %s417_s1, %s2389_s21  ;;  %p2397_p4 = scmp.lt.s32.totalorder %s417_s1, %s417_s1 }
  0xa3   : > { %p2398_p10 = scmp.lt.s32.totalorder %s2396_s16, %s2389_s21 }
  0xa4   : > { %p2392_p7 = pnand %p2390_p11, %p3285_p3 }
  0xa5   : > { %p2399_p13 = por %p2398_p10, %p2397_p4 }
  0xa6   : > { %p2393_p0 = pneg %p2392_p7 }
  0xa8   : > { %p2400_p2 = pnand %p2399_p13, %p2393_p0 }
  0xaa   : > { %2403 = shalt.err (!%p2400_p2)
}
  0xab   : > { %2154 = dma.hbm_to_vmem [thread:$0]  (!%p3286_p1), %s3226_s8, 16, %s417_s1, [#allocation16]  }
  0xac   : > { %s2921_s24 = scalar_lea.hbm %s3218_s0, %s2826_s10  ;;  %s437_s7 = scalar_lea.vmem [#allocation6], %s2830_s15 }
  0xad   : > { %s445_s13 = sshll.u32 %s437_s7, 4  ;;  %s2930_s12 = scalar_lea.hbm %s3220_s2, %s2826_s10  ;;  %s2924_s13 = int_to_ptr.vmem [resolvable:$true] %s445_s13 }
  0xae   : > { %s3289_s26 = sand.u32 1, %s2578_s23   ;;  %s2404_s3 = scalar_lea.hbm %s2921_s24, 128 }
  0xaf   : > { %s434_s1 = scalar_lea.sflag [#allocation7], %s3289_s26  ;;  %p2405_p2 = scmp.ne.s32.totalorder %s2921_s24, %s2404_s3 }
  0xb0   : > { %p3290_p3 = scmp.ne.s32.totalorder %s3284_s25, 0  ;;  %s2409_s30 = scalar_lea.hbm %s3218_s0, 256 }
  0xb1   : > { %p2410_p12 = scmp.lt.u32.totalorder %s2921_s24, %s3218_s0  ;;  %p2411_p8 = scmp.lt.u32.totalorder %s2409_s30, %s2404_s3 }
  0xb2   : > { %p2407_p1 = pnand %p2405_p2, %p3290_p3  ;;  %p2413_p5 = scmp.lt.u32.totalorder %s2404_s3, %s2921_s24 }
  0xb3   : > { %p2412_p9 = por %p2411_p8, %p2410_p12 }
  0xb4   : > { %p2408_p6 = pneg %p2407_p1 }
  0xb5   : > { %p2414_p11 = por %p2413_p5, %p2412_p9 }
  0xb7   : > { %p2415_p7 = pnand %p2414_p11, %p2408_p6 }
  0xb9   : > { %2418 = shalt.err (!%p2415_p7)
}
  0xba   : > { %s2419_s10 = scalar_lea.vmem %s2924_s13, 128  ;;  %s2599_s14 = smov [#allocation6]  }
  0xbb   : > { %p2420_p0 = scmp.ne.s32.totalorder %s2924_s13, %s2419_s10  ;;  %s2424_s7 = sshll.u32 %s2599_s14, 4  ;;  %s2425_s7 = int_to_ptr.vmem [resolvable:$false] %s2424_s7 }
  0xbc   : > { %s2426_s11 = scalar_lea.vmem %s2425_s7, 256  ;;  %p2427_p13 = scmp.lt.s32.totalorder %s2924_s13, %s2425_s7 }
  0xbd   : > { %p2422_p4 = pnand %p2420_p0, %p3290_p3  ;;  %p2428_p2 = scmp.lt.s32.totalorder %s2426_s11, %s2419_s10 }
  0xbf   : > { %p2423_p10 = pneg %p2422_p4  ;;  %p2429_p1 = por %p2428_p2, %p2427_p13 }
  0xc1   : > { %p2430_p12 = pnand %p2429_p1, %p2423_p10 }
  0xc3   : > { %2433 = shalt.err (!%p2430_p12)
}
  0xc4   : > { %p3291_p6 = scmp.ne.s32.totalorder %s3282_s17, 0  ;;  %s474_s18 = scalar_lea.vmem [#allocation11], %s2830_s15 }
  0xc5   : > { %s481_s26 = sshll.u32 %s474_s18, 4  ;;  %s2434_s3 = scalar_lea.hbm %s2930_s12, 128  ;;  %s482_s26 = int_to_ptr.vmem [resolvable:$true] %s481_s26 }
  0xc6   : > { %2158 = dma.hbm_to_vmem [thread:$0]  (!%p3291_p6), %s2921_s24, 128, %s2924_s13, %s434_s1  }
  0xc7   : > { %p2435_p8 = scmp.ne.s32.totalorder %s2930_s12, %s2434_s3  ;;  %s2439_s30 = scalar_lea.hbm %s3220_s2, 256 }
  0xc8   : > { %p2440_p11 = scmp.lt.u32.totalorder %s2930_s12, %s3220_s2  ;;  %p2441_p7 = scmp.lt.u32.totalorder %s2439_s30, %s2434_s3 }
  0xc9   : > { %p2437_p9 = pnand %p2435_p8, %p3290_p3  ;;  %p2443_p4 = scmp.lt.u32.totalorder %s2434_s3, %s2930_s12 }
  0xca   : > { %p2442_p0 = por %p2441_p7, %p2440_p11 }
  0xcb   : > { %p2438_p5 = pneg %p2437_p9 }
  0xcc   : > { %p2444_p10 = por %p2443_p4, %p2442_p0 }
  0xce   : > { %p2445_p13 = pnand %p2444_p10, %p2438_p5 }
  0xd0   : > { %2448 = shalt.err (!%p2445_p13)
}
  0xd1   : > { %s2449_s15 = scalar_lea.vmem %s482_s26, 128  ;;  %s2600_s24 = smov [#allocation11]  }
  0xd2   : > { %p2450_p2 = scmp.ne.s32.totalorder %s482_s26, %s2449_s15  ;;  %s2454_s13 = sshll.u32 %s2600_s24, 4  ;;  %s2455_s13 = int_to_ptr.vmem [resolvable:$false] %s2454_s13 }
  0xd3   : > { %s2456_s1 = scalar_lea.vmem %s2455_s13, 256  ;;  %p2457_p8 = scmp.lt.s32.totalorder %s482_s26, %s2455_s13 }
  0xd4   : > { %p2452_p1 = pnand %p2450_p2, %p3290_p3  ;;  %p2458_p9 = scmp.lt.s32.totalorder %s2456_s1, %s2449_s15 }
  0xd6   : > { %p2453_p12 = pneg %p2452_p1  ;;  %p2459_p6 = por %p2458_p9, %p2457_p8 }
  0xd8   : > { %p2460_p7 = pnand %p2459_p6, %p2453_p12 }
  0xda   : > { %2463 = shalt.err (!%p2460_p7)
}
  0xdb   : > { %p3292_p11 = scmp.ne.s32.totalorder %s3282_s17, 0  ;;  %p3293_p5 = scmp.ne.s32.totalorder %s3269_s28, 0 }
  0xdc   : > { %s2977_s25 = sand.u32 (!%p3293_p5), 1, %s2574_s22   ;;  %p3294_p3 = scmp.ne.s32.totalorder (!%p3293_p5), %s3276_s20, 0 }
  0xdd   : > { %2164 = dma.hbm_to_vmem [thread:$0]  (!%p3292_p11), %s2930_s12, 128, %s482_s26, %s2848_s19  }
  0xde   : > { %490 = sbr.rel (%p3293_p5) target bundleno = 2279 (0x8e7), region = 64  ;;  %s2980_s10 = sshll.u32 (!%p3293_p5), %s2977_s25, 3 }
  0xdf   : > { %s493_s14 = scalar_lea.sflag (!%p3293_p5), [#allocation7], %s2977_s25  ;;  %s496_s7 = scalar_lea.vmem (!%p3293_p5), [#allocation6], %s2980_s10 }
  0xe5   : > { %2545 = dma.done.wait (%p3294_p3), %s493_s14, 128  }
  0xe6   : > { %2547 = vsyncadd (%p3294_p3), %s493_s14, 4294967168  ;;  %s501_s28 = sand.u32 1, %s2709_s27   ;;  %s505_s19 = scalar_lea.vmem [#allocation9], %s2980_s10 }
  0xe7   : > { %s502_s17 = scalar_lea.sflag [#allocation10], %s501_s28 }
  0xe8   : > { %2549 = dma.done.wait (%p3294_p3), %s502_s17, 256  }
  0xe9   : > { %2551 = vsyncadd (%p3294_p3), %s502_s17, 4294967040  ;;  %s514_s12 = scalar_lea.vmem [#allocation11], %s2980_s10  ;;  %p3295_p6 = scmp.eq.s32.totalorder %s2709_s27, 0 }
  0xeb   : > { %2553 = dma.done.wait (%p3295_p6), [#allocation13], 1024   ;;  %p3296_p0 = pmov %p3295_p6 }
  0xed   : > { %2555 = vsyncadd (%p3296_p0), [#allocation13], 4294966272  ;;  %p3297_p4 = pmov %p3296_p0 }
  0xee   : > { %p3298_p10 = pmov %p3296_p0 }
  0xef   : > { %2557 = dma.done.wait (%p3297_p4), [#allocation16], 528  }
  0xf0   : > { %2559 = vsyncadd (%p3298_p10), [#allocation16], 4294966768  ;;  %v2601_v0 = vmov 0.0|0.0   ;;  %vm2602_vm0 = vmmov 0   ;;  %v2603_v1 = vmov 0.0   ;;  %v591_v2 = vld [vmem:[#allocation14] sm:$0xff] }
  0xf1   : > { %2092 = vmatprep.subr.bf16.mxu0 %v2601_v0  ;;  %2016 = vmatprep.mubr.msk.f32.mxu0 %vm2602_vm0, %v2603_v1  ;;  %v592_v3 = vld [vmem:[#allocation14 + $0x8] sm:$0xff]  ;;  %v593_v4 = vld [vmem:[#allocation14 + $0x10] sm:$0xff]  ;;  %v594_v6 = vld [vmem:[#allocation14 + $0x18] sm:$0xff]  ;;  %vm602_vm1 = vcmask 261120   ;;  %vm793_vm2 = vcmask 64512   ;;  %s2604_s26 = smov 120  }
  0xf2   : > { %2098 = vmatprep.subr.bf16.mxu1 %v2601_v0  ;;  %2027 = vmatprep.mubr.msk.f32.mxu1 %vm2602_vm0, %v2603_v1  ;;  %v2093_v5 = vpack.c.bf16 %v592_v3, %v591_v2  ;;  %v2096_v7 = vpack.c.bf16 %v594_v6, %v593_v4  ;;  %v819_v8 = vld [vmem:[#allocation12] sm:$0xff]  ;;  %v820_v9 = vld [vmem:[#allocation12 + $0x8] sm:$0xff]  ;;  %v821_v12 = vld [vmem:[#allocation12 + $0x10] sm:$0xff]  ;;  %s2605_s3 = smov 112   ;;  %s2606_s21 = smov 104   ;;  %vm1600_vm3 = vcmask 130048  }
  0xf3   : > { %v590_v10 = vld [vmem:[%s505_s19] sm:$0xff]  ;;  %v2105_v11 = vpack.c.bf16 %v820_v9, %v819_v8  ;;  %v822_v13 = vld [vmem:[#allocation12 + $0x18] sm:$0xff]  ;;  %v1945_v19 = vld [vmem:[%s3224_s6] ss:$0 sm:$0xff]  ;;  %s1944_s16 = sshll.u32 %s2977_s25, 5  ;;  %s3299_s15 = sld [smem:[#allocation38_spill]] }
  0xf4   : > { %2094 = vmatpush3.bf16.msra.mxu0 %v2093_v5  ;;  %v2108_v14 = vpack.c.bf16 %v822_v13, %v821_v12  ;;  %v818_v15 = vld [vmem:[%s496_s7] sm:$0xff]  ;;  %v677_v16 = vld [vmem:[#allocation15] sm:$0xff]  ;;  %v678_v17 = vld [vmem:[#allocation15 + $0x8] sm:$0xff]  ;;  %s3064_s30 = scalar_lea.vmem [#allocation19], %s1944_s16  ;;  %s2607_s17 = smov 8   ;;  %vm1602_vm4 = vcmask 195584  }
  0xf5   : > { %2095 = vmatprep.subr.bf16.mxu0 %v2601_v0  ;;  %v2099_v18 = vpack.c.bf16 %v678_v17, %v677_v16  ;;  %v679_v23 = vld [vmem:[#allocation15 + $0x10] sm:$0xff]  ;;  %v680_v24 = vld [vmem:[#allocation15 + $0x18] sm:$0xff]  ;;  %v1947_v41 = vld [vmem:[#allocation17] ss:$0 sm:$0xff]  ;;  %s3300_s19 = sld [smem:[#allocation28_spill]]  ;;  %s2609_s27 = smov 24  }
  0xf6   : > { %v2102_v25 = vpack.c.bf16 %v680_v24, %v679_v23  ;;  %v1949_v26 = vld [vmem:[%s3222_s4] ss:$0 sm:$0xff]  ;;  %s3301_s20 = sld [smem:[#allocation32_spill]]  ;;  %s1723_s18 = sshll.u32 %s3064_s30, 4  ;;  %s3133_s18 = int_to_ptr.vmem [resolvable:$true] %s1723_s18 }
  0xf7   : > { %2100 = vmatpush3.bf16.msra.mxu1 %v2099_v18  ;;  %v676_v27 = vld [vmem:[%s514_s12] sm:$0xff]  ;;  %s2608_s12 = smov 16   ;;  %s1695_s29 = scalar_lea.sflag [#allocation20], %s2977_s25 }
  0xf8   : > { %2097 = vmatpush3.bf16.msra.mxu0 %v2096_v7  ;;  %2101 = vmatprep.subr.bf16.mxu1 %v2601_v0  ;;  %s2464_s24 = scalar_lea.vmem %s3133_s18, 512  ;;  %s2610_s13 = smov [#allocation19]  }
  0xf9   : > { %2104 = vmatprep.subr.bf16.mxu0 %v2601_v0  ;;  %p2465_p13 = scmp.ne.s32.totalorder %s3133_s18, %s2464_s24  ;;  %s2468_s1 = sshll.u32 %s2610_s13, 4  ;;  %s2469_s1 = int_to_ptr.vmem [resolvable:$false] %s2468_s1 }
  0xfa   : > { %p2471_p8 = scmp.lt.s32.totalorder %s3133_s18, %s2469_s1 }
  0xfb   : > { %2017 = vmatmul.mubr.msk.f32.vlgmr.msra.gmra.mrb[0].mxu0 %vm602_vm1, %v590_v10  ;;  %2103 = vmatpush3.bf16.msra.mxu1 %v2102_v25  ;;  %s1971_s11 = sshll.u32 %s3300_s19, 9 }
  0xfc   : > { %2106 = vmatpush3.bf16.msra.mxu0 %v2105_v11  ;;  %2038 = vmatprep.mubr.msk.f32.mxu0 %vm2602_vm0, %v2603_v1  ;;  %p3304_p2 = scmp.ne.s32.totalorder %s3301_s20, 0 }
  0xfd   : > { %2107 = vmatprep.subr.bf16.mxu0 %v2601_v0  ;;  %2041 = vmatprep.subr.mxu1 %v2603_v1 }
  0xfe   : > { %2028 = vmatmul.mubr.msk.f32.vlgmr.msra.gmra.mrb[0].mxu1 %vm602_vm1, %v676_v27  ;;  %p2466_p1 = pnand %p2465_p13, %p3304_p2 }
  0xff   : > { %2043 = vmatprep.mubr.msk.f32.mxu1 %vm2602_vm0, %v2603_v1 }
 0x100   : > { %2109 = vmatpush3.bf16.msra.mxu0 %v2108_v14  ;;  %p2467_p12 = pneg %p2466_p1 }
 0x101   : > { %2061 = vmatprep.subr.mxu0 %v2603_v1 }
 0x103   : > { %2039 = vmatmul.mubr.msk.f32.vlgmr.msra.gmra.mrb[2].mxu0 %vm602_vm1, %v818_v15 }
 0x104   : > { %2063 = vmatprep.mubr.msk.f32.mxu0 %vm2602_vm0, %v2603_v1 }
 0x1ce   : > { %v672_v20 = vpop.f32.mrb[0].mxu0 }
 0x1cf   : > { %v2018_v21 = vpop.f32.mrb[1].mxu0  ;;  %v673_v22 = vadd.f32 %v1945_v19, %v672_v20 }
 0x1d1   : > { %761 = vxpose.xlu0.b32.start.end [1/1] (short) (narrow) %v673_v22, 32  ;;  %v757_v42 = vpop.f32.mrb[0].mxu1 }
 0x1d2   : > { %v3050_v43 = vadd.f32 %v1947_v41, %v757_v42  ;;  %v2029_v44 = vpop.f32.mrb[1].mxu1  ;;  %v1604_v42 = vld [vmem:[%s3299_s15] sm:$0xff] }
 0x1d4   : > { %795 = vst.msk [vmem:[#allocation3] sm:$0xff] %vm793_vm2, %v3050_v43 }
 0x1d6   : > { %v900_v28 = vpop.f32.mrb[2].mxu0 }
 0x1d7   : > { %v901_v29 = vadd.f32 %v1949_v26, %v900_v28  ;;  %v2040_v30 = vpop.f32.mrb[3].mxu0 }
 0x1d9   : > { %v904_v31 = vmul.f32 0.35355338, %v901_v29 }
 0x1db   : > { %906 = vst.msk [vmem:[#allocation4] sm:$0xff] %vm793_vm2, %v904_v31  ;;  %908 = vrot.lane.b32.xlu1 %v904_v31, %s2604_s26  ;;  %v1010_v45 = vld [vmem:[#allocation3] sm:$0xff] }
 0x1df   : > { %913 = vrot.lane.b32.xlu1 %v904_v31, %s2605_s3 }
 0x1e2   : > { %v923_v36 = vld [vmem:[#allocation4] sm:$0xff] }
 0x24d   : > { %v909_v32 = vpop.permute.xlu1 %908 }
 0x24e   : > { %912 = vst.msk [vmem:[#allocation4 + $0x8] sm:$0xff] %vm793_vm2, %v909_v32 }
 0x251   : > { %v777_v33 = vpop.trf.xlu0  ;;  %v914_v34 = vpop.permute.xlu1 %913 }
 0x252   : > { %794 = vst.msk [vmem:[#allocation2] sm:$0xff] %vm793_vm2, %v777_v33  ;;  %917 = vst.msk [vmem:[#allocation4 + $0x10] sm:$0xff] %vm793_vm2, %v914_v34 }
 0x255   : > { %v778_v35 = vpop.trf.xlu0  ;;  %v1085_v3 = vld [vmem:[#allocation4 + $0x8] sm:$0xff] }
 0x256   : > { %797 = vst.msk [vmem:[#allocation2 + $0x8] sm:$0xff] %vm793_vm2, %v778_v35 }
 0x259   : > { %v779_v37 = vpop.trf.xlu0  ;;  %v924_v38 = vld [vmem:[#allocation2] sm:$0xff]  ;;  %v1251_v39 = vld [vmem:[#allocation4 + $0x10] sm:$0xff] }
 0x25a   : > { %805 = vst.msk [vmem:[#allocation2 + $0x10] sm:$0xff] %vm793_vm2, %v779_v37  ;;  %2042 = vmatpush3.msra.mxu1 %v924_v38 }
 0x25b   : > { %2044 = vmatmul.mubr.msk.f32.vlgmr.msra.gmra.mrb[2].mxu1 %vm793_vm2, %v923_v36  ;;  %2046 = vmatprep.subr.mxu1 %v2603_v1 }
 0x25c   : > { %2048 = vmatprep.mubr.msk.f32.mxu1 %vm2602_vm0, %v2603_v1  ;;  %2047 = vmatpush3.msra.mxu1 %v1010_v45 }
 0x25d   : > { %2051 = vmatprep.subr.mxu1 %v2603_v1  ;;  %v780_v46 = vpop.trf.xlu0  ;;  %v1087_v2 = vld [vmem:[#allocation2 + $0x8] sm:$0xff] }
 0x25e   : > { %812 = vst.msk [vmem:[#allocation2 + $0x18] sm:$0xff] %vm793_vm2, %v780_v46  ;;  %v1606_v46 = vld [vmem:[%s3299_s15 + $0x10] sm:$0xff] }
 0x261   : > { %v1253_v40 = vld [vmem:[#allocation2 + $0x10] sm:$0xff] }
 0x262   : > { %2062 = vmatpush3.msra.mxu0 %v1253_v40 }
 0x263   : > { %2064 = vmatmul.mubr.msk.f32.vlgmr.msra.gmra.mrb[4].mxu0 %vm793_vm2, %v1251_v39  ;;  %2071 = vmatprep.subr.mxu0 %v2603_v1 }
 0x264   : > { %2073 = vmatprep.mubr.msk.f32.mxu0 %vm2602_vm0, %v2603_v1 }
 0x265   : > { %v1419_v53 = vld [vmem:[#allocation2 + $0x18] sm:$0xff] }
 0x266   : > { %2072 = vmatpush3.msra.mxu0 %v1419_v53 }
 0x267   : > { %2110 = vmatprep.subr.bf16.mxu0 %v2601_v0 }
 0x32e   : > { %v994_v47 = vpop.f32.mrb[2].mxu1 }
 0x32f   : > { %v998_v48 = vsel %vm793_vm2, %v994_v47, -inf  ;;  %v2045_v49 = vpop.f32.mrb[3].mxu1 }
 0x330   : > { %999 = vmax.xlane.f32.xlu0 %v998_v48 }
 0x336   : > { %v1323_v50 = vpop.f32.mrb[4].mxu0 }
 0x337   : > { %v1327_v51 = vsel %vm793_vm2, %v1323_v50, -inf  ;;  %v2065_v52 = vpop.f32.mrb[5].mxu0 }
 0x338   : > { %1328 = vmax.xlane.f32.xlu0 %v1327_v51 }
 0x3bd   : > { %v1000_v54 = vpop.xlane.xlu0 %999 }
 0x3be   : > { %v1001_v55 = vsub.f32 %v994_v47, %v1000_v54 }
 0x3c0   : > { %v1002_v56 = vmul.f32 1.442695, %v1001_v55 }
 0x3c2   : > { %2246 = vpow2.f32 %v1002_v56 }
 0x3c5   : > { %v1329_v4 = vpop.xlane.xlu0 %1328 }
 0x3c6   : > { %v1330_v5 = vsub.f32 %v1323_v50, %v1329_v4 }
 0x3c8   : > { %v1331_v6 = vmul.f32 1.442695, %v1330_v5 }
 0x3cc   : > { %v2247_v57 = vpop.eup %2246 }
 0x3cd   : > { %v1004_v58 = vsel %vm793_vm2, %v2247_v57, 0.0 }
 0x3ce   : > { %1005 = vadd.xlane.f32.xlu1 %v1004_v58 }
 0x3df   : > { %918 = vrot.lane.b32.xlu1 %v904_v31, %s2606_s21 }
 0x45b   : > { %v1006_v59 = vpop.xlane.xlu1 %1005 }
 0x45c   : > { %2248 = vrcp.f32 %v1006_v59 }
 0x45d   : > { %2250 = vpow2.f32 %v1331_v6 }
 0x45f   : > { %v919_v60 = vpop.permute.xlu1 %918 }
 0x460   : > { %922 = vst.msk [vmem:[#allocation4 + $0x18] sm:$0xff] %vm793_vm2, %v919_v60 }
 0x466   : > { %v2249_v61 = vpop.eup %2248 }
 0x467   : > { %v1008_v62 = vmul.f32 %v2249_v61, %v2247_v57  ;;  %v1417_v63 = vld [vmem:[#allocation4 + $0x18] sm:$0xff]  ;;  %v2251_v11 = vpop.eup %2250 }
 0x468   : > { %2074 = vmatmul.mubr.msk.f32.vlgmr.msra.gmra.mrb[6].mxu0 %vm793_vm2, %v1417_v63  ;;  %v1333_v14 = vsel %vm793_vm2, %v2251_v11, 0.0 }
 0x469   : > { %1009 = vst.msk [vmem:[%s3064_s30] sm:$0xff] %vm793_vm2, %v1008_v62  ;;  %2049 = vmatmul.mubr.msk.f32.vlgmr.msra.gmra.mrb[4].mxu1 %vm793_vm2, %v1008_v62  ;;  %2089 = vmatprep.mubr.msk.f32.mxu0 %vm2602_vm0, %v2603_v1 }
 0x46a   : > { %2052 = vmatpush3.msra.mxu1 %v1087_v2  ;;  %2053 = vmatprep.mubr.msk.f32.mxu1 %vm2602_vm0, %v2603_v1 }
 0x46b   : > { %2056 = vmatprep.subr.mxu1 %v2603_v1 }
 0x46d   : > { %2054 = vmatmul.mubr.msk.f32.vlgmr.msra.gmra.mrb[6].mxu1 %vm793_vm2, %v1085_v3 }
 0x46e   : > { %2058 = vmatprep.mubr.msk.f32.mxu1 %vm2602_vm0, %v2603_v1 }
 0x53b   : > { %v1489_v7 = vpop.f32.mrb[6].mxu0 }
 0x53c   : > { %v1080_v8 = vpop.f32.mrb[4].mxu1  ;;  %v2075_v9 = vpop.f32.mrb[7].mxu0  ;;  %v1493_v10 = vsel %vm793_vm2, %v1489_v7, -inf }
 0x53d   : > { %1084 = vst.msk [vmem:[#allocation5] sm:$0xff] %vm793_vm2, %v1080_v8  ;;  %v2050_v12 = vpop.f32.mrb[5].mxu1  ;;  %1494 = vmax.xlane.f32.xlu0 %v1493_v10 }
 0x540   : > { %v1157_v13 = vpop.f32.mrb[6].mxu1 }
 0x541   : > { %v2055_v15 = vpop.f32.mrb[7].mxu1  ;;  %1334 = vadd.xlane.f32.xlu0 %v1333_v14  ;;  %v1161_v16 = vsel %vm793_vm2, %v1157_v13, -inf }
 0x542   : > { %1162 = vmax.xlane.f32.xlu1 %v1161_v16 }
 0x544   : > { %v1583_v57 = vld [vmem:[#allocation5] sm:$0xff] }
 0x557   : > { %799 = vrot.lane.b32.xlu0 %v3050_v43, %s2604_s26 }
 0x5ca   : > { %v1495_v17 = vpop.xlane.xlu0 %1494 }
 0x5cb   : > { %v1496_v18 = vsub.f32 %v1489_v7, %v1495_v17 }
 0x5cd   : > { %v1497_v19 = vmul.f32 1.442695, %v1496_v18 }
 0x5ce   : > { %v1335_v20 = vpop.xlane.xlu0 %1334 }
 0x5cf   : > { %2252 = vpow2.f32 %v1497_v19  ;;  %v1163_v27 = vpop.xlane.xlu1 %1162 }
 0x5d0   : > { %2254 = vrcp.f32 %v1335_v20  ;;  %v1164_v28 = vsub.f32 %v1157_v13, %v1163_v27 }
 0x5d2   : > { %v800_v21 = vpop.permute.xlu0 %799  ;;  %v1165_v29 = vmul.f32 1.442695, %v1164_v28 }
 0x5d3   : > { %803 = vst.msk [vmem:[#allocation3 + $0x8] sm:$0xff] %vm793_vm2, %v800_v21 }
 0x5d4   : > { %2256 = vpow2.f32 %v1165_v29 }
 0x5d9   : > { %v2253_v22 = vpop.eup %2252 }
 0x5da   : > { %v2255_v23 = vpop.eup %2254  ;;  %v1499_v24 = vsel %vm793_vm2, %v2253_v22, 0.0  ;;  %v1175_v25 = vld [vmem:[#allocation3 + $0x8] sm:$0xff] }
 0x5db   : > { %v1337_v26 = vmul.f32 %v2255_v23, %v2251_v11  ;;  %1500 = vadd.xlane.f32.xlu1 %v1499_v24  ;;  %2057 = vmatpush3.msra.mxu1 %v1175_v25 }
 0x5dc   : > { %2066 = vmatprep.subr.mxu1 %v2603_v1 }
 0x5dd   : > { %1957 = vst.msk [vmem:[%s3064_s30 + $0x10] sm:$0xff] %vm793_vm2, %v1337_v26 }
 0x5de   : > { %v2257_v30 = vpop.eup %2256 }
 0x5df   : > { %v1167_v31 = vsel %vm793_vm2, %v2257_v30, 0.0 }
 0x5ec   : > { %806 = vrot.lane.b32.xlu1 %v3050_v43, %s2605_s3 }
 0x610   : > { %1168 = vadd.xlane.f32.xlu1 %v1167_v31 }
 0x621   : > { %813 = vrot.lane.b32.xlu1 %v3050_v43, %s2606_s21  ;;  %v1605_v43 = vld [vmem:[%s3299_s15 + $0x8] sm:$0xff]  ;;  %s3302_s21 = sld [smem:[#allocation41_spill]] }
 0x622   : > { %v2111_v44 = vpack.c.bf16 %v1605_v43, %v1604_v42 }
 0x624   : > { %2112 = vmatpush3.bf16.msra.mxu0 %v2111_v44 }
 0x625   : > { %2113 = vmatprep.subr.bf16.mxu0 %v2601_v0 }
 0x627   : > { %s3303_s16 = smov %s3302_s21  ;;  %s3131_s9 = scalar_lea.hbm %s3302_s21, %s1971_s11 }
 0x668   : > { %v1501_v32 = vpop.xlane.xlu1 %1500 }
 0x669   : > { %2258 = vrcp.f32 %v1501_v32 }
 0x66c   : > { %v807_v33 = vpop.permute.xlu1 %806 }
 0x66d   : > { %810 = vst.msk [vmem:[#allocation3 + $0x10] sm:$0xff] %vm793_vm2, %v807_v33 }
 0x673   : > { %v2259_v34 = vpop.eup %2258 }
 0x674   : > { %v1503_v35 = vmul.f32 %v2259_v34, %v2253_v22  ;;  %v1341_v40 = vld [vmem:[#allocation3 + $0x10] sm:$0xff] }
 0x676   : > { %1960 = vst.msk [vmem:[%s3064_s30 + $0x18] sm:$0xff] %vm793_vm2, %v1503_v35 }
 0x69d   : > { %v1169_v36 = vpop.xlane.xlu1 %1168 }
 0x69e   : > { %2260 = vrcp.f32 %v1169_v36 }
 0x6a1   : > { %v814_v37 = vpop.permute.xlu1 %813 }
 0x6a2   : > { %817 = vst.msk [vmem:[#allocation3 + $0x18] sm:$0xff] %vm793_vm2, %v814_v37 }
 0x6a8   : > { %v2261_v38 = vpop.eup %2260 }
 0x6a9   : > { %v1171_v39 = vmul.f32 %v2261_v38, %v2257_v30  ;;  %v1507_v41 = vld [vmem:[#allocation3 + $0x18] sm:$0xff] }
 0x6ab   : > { %1954 = vst.msk [vmem:[%s3064_s30 + $0x8] sm:$0xff] %vm793_vm2, %v1171_v39  ;;  %2059 = vmatmul.mubr.msk.f32.vlgmr.msra.gmra.mrb[8].mxu1 %vm793_vm2, %v1171_v39  ;;  %s2470_s30 = scalar_lea.vmem %s2469_s1, 1024 }
 0x6ac   : > { %2067 = vmatpush3.msra.mxu1 %v1341_v40  ;;  %2068 = vmatprep.mubr.msk.f32.mxu1 %vm2602_vm0, %v2603_v1  ;;  %p2472_p9 = scmp.lt.s32.totalorder %s2470_s30, %s2464_s24 }
 0x6ad   : > { %2076 = vmatprep.subr.mxu1 %v2603_v1 }
 0x6ae   : > { %p2473_p7 = por %p2472_p9, %p2471_p8 }
 0x6af   : > { %2069 = vmatmul.mubr.msk.f32.vlgmr.msra.gmra.mrb[10].mxu1 %vm793_vm2, %v1337_v26 }
 0x6b0   : > { %2077 = vmatpush3.msra.mxu1 %v1507_v41  ;;  %2078 = vmatprep.mubr.msk.f32.mxu1 %vm2602_vm0, %v2603_v1  ;;  %v1607_v1 = vld [vmem:[%s3299_s15 + $0x18] sm:$0xff]  ;;  %p2474_p11 = pnand %p2473_p7, %p2467_p12 }
 0x6b1   : > { %v2114_v48 = vpack.c.bf16 %v1607_v1, %v1606_v46 }
 0x6b3   : > { %2079 = vmatmul.mubr.msk.f32.vlgmr.msra.gmra.mrb[12].mxu1 %vm793_vm2, %v1503_v35  ;;  %2115 = vmatpush3.bf16.msra.mxu0 %v2114_v48 }
 0x77e   : > { %v1245_v45 = vpop.f32.mrb[8].mxu1 }
 0x77f   : > { %1250 = vst.msk [vmem:[#allocation5 + $0x8] sm:$0xff] %vm793_vm2, %v1245_v45  ;;  %v2060_v47 = vpop.f32.mrb[9].mxu1 }
 0x782   : > { %v1411_v49 = vpop.f32.mrb[10].mxu1 }
 0x783   : > { %1416 = vst.msk [vmem:[#allocation5 + $0x10] sm:$0xff] %vm793_vm2, %v1411_v49  ;;  %v2070_v50 = vpop.f32.mrb[11].mxu1 }
 0x786   : > { %v1577_v51 = vpop.f32.mrb[12].mxu1  ;;  %v1584_v52 = vld [vmem:[#allocation5 + $0x8] sm:$0xff] }
 0x787   : > { %1582 = vst.msk [vmem:[#allocation5 + $0x18] sm:$0xff] %vm793_vm2, %v1577_v51  ;;  %1588 = vrot.lane.b32.xlu1 %v1584_v52, %s2607_s17  ;;  %v2080_v0 = vpop.f32.mrb[13].mxu1 }
 0x78a   : > { %v1585_v53 = vld [vmem:[#allocation5 + $0x10] sm:$0xff] }
 0x78b   : > { %1592 = vrot.lane.b32.xlu0 %v1585_v53, %s2608_s12 }
 0x78e   : > { %v1586_v54 = vld [vmem:[#allocation5 + $0x18] sm:$0xff] }
 0x78f   : > { %1596 = vrot.lane.b32.xlu1 %v1586_v54, %s2609_s27 }
 0x7f9   : > { %v1589_v55 = vpop.permute.xlu1 %1588 }
 0x7fa   : > { %v1599_v58 = vsel %vm793_vm2, %v1583_v57, %v1589_v55 }
 0x7fd   : > { %v1593_v56 = vpop.permute.xlu0 %1592 }
 0x7fe   : > { %v1601_v59 = vsel %vm1600_vm3, %v1599_v58, %v1593_v56 }
 0x801   : > { %v1597_v60 = vpop.permute.xlu1 %1596 }
 0x802   : > { %v1603_v61 = vsel %vm1602_vm4, %v1601_v59, %v1597_v60 }
 0x803   : > { %2090 = vmatmul.mubr.msk.f32.vlgmr.msra.gmra.mrb[8].mxu0 %vm602_vm1, %v1603_v61 }
 0x804   : > { %2477 = shalt.err (!%p2474_p11)
}
 0x805   : > { %s2478_s14 = scalar_lea.hbm %s3131_s9, 512  ;;  %s2482_s12 = scalar_lea.hbm %s3303_s16, 1024 }
 0x806   : > { %p2479_p5 = scmp.ne.s32.totalorder %s3131_s9, %s2478_s14  ;;  %p2483_p0 = scmp.lt.u32.totalorder %s3131_s9, %s3303_s16 }
 0x807   : > { %p2484_p4 = scmp.lt.u32.totalorder %s2482_s12, %s2478_s14  ;;  %p2486_p13 = scmp.lt.u32.totalorder %s2478_s14, %s3131_s9 }
 0x808   : > { %p2480_p3 = pnand %p2479_p5, %p3304_p2 }
 0x809   : > { %p2485_p10 = por %p2484_p4, %p2483_p0 }
 0x80a   : > { %p2481_p6 = pneg %p2480_p3 }
 0x80b   : > { %p2487_p1 = por %p2486_p13, %p2485_p10 }
 0x80d   : > { %p2488_p12 = pnand %p2487_p1, %p2481_p6 }
 0x80f   : > { %2491 = shalt.err (!%p2488_p12)
}
 0x810   : > { %s2611_s26 = smov 128   ;;  %s3305_s24 = sld [smem:[#allocation39_spill]] }
 0x811   : > { %2139 = dma.vmem_to_hbm [thread:$0]  (%p3304_p2), %s3133_s18, 512, %s3131_s9, %s1695_s29, %s2611_s26, %s2611_s26, %s2607_s17  }
 0x812   : > { %s1966_s13 = sshll.u32 %s3300_s19, 7  ;;  %s578_s1 = scalar_lea.vmem [#allocation18], %s2980_s10 }
 0x813   : > { %s1709_s30 = sshll.u32 %s578_s1, 4  ;;  %s3306_s28 = sld [smem:[#allocation40_spill]]  ;;  %s3170_s30 = int_to_ptr.vmem [resolvable:$true] %s1709_s30 }
 0x814   : > { %s1690_s17 = scalar_lea.sflag [#allocation8], %s2977_s25  ;;  %s2492_s18 = scalar_lea.vmem %s3170_s30, 128 }
 0x815   : > { %p2493_p8 = scmp.ne.s32.totalorder %s3170_s30, %s2492_s18  ;;  %s2612_s10 = smov [#allocation18]  }
 0x816   : > { %v1962_v62 = vld [vmem:[%s3305_s24] ss:$0 sm:$0xff]  ;;  %s2496_s19 = sshll.u32 %s2612_s10, 4  ;;  %s2497_s19 = int_to_ptr.vmem [resolvable:$false] %s2496_s19 }
 0x817   : > { %p2494_p9 = pnand %p2493_p8, %p3304_p2  ;;  %s2498_s9 = scalar_lea.vmem %s2497_s19, 256 }
 0x818   : > { %p2499_p11 = scmp.lt.s32.totalorder %s3170_s30, %s2497_s19  ;;  %p2500_p5 = scmp.lt.s32.totalorder %s2498_s9, %s2492_s18 }
 0x819   : > { %s3168_s12 = scalar_lea.hbm %s3306_s28, %s1966_s13  ;;  %p2495_p7 = pneg %p2494_p9 }
 0x81a   : > { %p2501_p3 = por %p2500_p5, %p2499_p11 }
 0x81c   : > { %p2502_p6 = pnand %p2501_p3, %p2495_p7 }
 0x8d6   : > { %v1684_v63 = vpop.f32.mrb[8].mxu0 }
 0x8d7   : > { %v1685_v2 = vadd.f32 %v1962_v62, %v1684_v63  ;;  %v2091_v3 = vpop.f32.mrb[9].mxu0 }
 0x8d9   : > { %1688 = vst.msk [vmem:[%s578_s1] sm:$0xff] %vm602_vm1, %v1685_v2 }
 0x8da   : > { %2505 = shalt.err (!%p2502_p6)
}
 0x8db   : > { %s2506_s25 = scalar_lea.hbm %s3168_s12, 128  ;;  %s2510_s11 = scalar_lea.hbm %s3306_s28, 256 }
 0x8dc   : > { %p2507_p0 = scmp.ne.s32.totalorder %s3168_s12, %s2506_s25  ;;  %p2511_p13 = scmp.lt.u32.totalorder %s3168_s12, %s3306_s28 }
 0x8dd   : > { %p2512_p1 = scmp.lt.u32.totalorder %s2510_s11, %s2506_s25  ;;  %p2514_p8 = scmp.lt.u32.totalorder %s2506_s25, %s3168_s12 }
 0x8de   : > { %p2508_p4 = pnand %p2507_p0, %p3304_p2 }
 0x8df   : > { %p2513_p12 = por %p2512_p1, %p2511_p13 }
 0x8e0   : > { %p2509_p10 = pneg %p2508_p4 }
 0x8e1   : > { %p2515_p9 = por %p2514_p8, %p2513_p12 }
 0x8e3   : > { %p2516_p7 = pnand %p2515_p9, %p2509_p10 }
 0x8e5   : > { %2519 = shalt.err (!%p2516_p7)
}
 0x8e6   : > { %2138 = dma.vmem_to_hbm [thread:$0]  (%p3304_p2), %s3170_s30, 128, %s3168_s12, %s1690_s17  }
 0x8e7 PF: > { %s3307_s21 = sld [smem:[#allocation27_spill]]  ;;  %s3308_s24 = sld [smem:[#allocation34_spill]] }
 0x8e8   : > { %s3309_s13 = sld [smem:[#allocation30_spill]] }
 0x8ed   : > { %s1738_s1 = sand.u32 1, %s3307_s21   ;;  %p3310_p11 = scmp.ne.s32.totalorder %s3308_s24, 0 }
 0x8ee   : > { %p3311_p5 = scmp.ge.s32.totalorder %s3309_s13, 2  ;;  %s1739_s14 = scalar_lea.sflag [#allocation8], %s1738_s1 }
 0x8f0   : > { %p2166_p3 = pnand %p3311_p5, %p3310_p11 }
 0x8f2   : > { %2561 = dma.done.wait (!%p2166_p3), %s1739_s14, 128  }
 0x8f3   : > { %2563 = vsyncadd (!%p2166_p3), %s1739_s14, 4294967168  ;;  %s1748_s7 = scalar_lea.sflag [#allocation20], %s1738_s1 }
 0x8f4   : > { %2565 = dma.done.wait (!%p2166_p3), %s1748_s7, 512  }
 0x8f5   : > { %2567 = vsyncadd (!%p2166_p3), %s1748_s7, 4294966784  ;;  %s37_s26 = sadd.s32 1, %s3309_s13   ;;  %s3312_s20 = sld [smem:[#allocation33_spill]] }
 0x8f6   : > { %p34_p6 = scmp.ge.s32.totalorder %s37_s26, 4   ;;  %s3313_s24 = sld [smem:[#allocation29_spill]] }
 0x8f7   : > { %s3314_s25 = sld [smem:[#allocation31_spill]]  ;;  %s3315_s21 = smov %s2574_s22 }
 0x8f8   : > { %s3316_s22 = smov %s2578_s23  ;;  %36 = sbr.rel (!%p34_p6) target bundleno = 20 (0x14), region = 191 }
 0x8fb   : > { %s3317_s23 = smov %s3312_s20 }
 0x8ff   :  { %1753 = vsyncpa [#allocation7], 1 }
 0x900   :  { %1755 = vsyncpa [#allocation7 + $0x1], 1 }
 0x901   :  { %1756 = vsyncpa [#allocation10], 1 }
 0x902   :  { %1758 = vsyncpa [#allocation10 + $0x1], 1 }
 0x903   :  { %1759 = vsyncpa [#allocation13], 1 }
 0x904   :  { %1760 = vsyncpa [#allocation16], 1 }
 0x905   :  { %1761 = vsyncpa [#allocation8], 1 }
 0x906   :  { %1763 = vsyncpa [#allocation8 + $0x1], 1 }
 0x907   :  { %1764 = vsyncpa [#allocation20], 1 }
 0x908   :  { %1766 = vsyncpa [#allocation20 + $0x1], 1 }

</bundles_post_ra>
